<compile_context>
chip_gen: v7x
topology: tpu7x:2x2x1
jax: 0.10.0
libtpu: 0.0.40
codegen_flags: <defaults>
</compile_context>

<pallas_src>
import jax
import jax.numpy as jnp
from jax import lax
from jax.experimental import pallas as pl
from jax.experimental.pallas import tpu as pltpu


# Parameter-slab slot layout (per block; lane index inside the (L, 32) slab).
_DW0 = 0      # slots 0..24: 5x5 depthwise taps, raster order (di, dj) in [-2, 2]
_B1 = 25      # Conv_block folded BN bias                 (length G)
_ALPHA = 26   # Conv_block PReLU alpha                    (length G)
_CAB2 = 27    # CoordAtt conv2 bias                       (length G)
_CAB3 = 28    # CoordAtt conv3 bias                       (length G)
_CAB1 = 29    # CoordAtt conv1 bias folded with bn1       (length M)
_BP = 30      # Linear_block folded BN bias               (length C)
_NSLOT = 32


# ----------------------------------------------------------------------------
# Pallas kernel: the whole Mix_Residual chain (B residual blocks, one invocation)
# ----------------------------------------------------------------------------
def _make_mix_residual_kernel(W, B, C, G, M):
    def kernel(x_ref, w1t_ref, ca_w1t_ref, w23t_ref, pwt_ref, slab_ref,
               pool_h_ref, pool_w_ref, eh_ref, ew_ref, mask_ref, out_ref):
        """
        x_ref      : (C, P)       input activation, channels x flattened (n,h,w)
        w1t_ref    : (B, G, C)    Conv_block 1x1 weight, BN scale folded in
        ca_w1t_ref : (B, M, G)    CoordAtt conv1 weight, bn1 scale folded in
        w23t_ref   : (B, 2G, M)   CoordAtt conv2 / conv3 weights stacked
        pwt_ref    : (B, C, G)    Linear_block projection weight, BN scale folded in
        slab_ref   : (B, L, 32)   per-channel params (dw taps, biases, PReLU alpha)
        pool_h_ref : (P, N*H)     avg-pool over w (per (n,h) column)
        pool_w_ref : (P, N*W)     avg-pool over h (per (n,w) column)
        eh_ref     : (N*H, P)     one-hot expansion (n,h) -> (n,h,w)
        ew_ref     : (N*W, P)     one-hot expansion (n,w) -> (n,h,w)
        mask_ref   : (25, P)      zero-padding boundary mask per depthwise tap
        out_ref    : (C, P)       final output
        """
        P = x_ref.shape[1]
        f32 = jnp.float32

        # Block-independent constants, loaded once.
        pool_h = pool_h_ref[...]
        pool_w = pool_w_ref[...]
        eh = eh_ref[...]
        ew = ew_ref[...]
        mask_rows = [mask_ref[k:k + 1, :] for k in range(25)]     # 25 x (1, P)

        act = x_ref[...]                    # (C, P) carried in registers across blocks

        for b in range(B):                  # statically unrolled (B is small)
            # ---- Conv_block: 1x1 conv (BN scale pre-folded) + bias + PReLU --------
            t = jnp.dot(w1t_ref[b], act, preferred_element_type=f32)          # (G, P)
            t = t + slab_ref[b, :G, _B1:_B1 + 1]
            t = jnp.where(t > 0.0, t, slab_ref[b, :G, _ALPHA:_ALPHA + 1] * t)

            # ---- MDConv: merged 5x5 depthwise, zero pad 2, stride 1 ----------------
            # tap(di,dj)[:, p] == t[:, p + di*W + dj]; pltpu.roll (jnp.roll semantics,
            # shift = -off) gives the shifted view on the otherwise-idle XLU and the
            # precomputed boundary mask zeroes every wrapped / out-of-range position,
            # which is exactly the zero-padded 2-D depthwise convolution.
            dwo = jnp.zeros_like(t)
            k = 0
            for di in range(-2, 3):
                for dj in range(-2, 3):
                    off = di * W + dj
                    tap = t if off == 0 else pltpu.roll(t, shift=(-off) % P, axis=1)
                    wk = slab_ref[b, :G, k:k + 1]                             # (G, 1)
                    dwo = dwo + tap * wk * mask_rows[k]
                    k += 1

            # ---- CoordAtt ----------------------------------------------------------
            ph = jnp.dot(dwo, pool_h, preferred_element_type=f32)             # (G, N*H)
            pw = jnp.dot(dwo, pool_w, preferred_element_type=f32)             # (G, N*W)
            w1ca = ca_w1t_ref[b]                                              # (M, G)
            bca = slab_ref[b, :M, _CAB1:_CAB1 + 1]                            # (M, 1)
            yh = jnp.dot(w1ca, ph, preferred_element_type=f32) + bca          # (M, N*H)
            yw = jnp.dot(w1ca, pw, preferred_element_type=f32) + bca          # (M, N*W)
            yh = yh * jnp.clip(yh + 3.0, 0.0, 6.0) * (1.0 / 6.0)              # h_swish
            yw = yw * jnp.clip(yw + 3.0, 0.0, 6.0) * (1.0 / 6.0)
            w23 = w23t_ref[b]                                                 # (2G, M)
            ah = jax.nn.sigmoid(jnp.dot(w23[:G], yh, preferred_element_type=f32)
                                + slab_ref[b, :G, _CAB2:_CAB2 + 1])           # (G, N*H)
            aw = jax.nn.sigmoid(jnp.dot(w23[G:], yw, preferred_element_type=f32)
                                + slab_ref[b, :G, _CAB3:_CAB3 + 1])           # (G, N*W)
            att = dwo * jnp.dot(ah, eh, preferred_element_type=f32) \
                      * jnp.dot(aw, ew, preferred_element_type=f32)           # (G, P)

            # ---- Linear_block projection (BN folded) + residual --------------------
            z = jnp.dot(pwt_ref[b], att, preferred_element_type=f32)          # (C, P)
            act = act + z + slab_ref[b, :C, _BP:_BP + 1]

        out_ref[...] = act

    return kernel


# ----------------------------------------------------------------------------
# Host-side parameter packing (BN scales folded into weights, biases consolidated)
# ----------------------------------------------------------------------------
def _pack_block_params(params):
    C, G = params[0]["w1"].shape
    M = params[0]["ca_w1"].shape[1]
    L = max(C, G, M)

    def one(p):
        s1, b1, alpha = p["cb"][0], p["cb"][1], p["cb"][2]
        sp, bp = p["psb"][0], p["psb"][1]
        ca_bias1, sm, bm = p["ca_b1"][0], p["ca_b1"][1], p["ca_b1"][2]

        w1t = s1[:, None] * p["w1"].T                               # (G, C)
        ca_w1t = sm[:, None] * p["ca_w1"].T                         # (M, G)
        w23t = jnp.concatenate([p["ca_w2"].T, p["ca_w3"].T], 0)     # (2G, M)
        pwt = sp[:, None] * p["pw"].T                               # (C, G)

        slab = jnp.zeros((L, _NSLOT), jnp.float32)
        slab = slab.at[:G, _DW0:_DW0 + 25].set(p["dw"].reshape(25, G).T)
        slab = slab.at[:G, _B1].set(b1)
        slab = slab.at[:G, _ALPHA].set(alpha)
        slab = slab.at[:G, _CAB2].set(p["ca_b23"][0])
        slab = slab.at[:G, _CAB3].set(p["ca_b23"][1])
        slab = slab.at[:M, _CAB1].set(ca_bias1 * sm + bm)
        slab = slab.at[:C, _BP].set(bp)
        return w1t, ca_w1t, w23t, pwt, slab

    per = [one(p) for p in params]
    return tuple(jnp.stack([blk[i] for blk in per], axis=0) for i in range(5))


def _spatial_constants(N, H, W):
    P = N * H * W
    p_idx = jnp.arange(P)
    n_idx = p_idx // (H * W)
    h_idx = (p_idx // W) % H
    w_idx = p_idx % W
    col_h = n_idx * H + h_idx
    col_w = n_idx * W + w_idx
    oh_h = jax.nn.one_hot(col_h, N * H, dtype=jnp.float32)          # (P, N*H)
    oh_w = jax.nn.one_hot(col_w, N * W, dtype=jnp.float32)          # (P, N*W)
    pool_h = oh_h / W                                               # mean over w
    pool_w = oh_w / H                                               # mean over h
    eh = oh_h.T                                                     # (N*H, P)
    ew = oh_w.T                                                     # (N*W, P)
    masks = []
    for di in range(-2, 3):
        for dj in range(-2, 3):
            m = ((h_idx + di >= 0) & (h_idx + di < H)
                 & (w_idx + dj >= 0) & (w_idx + dj < W))
            masks.append(m.astype(jnp.float32))
    mask = jnp.stack(masks, axis=0)                                 # (25, P)
    return pool_h, pool_w, eh, ew, mask


@jax.jit
def mix_residual_pallas(x_nhwc, params):
    N, H, W, C = x_nhwc.shape
    B = len(params)
    G = params[0]["w1"].shape[1]
    M = params[0]["ca_w1"].shape[1]
    P = N * H * W
    # Documented layout assumptions (lane-dense, tile-aligned).
    assert P % 128 == 0, "N*H*W must be a multiple of 128 for the lane-dense layout"
    assert C % 8 == 0 and G % 8 == 0 and M % 8 == 0, "channel dims must be multiples of 8"

    w1t, ca_w1t, w23t, pwt, slab = _pack_block_params(params)
    pool_h, pool_w, eh, ew, mask = _spatial_constants(N, H, W)
    x_cp = x_nhwc.reshape(P, C).T                                   # (C, P) lane-dense

    # Single invocation (no grid): every operand is tiny and fully VMEM-resident, so the
    # per-grid-step machinery and per-step DMA descriptors are gone.  For large P,
    # reintroduce a ('parallel', 'arbitrary') grid over (batch, block) and set
    # pltpu.CompilerParams(vmem_limit_bytes=...) for v7x's 64 MiB VMEM.
    out = pl.pallas_call(
        _make_mix_residual_kernel(W, B, C, G, M),
        out_shape=jax.ShapeDtypeStruct((C, P), jnp.float32),
    )(x_cp, w1t, ca_w1t, w23t, pwt, slab, pool_h, pool_w, eh, ew, mask)

    return out.T.reshape(N, H, W, C)


# ----------------------------------------------------------------------------
# Deterministic parameter construction (inference-mode, folded BN stats)
# ----------------------------------------------------------------------------
def _fold_bn(gamma, beta, mean, var, eps=1e-5):
    scale = gamma / jnp.sqrt(var + eps)
    return scale, beta - mean * scale


def init_block_params(key, c, groups, kernel_size=(3, 5), split_out_channels=(8, 8)):
    assert sum(split_out_channels) == groups
    assert tuple(kernel_size) == (3, 5)
    mip = max(8, groups // 32)                      # CoordAtt hidden width
    keys = iter(jax.random.split(key, 32))

    def nrm(shape, s=0.2):
        return (s * jax.random.normal(next(keys), shape)).astype(jnp.float32)

    def bn(n):
        g = 1.0 + nrm((n,), 0.05)
        b = nrm((n,), 0.05)
        m = nrm((n,), 0.05)
        v = 1.0 + jnp.abs(nrm((n,), 0.05))
        return _fold_bn(g, b, m, v)

    # Conv_block (1x1 expansion, bias=False) + BN + PReLU
    w1 = nrm((c, groups))
    s1, b1 = bn(groups)
    prelu_a = jnp.full((groups,), 0.25, jnp.float32)
    cb = jnp.stack([s1, b1, prelu_a], 0)

    # MDConv depthwise weights (kernel sizes 3 and 5, merged into one 5x5)
    c3, c5 = split_out_channels
    w_dw3 = nrm((3, 3, c3))
    w_dw5 = nrm((5, 5, c5))
    dw = jnp.zeros((5, 5, groups), jnp.float32)
    dw = dw.at[1:4, 1:4, :c3].set(w_dw3)
    dw = dw.at[:, :, c3:].set(w_dw5)

    # CoordAtt (conv1/conv2/conv3 bias=True; bn1 folded)
    ca_w1 = nrm((groups, mip))
    ca_bias1 = nrm((mip,), 0.05)
    sm, bm = bn(mip)
    ca_b1 = jnp.stack([ca_bias1, sm, bm], 0)
    ca_w2 = nrm((mip, groups))
    ca_w3 = nrm((mip, groups))
    ca_b23 = jnp.stack([nrm((groups,), 0.05), nrm((groups,), 0.05)], 0)

    # Linear_block projection (bias=False) + BN
    pw = nrm((groups, c))
    sp, bp = bn(c)
    psb = jnp.stack([sp, bp], 0)

    return dict(w1=w1, cb=cb, dw=dw, w_dw3=w_dw3, w_dw5=w_dw5,
                ca_w1=ca_w1, ca_b1=ca_b1, ca_w2=ca_w2, ca_w3=ca_w3,
                ca_b23=ca_b23, pw=pw, psb=psb)


# ----------------------------------------------------------------------------
# Pure-JAX reference (mirrors the PyTorch forward, NHWC)
# ----------------------------------------------------------------------------
def mix_depth_wise_ref(x, p):
    N, H, W, C = x.shape
    G = p["w1"].shape[1]
    c3 = p["w_dw3"].shape[-1]
    hi = lax.Precision.HIGHEST

    t = jnp.einsum("nhwc,cg->nhwg", x, p["w1"], precision=hi)
    t = t * p["cb"][0] + p["cb"][1]
    t = jnp.where(t > 0, t, p["cb"][2] * t)

    dn = ("NHWC", "HWIO", "NHWC")
    t3 = lax.conv_general_dilated(t[..., :c3], p["w_dw3"][:, :, None, :],
                                  (1, 1), ((1, 1), (1, 1)),
                                  dimension_numbers=dn, feature_group_count=c3,
                                  precision=hi)
    t5 = lax.conv_general_dilated(t[..., c3:], p["w_dw5"][:, :, None, :],
                                  (1, 1), ((2, 2), (2, 2)),
                                  dimension_numbers=dn, feature_group_count=G - c3,
                                  precision=hi)
    t = jnp.concatenate([t3, t5], axis=-1)

    xh = jnp.mean(t, axis=2)                                  # (N, H, G)
    xw = jnp.mean(t, axis=1)                                  # (N, W, G)
    y = jnp.concatenate([xh, xw], axis=1)                     # (N, H+W, G)
    y = jnp.einsum("nsg,gm->nsm", y, p["ca_w1"], precision=hi) + p["ca_b1"][0]
    y = y * p["ca_b1"][1] + p["ca_b1"][2]
    y = y * jnp.clip(y + 3.0, 0.0, 6.0) / 6.0
    yh, yw = y[:, :H], y[:, H:]
    ah = jax.nn.sigmoid(jnp.einsum("nhm,mg->nhg", yh, p["ca_w2"], precision=hi) + p["ca_b23"][0])
    aw = jax.nn.sigmoid(jnp.einsum("nwm,mg->nwg", yw, p["ca_w3"], precision=hi) + p["ca_b23"][1])
    t = t * aw[:, None, :, :] * ah[:, :, None, :]

    z = jnp.einsum("nhwg,gc->nhwc", t, p["pw"], precision=hi)
    z = z * p["psb"][0] + p["psb"][1]
    return x + z


def mix_residual_ref(x, params):
    for p in params:
        x = mix_depth_wise_ref(x, p)
    return x


# ----------------------------------------------------------------------------
if __name__ == "__main__":
    key = jax.random.PRNGKey(0)
    k_x, k_p = jax.random.split(key)

    # Mix_Residual(c=8, num_block=2, groups=16, kernel_size=[3,5], split_out_channels=[8,8])
    N, H, W, c = 2, 8, 8, 8
    groups = 16
    num_block = 2
    kernel_size = (3, 5)
    split_out_channels = (8, 8)

    x = jax.random.normal(k_x, (N, H, W, c), jnp.float32)     # NHWC (== NCHW (2,8,8,8) permuted)
    block_keys = jax.random.split(k_p, num_block)
    params = [init_block_params(k, c, groups, kernel_size, split_out_channels)
              for k in block_keys]

    out = mix_residual_pallas(x, params)
    out = jax.block_until_ready(out)

    ref = mix_residual_ref(x, params)
    assert out.shape == x.shape and out.dtype == jnp.float32
    assert bool(jnp.all(jnp.isfinite(out)))
    err = float(jnp.max(jnp.abs(out - ref)))
    # Tightened from 2e-2.  Not 1e-4 because the in-kernel f32 dots use the MXU's
    # default precision path, which need not be bit-identical to the HIGHEST-precision
    # XLA reference; genuine layout / indexing bugs produce O(0.1-1) errors and are
    # still caught at this tolerance.
    assert bool(jnp.allclose(out, ref, rtol=1e-2, atol=1e-2)), err

    print("KERNEL_OK")
</pallas_src>

<mosaic_0001>
module attributes {stable_mosaic.version = 11 : i64} {
  func.func @kernel(%arg0: memref<8x128xf32, #tpu.memory_space<vmem>>, %arg1: memref<2x16x8xf32, #tpu.memory_space<vmem>>, %arg2: memref<2x8x16xf32, #tpu.memory_space<vmem>>, %arg3: memref<2x32x8xf32, #tpu.memory_space<vmem>>, %arg4: memref<2x8x16xf32, #tpu.memory_space<vmem>>, %arg5: memref<2x16x32xf32, #tpu.memory_space<vmem>>, %arg6: memref<128x16xf32, #tpu.memory_space<vmem>>, %arg7: memref<128x16xf32, #tpu.memory_space<vmem>>, %arg8: memref<16x128xf32, #tpu.memory_space<vmem>>, %arg9: memref<16x128xf32, #tpu.memory_space<vmem>>, %arg10: memref<25x128xf32, #tpu.memory_space<vmem>>, %arg11: memref<8x128xf32, #tpu.memory_space<vmem>>) attributes {dimension_semantics = [], scalar_prefetch = 0 : i64, scratch_operands = 0 : i64, tpu.core_type = #tpu.core_type<tc>} {
    %c0 = arith.constant 0 : index
    %c0_0 = arith.constant 0 : index
    %0 = vector.load %arg6[%c0, %c0_0] : memref<128x16xf32, #tpu.memory_space<vmem>>, vector<128x16xf32>
    %c0_1 = arith.constant 0 : index
    %c0_2 = arith.constant 0 : index
    %1 = vector.load %arg7[%c0_1, %c0_2] : memref<128x16xf32, #tpu.memory_space<vmem>>, vector<128x16xf32>
    %c0_3 = arith.constant 0 : index
    %c0_4 = arith.constant 0 : index
    %2 = vector.load %arg8[%c0_3, %c0_4] : memref<16x128xf32, #tpu.memory_space<vmem>>, vector<16x128xf32>
    %c0_5 = arith.constant 0 : index
    %c0_6 = arith.constant 0 : index
    %3 = vector.load %arg9[%c0_5, %c0_6] : memref<16x128xf32, #tpu.memory_space<vmem>>, vector<16x128xf32>
    %c0_7 = arith.constant 0 : index
    %c0_8 = arith.constant 0 : index
    %4 = vector.load %arg10[%c0_7, %c0_8] : memref<25x128xf32, #tpu.memory_space<vmem>>, vector<1x128xf32>
    %c1 = arith.constant 1 : index
    %c0_9 = arith.constant 0 : index
    %5 = vector.load %arg10[%c1, %c0_9] : memref<25x128xf32, #tpu.memory_space<vmem>>, vector<1x128xf32>
    %c2 = arith.constant 2 : index
    %c0_10 = arith.constant 0 : index
    %6 = vector.load %arg10[%c2, %c0_10] : memref<25x128xf32, #tpu.memory_space<vmem>>, vector<1x128xf32>
    %c3 = arith.constant 3 : index
    %c0_11 = arith.constant 0 : index
    %7 = vector.load %arg10[%c3, %c0_11] : memref<25x128xf32, #tpu.memory_space<vmem>>, vector<1x128xf32>
    %c4 = arith.constant 4 : index
    %c0_12 = arith.constant 0 : index
    %8 = vector.load %arg10[%c4, %c0_12] : memref<25x128xf32, #tpu.memory_space<vmem>>, vector<1x128xf32>
    %c5 = arith.constant 5 : index
    %c0_13 = arith.constant 0 : index
    %9 = vector.load %arg10[%c5, %c0_13] : memref<25x128xf32, #tpu.memory_space<vmem>>, vector<1x128xf32>
    %c6 = arith.constant 6 : index
    %c0_14 = arith.constant 0 : index
    %10 = vector.load %arg10[%c6, %c0_14] : memref<25x128xf32, #tpu.memory_space<vmem>>, vector<1x128xf32>
    %c7 = arith.constant 7 : index
    %c0_15 = arith.constant 0 : index
    %11 = vector.load %arg10[%c7, %c0_15] : memref<25x128xf32, #tpu.memory_space<vmem>>, vector<1x128xf32>
    %c8 = arith.constant 8 : index
    %c0_16 = arith.constant 0 : index
    %12 = vector.load %arg10[%c8, %c0_16] : memref<25x128xf32, #tpu.memory_space<vmem>>, vector<1x128xf32>
    %c9 = arith.constant 9 : index
    %c0_17 = arith.constant 0 : index
    %13 = vector.load %arg10[%c9, %c0_17] : memref<25x128xf32, #tpu.memory_space<vmem>>, vector<1x128xf32>
    %c10 = arith.constant 10 : index
    %c0_18 = arith.constant 0 : index
    %14 = vector.load %arg10[%c10, %c0_18] : memref<25x128xf32, #tpu.memory_space<vmem>>, vector<1x128xf32>
    %c11 = arith.constant 11 : index
    %c0_19 = arith.constant 0 : index
    %15 = vector.load %arg10[%c11, %c0_19] : memref<25x128xf32, #tpu.memory_space<vmem>>, vector<1x128xf32>
    %c12 = arith.constant 12 : index
    %c0_20 = arith.constant 0 : index
    %16 = vector.load %arg10[%c12, %c0_20] : memref<25x128xf32, #tpu.memory_space<vmem>>, vector<1x128xf32>
    %c13 = arith.constant 13 : index
    %c0_21 = arith.constant 0 : index
    %17 = vector.load %arg10[%c13, %c0_21] : memref<25x128xf32, #tpu.memory_space<vmem>>, vector<1x128xf32>
    %c14 = arith.constant 14 : index
    %c0_22 = arith.constant 0 : index
    %18 = vector.load %arg10[%c14, %c0_22] : memref<25x128xf32, #tpu.memory_space<vmem>>, vector<1x128xf32>
    %c15 = arith.constant 15 : index
    %c0_23 = arith.constant 0 : index
    %19 = vector.load %arg10[%c15, %c0_23] : memref<25x128xf32, #tpu.memory_space<vmem>>, vector<1x128xf32>
    %c16 = arith.constant 16 : index
    %c0_24 = arith.constant 0 : index
    %20 = vector.load %arg10[%c16, %c0_24] : memref<25x128xf32, #tpu.memory_space<vmem>>, vector<1x128xf32>
    %c17 = arith.constant 17 : index
    %c0_25 = arith.constant 0 : index
    %21 = vector.load %arg10[%c17, %c0_25] : memref<25x128xf32, #tpu.memory_space<vmem>>, vector<1x128xf32>
    %c18 = arith.constant 18 : index
    %c0_26 = arith.constant 0 : index
    %22 = vector.load %arg10[%c18, %c0_26] : memref<25x128xf32, #tpu.memory_space<vmem>>, vector<1x128xf32>
    %c19 = arith.constant 19 : index
    %c0_27 = arith.constant 0 : index
    %23 = vector.load %arg10[%c19, %c0_27] : memref<25x128xf32, #tpu.memory_space<vmem>>, vector<1x128xf32>
    %c20 = arith.constant 20 : index
    %c0_28 = arith.constant 0 : index
    %24 = vector.load %arg10[%c20, %c0_28] : memref<25x128xf32, #tpu.memory_space<vmem>>, vector<1x128xf32>
    %c21 = arith.constant 21 : index
    %c0_29 = arith.constant 0 : index
    %25 = vector.load %arg10[%c21, %c0_29] : memref<25x128xf32, #tpu.memory_space<vmem>>, vector<1x128xf32>
    %c22 = arith.constant 22 : index
    %c0_30 = arith.constant 0 : index
    %26 = vector.load %arg10[%c22, %c0_30] : memref<25x128xf32, #tpu.memory_space<vmem>>, vector<1x128xf32>
    %c23 = arith.constant 23 : index
    %c0_31 = arith.constant 0 : index
    %27 = vector.load %arg10[%c23, %c0_31] : memref<25x128xf32, #tpu.memory_space<vmem>>, vector<1x128xf32>
    %c24 = arith.constant 24 : index
    %c0_32 = arith.constant 0 : index
    %28 = vector.load %arg10[%c24, %c0_32] : memref<25x128xf32, #tpu.memory_space<vmem>>, vector<1x128xf32>
    %c0_33 = arith.constant 0 : index
    %c0_34 = arith.constant 0 : index
    %29 = vector.load %arg0[%c0_33, %c0_34] : memref<8x128xf32, #tpu.memory_space<vmem>>, vector<8x128xf32>
    %c0_35 = arith.constant 0 : index
    %c0_36 = arith.constant 0 : index
    %c0_37 = arith.constant 0 : index
    %30 = vector.load %arg1[%c0_35, %c0_36, %c0_37] : memref<2x16x8xf32, #tpu.memory_space<vmem>>, vector<1x16x8xf32>
    %31 = vector.shape_cast %30 : vector<1x16x8xf32> to vector<16x8xf32>
    %cst = arith.constant dense<0.000000e+00> : vector<16x128xf32>
    %32 = tpu.matmul %31, %29, %cst {dimension_numbers = #tpu.dot_dimension_numbers<[1], [0], [0], [1], [0, 0, 1, 1], [], []>} : vector<16x8xf32>, vector<8x128xf32>, vector<16x128xf32> -> vector<16x128xf32>
    %c0_38 = arith.constant 0 : index
    %c0_39 = arith.constant 0 : index
    %c25 = arith.constant 25 : index
    %33 = vector.load %arg5[%c0_38, %c0_39, %c25] : memref<2x16x32xf32, #tpu.memory_space<vmem>>, vector<1x16x1xf32>
    %34 = vector.shape_cast %33 : vector<1x16x1xf32> to vector<16x1xf32>
    %35 = vector.broadcast %34 : vector<16x1xf32> to vector<16x128xf32>
    %36 = arith.addf %32, %35 : vector<16x128xf32>
    %cst_40 = arith.constant 0.000000e+00 : f32
    %37 = vector.broadcast %cst_40 : f32 to vector<16x128xf32>
    %38 = arith.cmpf ogt, %36, %37 : vector<16x128xf32>
    %c0_41 = arith.constant 0 : index
    %c0_42 = arith.constant 0 : index
    %c26 = arith.constant 26 : index
    %39 = vector.load %arg5[%c0_41, %c0_42, %c26] : memref<2x16x32xf32, #tpu.memory_space<vmem>>, vector<1x16x1xf32>
    %40 = vector.shape_cast %39 : vector<1x16x1xf32> to vector<16x1xf32>
    %41 = vector.broadcast %40 : vector<16x1xf32> to vector<16x128xf32>
    %42 = arith.mulf %41, %36 : vector<16x128xf32>
    %43 = arith.select %38, %36, %42 : vector<16x128xi1>, vector<16x128xf32>
    %cst_43 = arith.constant 0.000000e+00 : f32
    %44 = vector.broadcast %cst_43 : f32 to vector<16x128xf32>
    %c18_i32 = arith.constant 18 : i32
    %45 = tpu.dynamic_rotate %43 by %c18_i32 dim 1 : vector<16x128xf32>, i32 -> vector<16x128xf32>
    %c0_44 = arith.constant 0 : index
    %c0_45 = arith.constant 0 : index
    %c0_46 = arith.constant 0 : index
    %46 = vector.load %arg5[%c0_44, %c0_45, %c0_46] : memref<2x16x32xf32, #tpu.memory_space<vmem>>, vector<1x16x1xf32>
    %47 = vector.shape_cast %46 : vector<1x16x1xf32> to vector<16x1xf32>
    %48 = vector.broadcast %47 : vector<16x1xf32> to vector<16x128xf32>
    %49 = arith.mulf %45, %48 : vector<16x128xf32>
    %50 = vector.broadcast %4 : vector<1x128xf32> to vector<16x128xf32>
    %51 = arith.mulf %49, %50 : vector<16x128xf32>
    %52 = arith.addf %44, %51 : vector<16x128xf32>
    %c17_i32 = arith.constant 17 : i32
    %53 = tpu.dynamic_rotate %43 by %c17_i32 dim 1 : vector<16x128xf32>, i32 -> vector<16x128xf32>
    %c0_47 = arith.constant 0 : index
    %c0_48 = arith.constant 0 : index
    %c1_49 = arith.constant 1 : index
    %54 = vector.load %arg5[%c0_47, %c0_48, %c1_49] : memref<2x16x32xf32, #tpu.memory_space<vmem>>, vector<1x16x1xf32>
    %55 = vector.shape_cast %54 : vector<1x16x1xf32> to vector<16x1xf32>
    %56 = vector.broadcast %55 : vector<16x1xf32> to vector<16x128xf32>
    %57 = arith.mulf %53, %56 : vector<16x128xf32>
    %58 = vector.broadcast %5 : vector<1x128xf32> to vector<16x128xf32>
    %59 = arith.mulf %57, %58 : vector<16x128xf32>
    %60 = arith.addf %52, %59 : vector<16x128xf32>
    %c16_i32 = arith.constant 16 : i32
    %61 = tpu.dynamic_rotate %43 by %c16_i32 dim 1 : vector<16x128xf32>, i32 -> vector<16x128xf32>
    %c0_50 = arith.constant 0 : index
    %c0_51 = arith.constant 0 : index
    %c2_52 = arith.constant 2 : index
    %62 = vector.load %arg5[%c0_50, %c0_51, %c2_52] : memref<2x16x32xf32, #tpu.memory_space<vmem>>, vector<1x16x1xf32>
    %63 = vector.shape_cast %62 : vector<1x16x1xf32> to vector<16x1xf32>
    %64 = vector.broadcast %63 : vector<16x1xf32> to vector<16x128xf32>
    %65 = arith.mulf %61, %64 : vector<16x128xf32>
    %66 = vector.broadcast %6 : vector<1x128xf32> to vector<16x128xf32>
    %67 = arith.mulf %65, %66 : vector<16x128xf32>
    %68 = arith.addf %60, %67 : vector<16x128xf32>
    %c15_i32 = arith.constant 15 : i32
    %69 = tpu.dynamic_rotate %43 by %c15_i32 dim 1 : vector<16x128xf32>, i32 -> vector<16x128xf32>
    %c0_53 = arith.constant 0 : index
    %c0_54 = arith.constant 0 : index
    %c3_55 = arith.constant 3 : index
    %70 = vector.load %arg5[%c0_53, %c0_54, %c3_55] : memref<2x16x32xf32, #tpu.memory_space<vmem>>, vector<1x16x1xf32>
    %71 = vector.shape_cast %70 : vector<1x16x1xf32> to vector<16x1xf32>
    %72 = vector.broadcast %71 : vector<16x1xf32> to vector<16x128xf32>
    %73 = arith.mulf %69, %72 : vector<16x128xf32>
    %74 = vector.broadcast %7 : vector<1x128xf32> to vector<16x128xf32>
    %75 = arith.mulf %73, %74 : vector<16x128xf32>
    %76 = arith.addf %68, %75 : vector<16x128xf32>
    %c14_i32 = arith.constant 14 : i32
    %77 = tpu.dynamic_rotate %43 by %c14_i32 dim 1 : vector<16x128xf32>, i32 -> vector<16x128xf32>
    %c0_56 = arith.constant 0 : index
    %c0_57 = arith.constant 0 : index
    %c4_58 = arith.constant 4 : index
    %78 = vector.load %arg5[%c0_56, %c0_57, %c4_58] : memref<2x16x32xf32, #tpu.memory_space<vmem>>, vector<1x16x1xf32>
    %79 = vector.shape_cast %78 : vector<1x16x1xf32> to vector<16x1xf32>
    %80 = vector.broadcast %79 : vector<16x1xf32> to vector<16x128xf32>
    %81 = arith.mulf %77, %80 : vector<16x128xf32>
    %82 = vector.broadcast %8 : vector<1x128xf32> to vector<16x128xf32>
    %83 = arith.mulf %81, %82 : vector<16x128xf32>
    %84 = arith.addf %76, %83 : vector<16x128xf32>
    %c10_i32 = arith.constant 10 : i32
    %85 = tpu.dynamic_rotate %43 by %c10_i32 dim 1 : vector<16x128xf32>, i32 -> vector<16x128xf32>
    %c0_59 = arith.constant 0 : index
    %c0_60 = arith.constant 0 : index
    %c5_61 = arith.constant 5 : index
    %86 = vector.load %arg5[%c0_59, %c0_60, %c5_61] : memref<2x16x32xf32, #tpu.memory_space<vmem>>, vector<1x16x1xf32>
    %87 = vector.shape_cast %86 : vector<1x16x1xf32> to vector<16x1xf32>
    %88 = vector.broadcast %87 : vector<16x1xf32> to vector<16x128xf32>
    %89 = arith.mulf %85, %88 : vector<16x128xf32>
    %90 = vector.broadcast %9 : vector<1x128xf32> to vector<16x128xf32>
    %91 = arith.mulf %89, %90 : vector<16x128xf32>
    %92 = arith.addf %84, %91 : vector<16x128xf32>
    %c9_i32 = arith.constant 9 : i32
    %93 = tpu.dynamic_rotate %43 by %c9_i32 dim 1 : vector<16x128xf32>, i32 -> vector<16x128xf32>
    %c0_62 = arith.constant 0 : index
    %c0_63 = arith.constant 0 : index
    %c6_64 = arith.constant 6 : index
    %94 = vector.load %arg5[%c0_62, %c0_63, %c6_64] : memref<2x16x32xf32, #tpu.memory_space<vmem>>, vector<1x16x1xf32>
    %95 = vector.shape_cast %94 : vector<1x16x1xf32> to vector<16x1xf32>
    %96 = vector.broadcast %95 : vector<16x1xf32> to vector<16x128xf32>
    %97 = arith.mulf %93, %96 : vector<16x128xf32>
    %98 = vector.broadcast %10 : vector<1x128xf32> to vector<16x128xf32>
    %99 = arith.mulf %97, %98 : vector<16x128xf32>
    %100 = arith.addf %92, %99 : vector<16x128xf32>
    %c8_i32 = arith.constant 8 : i32
    %101 = tpu.dynamic_rotate %43 by %c8_i32 dim 1 : vector<16x128xf32>, i32 -> vector<16x128xf32>
    %c0_65 = arith.constant 0 : index
    %c0_66 = arith.constant 0 : index
    %c7_67 = arith.constant 7 : index
    %102 = vector.load %arg5[%c0_65, %c0_66, %c7_67] : memref<2x16x32xf32, #tpu.memory_space<vmem>>, vector<1x16x1xf32>
    %103 = vector.shape_cast %102 : vector<1x16x1xf32> to vector<16x1xf32>
    %104 = vector.broadcast %103 : vector<16x1xf32> to vector<16x128xf32>
    %105 = arith.mulf %101, %104 : vector<16x128xf32>
    %106 = vector.broadcast %11 : vector<1x128xf32> to vector<16x128xf32>
    %107 = arith.mulf %105, %106 : vector<16x128xf32>
    %108 = arith.addf %100, %107 : vector<16x128xf32>
    %c7_i32 = arith.constant 7 : i32
    %109 = tpu.dynamic_rotate %43 by %c7_i32 dim 1 : vector<16x128xf32>, i32 -> vector<16x128xf32>
    %c0_68 = arith.constant 0 : index
    %c0_69 = arith.constant 0 : index
    %c8_70 = arith.constant 8 : index
    %110 = vector.load %arg5[%c0_68, %c0_69, %c8_70] : memref<2x16x32xf32, #tpu.memory_space<vmem>>, vector<1x16x1xf32>
    %111 = vector.shape_cast %110 : vector<1x16x1xf32> to vector<16x1xf32>
    %112 = vector.broadcast %111 : vector<16x1xf32> to vector<16x128xf32>
    %113 = arith.mulf %109, %112 : vector<16x128xf32>
    %114 = vector.broadcast %12 : vector<1x128xf32> to vector<16x128xf32>
    %115 = arith.mulf %113, %114 : vector<16x128xf32>
    %116 = arith.addf %108, %115 : vector<16x128xf32>
    %c6_i32 = arith.constant 6 : i32
    %117 = tpu.dynamic_rotate %43 by %c6_i32 dim 1 : vector<16x128xf32>, i32 -> vector<16x128xf32>
    %c0_71 = arith.constant 0 : index
    %c0_72 = arith.constant 0 : index
    %c9_73 = arith.constant 9 : index
    %118 = vector.load %arg5[%c0_71, %c0_72, %c9_73] : memref<2x16x32xf32, #tpu.memory_space<vmem>>, vector<1x16x1xf32>
    %119 = vector.shape_cast %118 : vector<1x16x1xf32> to vector<16x1xf32>
    %120 = vector.broadcast %119 : vector<16x1xf32> to vector<16x128xf32>
    %121 = arith.mulf %117, %120 : vector<16x128xf32>
    %122 = vector.broadcast %13 : vector<1x128xf32> to vector<16x128xf32>
    %123 = arith.mulf %121, %122 : vector<16x128xf32>
    %124 = arith.addf %116, %123 : vector<16x128xf32>
    %c2_i32 = arith.constant 2 : i32
    %125 = tpu.dynamic_rotate %43 by %c2_i32 dim 1 : vector<16x128xf32>, i32 -> vector<16x128xf32>
    %c0_74 = arith.constant 0 : index
    %c0_75 = arith.constant 0 : index
    %c10_76 = arith.constant 10 : index
    %126 = vector.load %arg5[%c0_74, %c0_75, %c10_76] : memref<2x16x32xf32, #tpu.memory_space<vmem>>, vector<1x16x1xf32>
    %127 = vector.shape_cast %126 : vector<1x16x1xf32> to vector<16x1xf32>
    %128 = vector.broadcast %127 : vector<16x1xf32> to vector<16x128xf32>
    %129 = arith.mulf %125, %128 : vector<16x128xf32>
    %130 = vector.broadcast %14 : vector<1x128xf32> to vector<16x128xf32>
    %131 = arith.mulf %129, %130 : vector<16x128xf32>
    %132 = arith.addf %124, %131 : vector<16x128xf32>
    %c1_i32 = arith.constant 1 : i32
    %133 = tpu.dynamic_rotate %43 by %c1_i32 dim 1 : vector<16x128xf32>, i32 -> vector<16x128xf32>
    %c0_77 = arith.constant 0 : index
    %c0_78 = arith.constant 0 : index
    %c11_79 = arith.constant 11 : index
    %134 = vector.load %arg5[%c0_77, %c0_78, %c11_79] : memref<2x16x32xf32, #tpu.memory_space<vmem>>, vector<1x16x1xf32>
    %135 = vector.shape_cast %134 : vector<1x16x1xf32> to vector<16x1xf32>
    %136 = vector.broadcast %135 : vector<16x1xf32> to vector<16x128xf32>
    %137 = arith.mulf %133, %136 : vector<16x128xf32>
    %138 = vector.broadcast %15 : vector<1x128xf32> to vector<16x128xf32>
    %139 = arith.mulf %137, %138 : vector<16x128xf32>
    %140 = arith.addf %132, %139 : vector<16x128xf32>
    %c0_80 = arith.constant 0 : index
    %c0_81 = arith.constant 0 : index
    %c12_82 = arith.constant 12 : index
    %141 = vector.load %arg5[%c0_80, %c0_81, %c12_82] : memref<2x16x32xf32, #tpu.memory_space<vmem>>, vector<1x16x1xf32>
    %142 = vector.shape_cast %141 : vector<1x16x1xf32> to vector<16x1xf32>
    %143 = vector.broadcast %142 : vector<16x1xf32> to vector<16x128xf32>
    %144 = arith.mulf %43, %143 : vector<16x128xf32>
    %145 = vector.broadcast %16 : vector<1x128xf32> to vector<16x128xf32>
    %146 = arith.mulf %144, %145 : vector<16x128xf32>
    %147 = arith.addf %140, %146 : vector<16x128xf32>
    %c127_i32 = arith.constant 127 : i32
    %148 = tpu.dynamic_rotate %43 by %c127_i32 dim 1 : vector<16x128xf32>, i32 -> vector<16x128xf32>
    %c0_83 = arith.constant 0 : index
    %c0_84 = arith.constant 0 : index
    %c13_85 = arith.constant 13 : index
    %149 = vector.load %arg5[%c0_83, %c0_84, %c13_85] : memref<2x16x32xf32, #tpu.memory_space<vmem>>, vector<1x16x1xf32>
    %150 = vector.shape_cast %149 : vector<1x16x1xf32> to vector<16x1xf32>
    %151 = vector.broadcast %150 : vector<16x1xf32> to vector<16x128xf32>
    %152 = arith.mulf %148, %151 : vector<16x128xf32>
    %153 = vector.broadcast %17 : vector<1x128xf32> to vector<16x128xf32>
    %154 = arith.mulf %152, %153 : vector<16x128xf32>
    %155 = arith.addf %147, %154 : vector<16x128xf32>
    %c126_i32 = arith.constant 126 : i32
    %156 = tpu.dynamic_rotate %43 by %c126_i32 dim 1 : vector<16x128xf32>, i32 -> vector<16x128xf32>
    %c0_86 = arith.constant 0 : index
    %c0_87 = arith.constant 0 : index
    %c14_88 = arith.constant 14 : index
    %157 = vector.load %arg5[%c0_86, %c0_87, %c14_88] : memref<2x16x32xf32, #tpu.memory_space<vmem>>, vector<1x16x1xf32>
    %158 = vector.shape_cast %157 : vector<1x16x1xf32> to vector<16x1xf32>
    %159 = vector.broadcast %158 : vector<16x1xf32> to vector<16x128xf32>
    %160 = arith.mulf %156, %159 : vector<16x128xf32>
    %161 = vector.broadcast %18 : vector<1x128xf32> to vector<16x128xf32>
    %162 = arith.mulf %160, %161 : vector<16x128xf32>
    %163 = arith.addf %155, %162 : vector<16x128xf32>
    %c122_i32 = arith.constant 122 : i32
    %164 = tpu.dynamic_rotate %43 by %c122_i32 dim 1 : vector<16x128xf32>, i32 -> vector<16x128xf32>
    %c0_89 = arith.constant 0 : index
    %c0_90 = arith.constant 0 : index
    %c15_91 = arith.constant 15 : index
    %165 = vector.load %arg5[%c0_89, %c0_90, %c15_91] : memref<2x16x32xf32, #tpu.memory_space<vmem>>, vector<1x16x1xf32>
    %166 = vector.shape_cast %165 : vector<1x16x1xf32> to vector<16x1xf32>
    %167 = vector.broadcast %166 : vector<16x1xf32> to vector<16x128xf32>
    %168 = arith.mulf %164, %167 : vector<16x128xf32>
    %169 = vector.broadcast %19 : vector<1x128xf32> to vector<16x128xf32>
    %170 = arith.mulf %168, %169 : vector<16x128xf32>
    %171 = arith.addf %163, %170 : vector<16x128xf32>
    %c121_i32 = arith.constant 121 : i32
    %172 = tpu.dynamic_rotate %43 by %c121_i32 dim 1 : vector<16x128xf32>, i32 -> vector<16x128xf32>
    %c0_92 = arith.constant 0 : index
    %c0_93 = arith.constant 0 : index
    %c16_94 = arith.constant 16 : index
    %173 = vector.load %arg5[%c0_92, %c0_93, %c16_94] : memref<2x16x32xf32, #tpu.memory_space<vmem>>, vector<1x16x1xf32>
    %174 = vector.shape_cast %173 : vector<1x16x1xf32> to vector<16x1xf32>
    %175 = vector.broadcast %174 : vector<16x1xf32> to vector<16x128xf32>
    %176 = arith.mulf %172, %175 : vector<16x128xf32>
    %177 = vector.broadcast %20 : vector<1x128xf32> to vector<16x128xf32>
    %178 = arith.mulf %176, %177 : vector<16x128xf32>
    %179 = arith.addf %171, %178 : vector<16x128xf32>
    %c120_i32 = arith.constant 120 : i32
    %180 = tpu.dynamic_rotate %43 by %c120_i32 dim 1 : vector<16x128xf32>, i32 -> vector<16x128xf32>
    %c0_95 = arith.constant 0 : index
    %c0_96 = arith.constant 0 : index
    %c17_97 = arith.constant 17 : index
    %181 = vector.load %arg5[%c0_95, %c0_96, %c17_97] : memref<2x16x32xf32, #tpu.memory_space<vmem>>, vector<1x16x1xf32>
    %182 = vector.shape_cast %181 : vector<1x16x1xf32> to vector<16x1xf32>
    %183 = vector.broadcast %182 : vector<16x1xf32> to vector<16x128xf32>
    %184 = arith.mulf %180, %183 : vector<16x128xf32>
    %185 = vector.broadcast %21 : vector<1x128xf32> to vector<16x128xf32>
    %186 = arith.mulf %184, %185 : vector<16x128xf32>
    %187 = arith.addf %179, %186 : vector<16x128xf32>
    %c119_i32 = arith.constant 119 : i32
    %188 = tpu.dynamic_rotate %43 by %c119_i32 dim 1 : vector<16x128xf32>, i32 -> vector<16x128xf32>
    %c0_98 = arith.constant 0 : index
    %c0_99 = arith.constant 0 : index
    %c18_100 = arith.constant 18 : index
    %189 = vector.load %arg5[%c0_98, %c0_99, %c18_100] : memref<2x16x32xf32, #tpu.memory_space<vmem>>, vector<1x16x1xf32>
    %190 = vector.shape_cast %189 : vector<1x16x1xf32> to vector<16x1xf32>
    %191 = vector.broadcast %190 : vector<16x1xf32> to vector<16x128xf32>
    %192 = arith.mulf %188, %191 : vector<16x128xf32>
    %193 = vector.broadcast %22 : vector<1x128xf32> to vector<16x128xf32>
    %194 = arith.mulf %192, %193 : vector<16x128xf32>
    %195 = arith.addf %187, %194 : vector<16x128xf32>
    %c118_i32 = arith.constant 118 : i32
    %196 = tpu.dynamic_rotate %43 by %c118_i32 dim 1 : vector<16x128xf32>, i32 -> vector<16x128xf32>
    %c0_101 = arith.constant 0 : index
    %c0_102 = arith.constant 0 : index
    %c19_103 = arith.constant 19 : index
    %197 = vector.load %arg5[%c0_101, %c0_102, %c19_103] : memref<2x16x32xf32, #tpu.memory_space<vmem>>, vector<1x16x1xf32>
    %198 = vector.shape_cast %197 : vector<1x16x1xf32> to vector<16x1xf32>
    %199 = vector.broadcast %198 : vector<16x1xf32> to vector<16x128xf32>
    %200 = arith.mulf %196, %199 : vector<16x128xf32>
    %201 = vector.broadcast %23 : vector<1x128xf32> to vector<16x128xf32>
    %202 = arith.mulf %200, %201 : vector<16x128xf32>
    %203 = arith.addf %195, %202 : vector<16x128xf32>
    %c114_i32 = arith.constant 114 : i32
    %204 = tpu.dynamic_rotate %43 by %c114_i32 dim 1 : vector<16x128xf32>, i32 -> vector<16x128xf32>
    %c0_104 = arith.constant 0 : index
    %c0_105 = arith.constant 0 : index
    %c20_106 = arith.constant 20 : index
    %205 = vector.load %arg5[%c0_104, %c0_105, %c20_106] : memref<2x16x32xf32, #tpu.memory_space<vmem>>, vector<1x16x1xf32>
    %206 = vector.shape_cast %205 : vector<1x16x1xf32> to vector<16x1xf32>
    %207 = vector.broadcast %206 : vector<16x1xf32> to vector<16x128xf32>
    %208 = arith.mulf %204, %207 : vector<16x128xf32>
    %209 = vector.broadcast %24 : vector<1x128xf32> to vector<16x128xf32>
    %210 = arith.mulf %208, %209 : vector<16x128xf32>
    %211 = arith.addf %203, %210 : vector<16x128xf32>
    %c113_i32 = arith.constant 113 : i32
    %212 = tpu.dynamic_rotate %43 by %c113_i32 dim 1 : vector<16x128xf32>, i32 -> vector<16x128xf32>
    %c0_107 = arith.constant 0 : index
    %c0_108 = arith.constant 0 : index
    %c21_109 = arith.constant 21 : index
    %213 = vector.load %arg5[%c0_107, %c0_108, %c21_109] : memref<2x16x32xf32, #tpu.memory_space<vmem>>, vector<1x16x1xf32>
    %214 = vector.shape_cast %213 : vector<1x16x1xf32> to vector<16x1xf32>
    %215 = vector.broadcast %214 : vector<16x1xf32> to vector<16x128xf32>
    %216 = arith.mulf %212, %215 : vector<16x128xf32>
    %217 = vector.broadcast %25 : vector<1x128xf32> to vector<16x128xf32>
    %218 = arith.mulf %216, %217 : vector<16x128xf32>
    %219 = arith.addf %211, %218 : vector<16x128xf32>
    %c112_i32 = arith.constant 112 : i32
    %220 = tpu.dynamic_rotate %43 by %c112_i32 dim 1 : vector<16x128xf32>, i32 -> vector<16x128xf32>
    %c0_110 = arith.constant 0 : index
    %c0_111 = arith.constant 0 : index
    %c22_112 = arith.constant 22 : index
    %221 = vector.load %arg5[%c0_110, %c0_111, %c22_112] : memref<2x16x32xf32, #tpu.memory_space<vmem>>, vector<1x16x1xf32>
    %222 = vector.shape_cast %221 : vector<1x16x1xf32> to vector<16x1xf32>
    %223 = vector.broadcast %222 : vector<16x1xf32> to vector<16x128xf32>
    %224 = arith.mulf %220, %223 : vector<16x128xf32>
    %225 = vector.broadcast %26 : vector<1x128xf32> to vector<16x128xf32>
    %226 = arith.mulf %224, %225 : vector<16x128xf32>
    %227 = arith.addf %219, %226 : vector<16x128xf32>
    %c111_i32 = arith.constant 111 : i32
    %228 = tpu.dynamic_rotate %43 by %c111_i32 dim 1 : vector<16x128xf32>, i32 -> vector<16x128xf32>
    %c0_113 = arith.constant 0 : index
    %c0_114 = arith.constant 0 : index
    %c23_115 = arith.constant 23 : index
    %229 = vector.load %arg5[%c0_113, %c0_114, %c23_115] : memref<2x16x32xf32, #tpu.memory_space<vmem>>, vector<1x16x1xf32>
    %230 = vector.shape_cast %229 : vector<1x16x1xf32> to vector<16x1xf32>
    %231 = vector.broadcast %230 : vector<16x1xf32> to vector<16x128xf32>
    %232 = arith.mulf %228, %231 : vector<16x128xf32>
    %233 = vector.broadcast %27 : vector<1x128xf32> to vector<16x128xf32>
    %234 = arith.mulf %232, %233 : vector<16x128xf32>
    %235 = arith.addf %227, %234 : vector<16x128xf32>
    %c110_i32 = arith.constant 110 : i32
    %236 = tpu.dynamic_rotate %43 by %c110_i32 dim 1 : vector<16x128xf32>, i32 -> vector<16x128xf32>
    %c0_116 = arith.constant 0 : index
    %c0_117 = arith.constant 0 : index
    %c24_118 = arith.constant 24 : index
    %237 = vector.load %arg5[%c0_116, %c0_117, %c24_118] : memref<2x16x32xf32, #tpu.memory_space<vmem>>, vector<1x16x1xf32>
    %238 = vector.shape_cast %237 : vector<1x16x1xf32> to vector<16x1xf32>
    %239 = vector.broadcast %238 : vector<16x1xf32> to vector<16x128xf32>
    %240 = arith.mulf %236, %239 : vector<16x128xf32>
    %241 = vector.broadcast %28 : vector<1x128xf32> to vector<16x128xf32>
    %242 = arith.mulf %240, %241 : vector<16x128xf32>
    %243 = arith.addf %235, %242 : vector<16x128xf32>
    %cst_119 = arith.constant dense<0.000000e+00> : vector<16x16xf32>
    %244 = tpu.matmul %243, %0, %cst_119 {dimension_numbers = #tpu.dot_dimension_numbers<[1], [0], [0], [1], [0, 0, 1, 1], [], []>} : vector<16x128xf32>, vector<128x16xf32>, vector<16x16xf32> -> vector<16x16xf32>
    %cst_120 = arith.constant dense<0.000000e+00> : vector<16x16xf32>
    %245 = tpu.matmul %243, %1, %cst_120 {dimension_numbers = #tpu.dot_dimension_numbers<[1], [0], [0], [1], [0, 0, 1, 1], [], []>} : vector<16x128xf32>, vector<128x16xf32>, vector<16x16xf32> -> vector<16x16xf32>
    %c0_121 = arith.constant 0 : index
    %c0_122 = arith.constant 0 : index
    %c0_123 = arith.constant 0 : index
    %246 = vector.load %arg2[%c0_121, %c0_122, %c0_123] : memref<2x8x16xf32, #tpu.memory_space<vmem>>, vector<1x8x16xf32>
    %247 = vector.shape_cast %246 : vector<1x8x16xf32> to vector<8x16xf32>
    %c0_124 = arith.constant 0 : index
    %c0_125 = arith.constant 0 : index
    %c29 = arith.constant 29 : index
    %248 = vector.load %arg5[%c0_124, %c0_125, %c29] : memref<2x16x32xf32, #tpu.memory_space<vmem>>, vector<1x8x1xf32>
    %249 = vector.shape_cast %248 : vector<1x8x1xf32> to vector<8x1xf32>
    %cst_126 = arith.constant dense<0.000000e+00> : vector<8x16xf32>
    %250 = tpu.matmul %247, %244, %cst_126 {dimension_numbers = #tpu.dot_dimension_numbers<[1], [0], [0], [1], [0, 0, 1, 1], [], []>} : vector<8x16xf32>, vector<16x16xf32>, vector<8x16xf32> -> vector<8x16xf32>
    %251 = vector.broadcast %249 : vector<8x1xf32> to vector<8x16xf32>
    %252 = arith.addf %250, %251 : vector<8x16xf32>
    %cst_127 = arith.constant dense<0.000000e+00> : vector<8x16xf32>
    %253 = tpu.matmul %247, %245, %cst_127 {dimension_numbers = #tpu.dot_dimension_numbers<[1], [0], [0], [1], [0, 0, 1, 1], [], []>} : vector<8x16xf32>, vector<16x16xf32>, vector<8x16xf32> -> vector<8x16xf32>
    %254 = vector.broadcast %249 : vector<8x1xf32> to vector<8x16xf32>
    %255 = arith.addf %253, %254 : vector<8x16xf32>
    %cst_128 = arith.constant 3.000000e+00 : f32
    %256 = vector.broadcast %cst_128 : f32 to vector<8x16xf32>
    %257 = arith.addf %252, %256 : vector<8x16xf32>
    %cst_129 = arith.constant 0.000000e+00 : f32
    %cst_130 = arith.constant 6.000000e+00 : f32
    %258 = vector.broadcast %cst_129 : f32 to vector<8x16xf32>
    %259 = arith.maximumf %258, %257 : vector<8x16xf32>
    %260 = vector.broadcast %cst_130 : f32 to vector<8x16xf32>
    %261 = arith.minimumf %260, %259 : vector<8x16xf32>
    %262 = arith.mulf %252, %261 : vector<8x16xf32>
    %cst_131 = arith.constant 0.166666672 : f32
    %263 = vector.broadcast %cst_131 : f32 to vector<8x16xf32>
    %264 = arith.mulf %262, %263 : vector<8x16xf32>
    %cst_132 = arith.constant 3.000000e+00 : f32
    %265 = vector.broadcast %cst_132 : f32 to vector<8x16xf32>
    %266 = arith.addf %255, %265 : vector<8x16xf32>
    %cst_133 = arith.constant 0.000000e+00 : f32
    %cst_134 = arith.constant 6.000000e+00 : f32
    %267 = vector.broadcast %cst_133 : f32 to vector<8x16xf32>
    %268 = arith.maximumf %267, %266 : vector<8x16xf32>
    %269 = vector.broadcast %cst_134 : f32 to vector<8x16xf32>
    %270 = arith.minimumf %269, %268 : vector<8x16xf32>
    %271 = arith.mulf %255, %270 : vector<8x16xf32>
    %cst_135 = arith.constant 0.166666672 : f32
    %272 = vector.broadcast %cst_135 : f32 to vector<8x16xf32>
    %273 = arith.mulf %271, %272 : vector<8x16xf32>
    %c0_136 = arith.constant 0 : index
    %c0_137 = arith.constant 0 : index
    %c0_138 = arith.constant 0 : index
    %274 = vector.load %arg3[%c0_136, %c0_137, %c0_138] : memref<2x32x8xf32, #tpu.memory_space<vmem>>, vector<1x32x8xf32>
    %275 = vector.shape_cast %274 : vector<1x32x8xf32> to vector<32x8xf32>
    %276 = vector.extract_strided_slice %275 {offsets = [0, 0], sizes = [16, 8], strides = [1, 1]} : vector<32x8xf32> to vector<16x8xf32>
    %cst_139 = arith.constant dense<0.000000e+00> : vector<16x16xf32>
    %277 = tpu.matmul %276, %264, %cst_139 {dimension_numbers = #tpu.dot_dimension_numbers<[1], [0], [0], [1], [0, 0, 1, 1], [], []>} : vector<16x8xf32>, vector<8x16xf32>, vector<16x16xf32> -> vector<16x16xf32>
    %c0_140 = arith.constant 0 : index
    %c0_141 = arith.constant 0 : index
    %c27 = arith.constant 27 : index
    %278 = vector.load %arg5[%c0_140, %c0_141, %c27] : memref<2x16x32xf32, #tpu.memory_space<vmem>>, vector<1x16x1xf32>
    %279 = vector.shape_cast %278 : vector<1x16x1xf32> to vector<16x1xf32>
    %280 = vector.broadcast %279 : vector<16x1xf32> to vector<16x16xf32>
    %281 = arith.addf %277, %280 : vector<16x16xf32>
    %282 = arith.negf %281 : vector<16x16xf32>
    %283 = math.exp %282 : vector<16x16xf32>
    %cst_142 = arith.constant 1.000000e+00 : f32
    %284 = vector.broadcast %cst_142 : f32 to vector<16x16xf32>
    %285 = arith.addf %284, %283 : vector<16x16xf32>
    %286 = arith.divf %284, %285 : vector<16x16xf32>
    %287 = vector.extract_strided_slice %275 {offsets = [16, 0], sizes = [16, 8], strides = [1, 1]} : vector<32x8xf32> to vector<16x8xf32>
    %cst_143 = arith.constant dense<0.000000e+00> : vector<16x16xf32>
    %288 = tpu.matmul %287, %273, %cst_143 {dimension_numbers = #tpu.dot_dimension_numbers<[1], [0], [0], [1], [0, 0, 1, 1], [], []>} : vector<16x8xf32>, vector<8x16xf32>, vector<16x16xf32> -> vector<16x16xf32>
    %c0_144 = arith.constant 0 : index
    %c0_145 = arith.constant 0 : index
    %c28 = arith.constant 28 : index
    %289 = vector.load %arg5[%c0_144, %c0_145, %c28] : memref<2x16x32xf32, #tpu.memory_space<vmem>>, vector<1x16x1xf32>
    %290 = vector.shape_cast %289 : vector<1x16x1xf32> to vector<16x1xf32>
    %291 = vector.broadcast %290 : vector<16x1xf32> to vector<16x16xf32>
    %292 = arith.addf %288, %291 : vector<16x16xf32>
    %293 = arith.negf %292 : vector<16x16xf32>
    %294 = math.exp %293 : vector<16x16xf32>
    %cst_146 = arith.constant 1.000000e+00 : f32
    %295 = vector.broadcast %cst_146 : f32 to vector<16x16xf32>
    %296 = arith.addf %295, %294 : vector<16x16xf32>
    %297 = arith.divf %295, %296 : vector<16x16xf32>
    %cst_147 = arith.constant dense<0.000000e+00> : vector<16x128xf32>
    %298 = tpu.matmul %286, %2, %cst_147 {dimension_numbers = #tpu.dot_dimension_numbers<[1], [0], [0], [1], [0, 0, 1, 1], [], []>} : vector<16x16xf32>, vector<16x128xf32>, vector<16x128xf32> -> vector<16x128xf32>
    %299 = arith.mulf %243, %298 : vector<16x128xf32>
    %cst_148 = arith.constant dense<0.000000e+00> : vector<16x128xf32>
    %300 = tpu.matmul %297, %3, %cst_148 {dimension_numbers = #tpu.dot_dimension_numbers<[1], [0], [0], [1], [0, 0, 1, 1], [], []>} : vector<16x16xf32>, vector<16x128xf32>, vector<16x128xf32> -> vector<16x128xf32>
    %301 = arith.mulf %299, %300 : vector<16x128xf32>
    %c0_149 = arith.constant 0 : index
    %c0_150 = arith.constant 0 : index
    %c0_151 = arith.constant 0 : index
    %302 = vector.load %arg4[%c0_149, %c0_150, %c0_151] : memref<2x8x16xf32, #tpu.memory_space<vmem>>, vector<1x8x16xf32>
    %303 = vector.shape_cast %302 : vector<1x8x16xf32> to vector<8x16xf32>
    %cst_152 = arith.constant dense<0.000000e+00> : vector<8x128xf32>
    %304 = tpu.matmul %303, %301, %cst_152 {dimension_numbers = #tpu.dot_dimension_numbers<[1], [0], [0], [1], [0, 0, 1, 1], [], []>} : vector<8x16xf32>, vector<16x128xf32>, vector<8x128xf32> -> vector<8x128xf32>
    %305 = arith.addf %29, %304 : vector<8x128xf32>
    %c0_153 = arith.constant 0 : index
    %c0_154 = arith.constant 0 : index
    %c30 = arith.constant 30 : index
    %306 = vector.load %arg5[%c0_153, %c0_154, %c30] : memref<2x16x32xf32, #tpu.memory_space<vmem>>, vector<1x8x1xf32>
    %307 = vector.shape_cast %306 : vector<1x8x1xf32> to vector<8x1xf32>
    %308 = vector.broadcast %307 : vector<8x1xf32> to vector<8x128xf32>
    %309 = arith.addf %305, %308 : vector<8x128xf32>
    %c1_155 = arith.constant 1 : index
    %c0_156 = arith.constant 0 : index
    %c0_157 = arith.constant 0 : index
    %310 = vector.load %arg1[%c1_155, %c0_156, %c0_157] : memref<2x16x8xf32, #tpu.memory_space<vmem>>, vector<1x16x8xf32>
    %311 = vector.shape_cast %310 : vector<1x16x8xf32> to vector<16x8xf32>
    %cst_158 = arith.constant dense<0.000000e+00> : vector<16x128xf32>
    %312 = tpu.matmul %311, %309, %cst_158 {dimension_numbers = #tpu.dot_dimension_numbers<[1], [0], [0], [1], [0, 0, 1, 1], [], []>} : vector<16x8xf32>, vector<8x128xf32>, vector<16x128xf32> -> vector<16x128xf32>
    %c1_159 = arith.constant 1 : index
    %c0_160 = arith.constant 0 : index
    %c25_161 = arith.constant 25 : index
    %313 = vector.load %arg5[%c1_159, %c0_160, %c25_161] : memref<2x16x32xf32, #tpu.memory_space<vmem>>, vector<1x16x1xf32>
    %314 = vector.shape_cast %313 : vector<1x16x1xf32> to vector<16x1xf32>
    %315 = vector.broadcast %314 : vector<16x1xf32> to vector<16x128xf32>
    %316 = arith.addf %312, %315 : vector<16x128xf32>
    %cst_162 = arith.constant 0.000000e+00 : f32
    %317 = vector.broadcast %cst_162 : f32 to vector<16x128xf32>
    %318 = arith.cmpf ogt, %316, %317 : vector<16x128xf32>
    %c1_163 = arith.constant 1 : index
    %c0_164 = arith.constant 0 : index
    %c26_165 = arith.constant 26 : index
    %319 = vector.load %arg5[%c1_163, %c0_164, %c26_165] : memref<2x16x32xf32, #tpu.memory_space<vmem>>, vector<1x16x1xf32>
    %320 = vector.shape_cast %319 : vector<1x16x1xf32> to vector<16x1xf32>
    %321 = vector.broadcast %320 : vector<16x1xf32> to vector<16x128xf32>
    %322 = arith.mulf %321, %316 : vector<16x128xf32>
    %323 = arith.select %318, %316, %322 : vector<16x128xi1>, vector<16x128xf32>
    %cst_166 = arith.constant 0.000000e+00 : f32
    %324 = vector.broadcast %cst_166 : f32 to vector<16x128xf32>
    %c18_i32_167 = arith.constant 18 : i32
    %325 = tpu.dynamic_rotate %323 by %c18_i32_167 dim 1 : vector<16x128xf32>, i32 -> vector<16x128xf32>
    %c1_168 = arith.constant 1 : index
    %c0_169 = arith.constant 0 : index
    %c0_170 = arith.constant 0 : index
    %326 = vector.load %arg5[%c1_168, %c0_169, %c0_170] : memref<2x16x32xf32, #tpu.memory_space<vmem>>, vector<1x16x1xf32>
    %327 = vector.shape_cast %326 : vector<1x16x1xf32> to vector<16x1xf32>
    %328 = vector.broadcast %327 : vector<16x1xf32> to vector<16x128xf32>
    %329 = arith.mulf %325, %328 : vector<16x128xf32>
    %330 = vector.broadcast %4 : vector<1x128xf32> to vector<16x128xf32>
    %331 = arith.mulf %329, %330 : vector<16x128xf32>
    %332 = arith.addf %324, %331 : vector<16x128xf32>
    %c17_i32_171 = arith.constant 17 : i32
    %333 = tpu.dynamic_rotate %323 by %c17_i32_171 dim 1 : vector<16x128xf32>, i32 -> vector<16x128xf32>
    %c1_172 = arith.constant 1 : index
    %c0_173 = arith.constant 0 : index
    %c1_174 = arith.constant 1 : index
    %334 = vector.load %arg5[%c1_172, %c0_173, %c1_174] : memref<2x16x32xf32, #tpu.memory_space<vmem>>, vector<1x16x1xf32>
    %335 = vector.shape_cast %334 : vector<1x16x1xf32> to vector<16x1xf32>
    %336 = vector.broadcast %335 : vector<16x1xf32> to vector<16x128xf32>
    %337 = arith.mulf %333, %336 : vector<16x128xf32>
    %338 = vector.broadcast %5 : vector<1x128xf32> to vector<16x128xf32>
    %339 = arith.mulf %337, %338 : vector<16x128xf32>
    %340 = arith.addf %332, %339 : vector<16x128xf32>
    %c16_i32_175 = arith.constant 16 : i32
    %341 = tpu.dynamic_rotate %323 by %c16_i32_175 dim 1 : vector<16x128xf32>, i32 -> vector<16x128xf32>
    %c1_176 = arith.constant 1 : index
    %c0_177 = arith.constant 0 : index
    %c2_178 = arith.constant 2 : index
    %342 = vector.load %arg5[%c1_176, %c0_177, %c2_178] : memref<2x16x32xf32, #tpu.memory_space<vmem>>, vector<1x16x1xf32>
    %343 = vector.shape_cast %342 : vector<1x16x1xf32> to vector<16x1xf32>
    %344 = vector.broadcast %343 : vector<16x1xf32> to vector<16x128xf32>
    %345 = arith.mulf %341, %344 : vector<16x128xf32>
    %346 = vector.broadcast %6 : vector<1x128xf32> to vector<16x128xf32>
    %347 = arith.mulf %345, %346 : vector<16x128xf32>
    %348 = arith.addf %340, %347 : vector<16x128xf32>
    %c15_i32_179 = arith.constant 15 : i32
    %349 = tpu.dynamic_rotate %323 by %c15_i32_179 dim 1 : vector<16x128xf32>, i32 -> vector<16x128xf32>
    %c1_180 = arith.constant 1 : index
    %c0_181 = arith.constant 0 : index
    %c3_182 = arith.constant 3 : index
    %350 = vector.load %arg5[%c1_180, %c0_181, %c3_182] : memref<2x16x32xf32, #tpu.memory_space<vmem>>, vector<1x16x1xf32>
    %351 = vector.shape_cast %350 : vector<1x16x1xf32> to vector<16x1xf32>
    %352 = vector.broadcast %351 : vector<16x1xf32> to vector<16x128xf32>
    %353 = arith.mulf %349, %352 : vector<16x128xf32>
    %354 = vector.broadcast %7 : vector<1x128xf32> to vector<16x128xf32>
    %355 = arith.mulf %353, %354 : vector<16x128xf32>
    %356 = arith.addf %348, %355 : vector<16x128xf32>
    %c14_i32_183 = arith.constant 14 : i32
    %357 = tpu.dynamic_rotate %323 by %c14_i32_183 dim 1 : vector<16x128xf32>, i32 -> vector<16x128xf32>
    %c1_184 = arith.constant 1 : index
    %c0_185 = arith.constant 0 : index
    %c4_186 = arith.constant 4 : index
    %358 = vector.load %arg5[%c1_184, %c0_185, %c4_186] : memref<2x16x32xf32, #tpu.memory_space<vmem>>, vector<1x16x1xf32>
    %359 = vector.shape_cast %358 : vector<1x16x1xf32> to vector<16x1xf32>
    %360 = vector.broadcast %359 : vector<16x1xf32> to vector<16x128xf32>
    %361 = arith.mulf %357, %360 : vector<16x128xf32>
    %362 = vector.broadcast %8 : vector<1x128xf32> to vector<16x128xf32>
    %363 = arith.mulf %361, %362 : vector<16x128xf32>
    %364 = arith.addf %356, %363 : vector<16x128xf32>
    %c10_i32_187 = arith.constant 10 : i32
    %365 = tpu.dynamic_rotate %323 by %c10_i32_187 dim 1 : vector<16x128xf32>, i32 -> vector<16x128xf32>
    %c1_188 = arith.constant 1 : index
    %c0_189 = arith.constant 0 : index
    %c5_190 = arith.constant 5 : index
    %366 = vector.load %arg5[%c1_188, %c0_189, %c5_190] : memref<2x16x32xf32, #tpu.memory_space<vmem>>, vector<1x16x1xf32>
    %367 = vector.shape_cast %366 : vector<1x16x1xf32> to vector<16x1xf32>
    %368 = vector.broadcast %367 : vector<16x1xf32> to vector<16x128xf32>
    %369 = arith.mulf %365, %368 : vector<16x128xf32>
    %370 = vector.broadcast %9 : vector<1x128xf32> to vector<16x128xf32>
    %371 = arith.mulf %369, %370 : vector<16x128xf32>
    %372 = arith.addf %364, %371 : vector<16x128xf32>
    %c9_i32_191 = arith.constant 9 : i32
    %373 = tpu.dynamic_rotate %323 by %c9_i32_191 dim 1 : vector<16x128xf32>, i32 -> vector<16x128xf32>
    %c1_192 = arith.constant 1 : index
    %c0_193 = arith.constant 0 : index
    %c6_194 = arith.constant 6 : index
    %374 = vector.load %arg5[%c1_192, %c0_193, %c6_194] : memref<2x16x32xf32, #tpu.memory_space<vmem>>, vector<1x16x1xf32>
    %375 = vector.shape_cast %374 : vector<1x16x1xf32> to vector<16x1xf32>
    %376 = vector.broadcast %375 : vector<16x1xf32> to vector<16x128xf32>
    %377 = arith.mulf %373, %376 : vector<16x128xf32>
    %378 = vector.broadcast %10 : vector<1x128xf32> to vector<16x128xf32>
    %379 = arith.mulf %377, %378 : vector<16x128xf32>
    %380 = arith.addf %372, %379 : vector<16x128xf32>
    %c8_i32_195 = arith.constant 8 : i32
    %381 = tpu.dynamic_rotate %323 by %c8_i32_195 dim 1 : vector<16x128xf32>, i32 -> vector<16x128xf32>
    %c1_196 = arith.constant 1 : index
    %c0_197 = arith.constant 0 : index
    %c7_198 = arith.constant 7 : index
    %382 = vector.load %arg5[%c1_196, %c0_197, %c7_198] : memref<2x16x32xf32, #tpu.memory_space<vmem>>, vector<1x16x1xf32>
    %383 = vector.shape_cast %382 : vector<1x16x1xf32> to vector<16x1xf32>
    %384 = vector.broadcast %383 : vector<16x1xf32> to vector<16x128xf32>
    %385 = arith.mulf %381, %384 : vector<16x128xf32>
    %386 = vector.broadcast %11 : vector<1x128xf32> to vector<16x128xf32>
    %387 = arith.mulf %385, %386 : vector<16x128xf32>
    %388 = arith.addf %380, %387 : vector<16x128xf32>
    %c7_i32_199 = arith.constant 7 : i32
    %389 = tpu.dynamic_rotate %323 by %c7_i32_199 dim 1 : vector<16x128xf32>, i32 -> vector<16x128xf32>
    %c1_200 = arith.constant 1 : index
    %c0_201 = arith.constant 0 : index
    %c8_202 = arith.constant 8 : index
    %390 = vector.load %arg5[%c1_200, %c0_201, %c8_202] : memref<2x16x32xf32, #tpu.memory_space<vmem>>, vector<1x16x1xf32>
    %391 = vector.shape_cast %390 : vector<1x16x1xf32> to vector<16x1xf32>
    %392 = vector.broadcast %391 : vector<16x1xf32> to vector<16x128xf32>
    %393 = arith.mulf %389, %392 : vector<16x128xf32>
    %394 = vector.broadcast %12 : vector<1x128xf32> to vector<16x128xf32>
    %395 = arith.mulf %393, %394 : vector<16x128xf32>
    %396 = arith.addf %388, %395 : vector<16x128xf32>
    %c6_i32_203 = arith.constant 6 : i32
    %397 = tpu.dynamic_rotate %323 by %c6_i32_203 dim 1 : vector<16x128xf32>, i32 -> vector<16x128xf32>
    %c1_204 = arith.constant 1 : index
    %c0_205 = arith.constant 0 : index
    %c9_206 = arith.constant 9 : index
    %398 = vector.load %arg5[%c1_204, %c0_205, %c9_206] : memref<2x16x32xf32, #tpu.memory_space<vmem>>, vector<1x16x1xf32>
    %399 = vector.shape_cast %398 : vector<1x16x1xf32> to vector<16x1xf32>
    %400 = vector.broadcast %399 : vector<16x1xf32> to vector<16x128xf32>
    %401 = arith.mulf %397, %400 : vector<16x128xf32>
    %402 = vector.broadcast %13 : vector<1x128xf32> to vector<16x128xf32>
    %403 = arith.mulf %401, %402 : vector<16x128xf32>
    %404 = arith.addf %396, %403 : vector<16x128xf32>
    %c2_i32_207 = arith.constant 2 : i32
    %405 = tpu.dynamic_rotate %323 by %c2_i32_207 dim 1 : vector<16x128xf32>, i32 -> vector<16x128xf32>
    %c1_208 = arith.constant 1 : index
    %c0_209 = arith.constant 0 : index
    %c10_210 = arith.constant 10 : index
    %406 = vector.load %arg5[%c1_208, %c0_209, %c10_210] : memref<2x16x32xf32, #tpu.memory_space<vmem>>, vector<1x16x1xf32>
    %407 = vector.shape_cast %406 : vector<1x16x1xf32> to vector<16x1xf32>
    %408 = vector.broadcast %407 : vector<16x1xf32> to vector<16x128xf32>
    %409 = arith.mulf %405, %408 : vector<16x128xf32>
    %410 = vector.broadcast %14 : vector<1x128xf32> to vector<16x128xf32>
    %411 = arith.mulf %409, %410 : vector<16x128xf32>
    %412 = arith.addf %404, %411 : vector<16x128xf32>
    %c1_i32_211 = arith.constant 1 : i32
    %413 = tpu.dynamic_rotate %323 by %c1_i32_211 dim 1 : vector<16x128xf32>, i32 -> vector<16x128xf32>
    %c1_212 = arith.constant 1 : index
    %c0_213 = arith.constant 0 : index
    %c11_214 = arith.constant 11 : index
    %414 = vector.load %arg5[%c1_212, %c0_213, %c11_214] : memref<2x16x32xf32, #tpu.memory_space<vmem>>, vector<1x16x1xf32>
    %415 = vector.shape_cast %414 : vector<1x16x1xf32> to vector<16x1xf32>
    %416 = vector.broadcast %415 : vector<16x1xf32> to vector<16x128xf32>
    %417 = arith.mulf %413, %416 : vector<16x128xf32>
    %418 = vector.broadcast %15 : vector<1x128xf32> to vector<16x128xf32>
    %419 = arith.mulf %417, %418 : vector<16x128xf32>
    %420 = arith.addf %412, %419 : vector<16x128xf32>
    %c1_215 = arith.constant 1 : index
    %c0_216 = arith.constant 0 : index
    %c12_217 = arith.constant 12 : index
    %421 = vector.load %arg5[%c1_215, %c0_216, %c12_217] : memref<2x16x32xf32, #tpu.memory_space<vmem>>, vector<1x16x1xf32>
    %422 = vector.shape_cast %421 : vector<1x16x1xf32> to vector<16x1xf32>
    %423 = vector.broadcast %422 : vector<16x1xf32> to vector<16x128xf32>
    %424 = arith.mulf %323, %423 : vector<16x128xf32>
    %425 = vector.broadcast %16 : vector<1x128xf32> to vector<16x128xf32>
    %426 = arith.mulf %424, %425 : vector<16x128xf32>
    %427 = arith.addf %420, %426 : vector<16x128xf32>
    %c127_i32_218 = arith.constant 127 : i32
    %428 = tpu.dynamic_rotate %323 by %c127_i32_218 dim 1 : vector<16x128xf32>, i32 -> vector<16x128xf32>
    %c1_219 = arith.constant 1 : index
    %c0_220 = arith.constant 0 : index
    %c13_221 = arith.constant 13 : index
    %429 = vector.load %arg5[%c1_219, %c0_220, %c13_221] : memref<2x16x32xf32, #tpu.memory_space<vmem>>, vector<1x16x1xf32>
    %430 = vector.shape_cast %429 : vector<1x16x1xf32> to vector<16x1xf32>
    %431 = vector.broadcast %430 : vector<16x1xf32> to vector<16x128xf32>
    %432 = arith.mulf %428, %431 : vector<16x128xf32>
    %433 = vector.broadcast %17 : vector<1x128xf32> to vector<16x128xf32>
    %434 = arith.mulf %432, %433 : vector<16x128xf32>
    %435 = arith.addf %427, %434 : vector<16x128xf32>
    %c126_i32_222 = arith.constant 126 : i32
    %436 = tpu.dynamic_rotate %323 by %c126_i32_222 dim 1 : vector<16x128xf32>, i32 -> vector<16x128xf32>
    %c1_223 = arith.constant 1 : index
    %c0_224 = arith.constant 0 : index
    %c14_225 = arith.constant 14 : index
    %437 = vector.load %arg5[%c1_223, %c0_224, %c14_225] : memref<2x16x32xf32, #tpu.memory_space<vmem>>, vector<1x16x1xf32>
    %438 = vector.shape_cast %437 : vector<1x16x1xf32> to vector<16x1xf32>
    %439 = vector.broadcast %438 : vector<16x1xf32> to vector<16x128xf32>
    %440 = arith.mulf %436, %439 : vector<16x128xf32>
    %441 = vector.broadcast %18 : vector<1x128xf32> to vector<16x128xf32>
    %442 = arith.mulf %440, %441 : vector<16x128xf32>
    %443 = arith.addf %435, %442 : vector<16x128xf32>
    %c122_i32_226 = arith.constant 122 : i32
    %444 = tpu.dynamic_rotate %323 by %c122_i32_226 dim 1 : vector<16x128xf32>, i32 -> vector<16x128xf32>
    %c1_227 = arith.constant 1 : index
    %c0_228 = arith.constant 0 : index
    %c15_229 = arith.constant 15 : index
    %445 = vector.load %arg5[%c1_227, %c0_228, %c15_229] : memref<2x16x32xf32, #tpu.memory_space<vmem>>, vector<1x16x1xf32>
    %446 = vector.shape_cast %445 : vector<1x16x1xf32> to vector<16x1xf32>
    %447 = vector.broadcast %446 : vector<16x1xf32> to vector<16x128xf32>
    %448 = arith.mulf %444, %447 : vector<16x128xf32>
    %449 = vector.broadcast %19 : vector<1x128xf32> to vector<16x128xf32>
    %450 = arith.mulf %448, %449 : vector<16x128xf32>
    %451 = arith.addf %443, %450 : vector<16x128xf32>
    %c121_i32_230 = arith.constant 121 : i32
    %452 = tpu.dynamic_rotate %323 by %c121_i32_230 dim 1 : vector<16x128xf32>, i32 -> vector<16x128xf32>
    %c1_231 = arith.constant 1 : index
    %c0_232 = arith.constant 0 : index
    %c16_233 = arith.constant 16 : index
    %453 = vector.load %arg5[%c1_231, %c0_232, %c16_233] : memref<2x16x32xf32, #tpu.memory_space<vmem>>, vector<1x16x1xf32>
    %454 = vector.shape_cast %453 : vector<1x16x1xf32> to vector<16x1xf32>
    %455 = vector.broadcast %454 : vector<16x1xf32> to vector<16x128xf32>
    %456 = arith.mulf %452, %455 : vector<16x128xf32>
    %457 = vector.broadcast %20 : vector<1x128xf32> to vector<16x128xf32>
    %458 = arith.mulf %456, %457 : vector<16x128xf32>
    %459 = arith.addf %451, %458 : vector<16x128xf32>
    %c120_i32_234 = arith.constant 120 : i32
    %460 = tpu.dynamic_rotate %323 by %c120_i32_234 dim 1 : vector<16x128xf32>, i32 -> vector<16x128xf32>
    %c1_235 = arith.constant 1 : index
    %c0_236 = arith.constant 0 : index
    %c17_237 = arith.constant 17 : index
    %461 = vector.load %arg5[%c1_235, %c0_236, %c17_237] : memref<2x16x32xf32, #tpu.memory_space<vmem>>, vector<1x16x1xf32>
    %462 = vector.shape_cast %461 : vector<1x16x1xf32> to vector<16x1xf32>
    %463 = vector.broadcast %462 : vector<16x1xf32> to vector<16x128xf32>
    %464 = arith.mulf %460, %463 : vector<16x128xf32>
    %465 = vector.broadcast %21 : vector<1x128xf32> to vector<16x128xf32>
    %466 = arith.mulf %464, %465 : vector<16x128xf32>
    %467 = arith.addf %459, %466 : vector<16x128xf32>
    %c119_i32_238 = arith.constant 119 : i32
    %468 = tpu.dynamic_rotate %323 by %c119_i32_238 dim 1 : vector<16x128xf32>, i32 -> vector<16x128xf32>
    %c1_239 = arith.constant 1 : index
    %c0_240 = arith.constant 0 : index
    %c18_241 = arith.constant 18 : index
    %469 = vector.load %arg5[%c1_239, %c0_240, %c18_241] : memref<2x16x32xf32, #tpu.memory_space<vmem>>, vector<1x16x1xf32>
    %470 = vector.shape_cast %469 : vector<1x16x1xf32> to vector<16x1xf32>
    %471 = vector.broadcast %470 : vector<16x1xf32> to vector<16x128xf32>
    %472 = arith.mulf %468, %471 : vector<16x128xf32>
    %473 = vector.broadcast %22 : vector<1x128xf32> to vector<16x128xf32>
    %474 = arith.mulf %472, %473 : vector<16x128xf32>
    %475 = arith.addf %467, %474 : vector<16x128xf32>
    %c118_i32_242 = arith.constant 118 : i32
    %476 = tpu.dynamic_rotate %323 by %c118_i32_242 dim 1 : vector<16x128xf32>, i32 -> vector<16x128xf32>
    %c1_243 = arith.constant 1 : index
    %c0_244 = arith.constant 0 : index
    %c19_245 = arith.constant 19 : index
    %477 = vector.load %arg5[%c1_243, %c0_244, %c19_245] : memref<2x16x32xf32, #tpu.memory_space<vmem>>, vector<1x16x1xf32>
    %478 = vector.shape_cast %477 : vector<1x16x1xf32> to vector<16x1xf32>
    %479 = vector.broadcast %478 : vector<16x1xf32> to vector<16x128xf32>
    %480 = arith.mulf %476, %479 : vector<16x128xf32>
    %481 = vector.broadcast %23 : vector<1x128xf32> to vector<16x128xf32>
    %482 = arith.mulf %480, %481 : vector<16x128xf32>
    %483 = arith.addf %475, %482 : vector<16x128xf32>
    %c114_i32_246 = arith.constant 114 : i32
    %484 = tpu.dynamic_rotate %323 by %c114_i32_246 dim 1 : vector<16x128xf32>, i32 -> vector<16x128xf32>
    %c1_247 = arith.constant 1 : index
    %c0_248 = arith.constant 0 : index
    %c20_249 = arith.constant 20 : index
    %485 = vector.load %arg5[%c1_247, %c0_248, %c20_249] : memref<2x16x32xf32, #tpu.memory_space<vmem>>, vector<1x16x1xf32>
    %486 = vector.shape_cast %485 : vector<1x16x1xf32> to vector<16x1xf32>
    %487 = vector.broadcast %486 : vector<16x1xf32> to vector<16x128xf32>
    %488 = arith.mulf %484, %487 : vector<16x128xf32>
    %489 = vector.broadcast %24 : vector<1x128xf32> to vector<16x128xf32>
    %490 = arith.mulf %488, %489 : vector<16x128xf32>
    %491 = arith.addf %483, %490 : vector<16x128xf32>
    %c113_i32_250 = arith.constant 113 : i32
    %492 = tpu.dynamic_rotate %323 by %c113_i32_250 dim 1 : vector<16x128xf32>, i32 -> vector<16x128xf32>
    %c1_251 = arith.constant 1 : index
    %c0_252 = arith.constant 0 : index
    %c21_253 = arith.constant 21 : index
    %493 = vector.load %arg5[%c1_251, %c0_252, %c21_253] : memref<2x16x32xf32, #tpu.memory_space<vmem>>, vector<1x16x1xf32>
    %494 = vector.shape_cast %493 : vector<1x16x1xf32> to vector<16x1xf32>
    %495 = vector.broadcast %494 : vector<16x1xf32> to vector<16x128xf32>
    %496 = arith.mulf %492, %495 : vector<16x128xf32>
    %497 = vector.broadcast %25 : vector<1x128xf32> to vector<16x128xf32>
    %498 = arith.mulf %496, %497 : vector<16x128xf32>
    %499 = arith.addf %491, %498 : vector<16x128xf32>
    %c112_i32_254 = arith.constant 112 : i32
    %500 = tpu.dynamic_rotate %323 by %c112_i32_254 dim 1 : vector<16x128xf32>, i32 -> vector<16x128xf32>
    %c1_255 = arith.constant 1 : index
    %c0_256 = arith.constant 0 : index
    %c22_257 = arith.constant 22 : index
    %501 = vector.load %arg5[%c1_255, %c0_256, %c22_257] : memref<2x16x32xf32, #tpu.memory_space<vmem>>, vector<1x16x1xf32>
    %502 = vector.shape_cast %501 : vector<1x16x1xf32> to vector<16x1xf32>
    %503 = vector.broadcast %502 : vector<16x1xf32> to vector<16x128xf32>
    %504 = arith.mulf %500, %503 : vector<16x128xf32>
    %505 = vector.broadcast %26 : vector<1x128xf32> to vector<16x128xf32>
    %506 = arith.mulf %504, %505 : vector<16x128xf32>
    %507 = arith.addf %499, %506 : vector<16x128xf32>
    %c111_i32_258 = arith.constant 111 : i32
    %508 = tpu.dynamic_rotate %323 by %c111_i32_258 dim 1 : vector<16x128xf32>, i32 -> vector<16x128xf32>
    %c1_259 = arith.constant 1 : index
    %c0_260 = arith.constant 0 : index
    %c23_261 = arith.constant 23 : index
    %509 = vector.load %arg5[%c1_259, %c0_260, %c23_261] : memref<2x16x32xf32, #tpu.memory_space<vmem>>, vector<1x16x1xf32>
    %510 = vector.shape_cast %509 : vector<1x16x1xf32> to vector<16x1xf32>
    %511 = vector.broadcast %510 : vector<16x1xf32> to vector<16x128xf32>
    %512 = arith.mulf %508, %511 : vector<16x128xf32>
    %513 = vector.broadcast %27 : vector<1x128xf32> to vector<16x128xf32>
    %514 = arith.mulf %512, %513 : vector<16x128xf32>
    %515 = arith.addf %507, %514 : vector<16x128xf32>
    %c110_i32_262 = arith.constant 110 : i32
    %516 = tpu.dynamic_rotate %323 by %c110_i32_262 dim 1 : vector<16x128xf32>, i32 -> vector<16x128xf32>
    %c1_263 = arith.constant 1 : index
    %c0_264 = arith.constant 0 : index
    %c24_265 = arith.constant 24 : index
    %517 = vector.load %arg5[%c1_263, %c0_264, %c24_265] : memref<2x16x32xf32, #tpu.memory_space<vmem>>, vector<1x16x1xf32>
    %518 = vector.shape_cast %517 : vector<1x16x1xf32> to vector<16x1xf32>
    %519 = vector.broadcast %518 : vector<16x1xf32> to vector<16x128xf32>
    %520 = arith.mulf %516, %519 : vector<16x128xf32>
    %521 = vector.broadcast %28 : vector<1x128xf32> to vector<16x128xf32>
    %522 = arith.mulf %520, %521 : vector<16x128xf32>
    %523 = arith.addf %515, %522 : vector<16x128xf32>
    %cst_266 = arith.constant dense<0.000000e+00> : vector<16x16xf32>
    %524 = tpu.matmul %523, %0, %cst_266 {dimension_numbers = #tpu.dot_dimension_numbers<[1], [0], [0], [1], [0, 0, 1, 1], [], []>} : vector<16x128xf32>, vector<128x16xf32>, vector<16x16xf32> -> vector<16x16xf32>
    %cst_267 = arith.constant dense<0.000000e+00> : vector<16x16xf32>
    %525 = tpu.matmul %523, %1, %cst_267 {dimension_numbers = #tpu.dot_dimension_numbers<[1], [0], [0], [1], [0, 0, 1, 1], [], []>} : vector<16x128xf32>, vector<128x16xf32>, vector<16x16xf32> -> vector<16x16xf32>
    %c1_268 = arith.constant 1 : index
    %c0_269 = arith.constant 0 : index
    %c0_270 = arith.constant 0 : index
    %526 = vector.load %arg2[%c1_268, %c0_269, %c0_270] : memref<2x8x16xf32, #tpu.memory_space<vmem>>, vector<1x8x16xf32>
    %527 = vector.shape_cast %526 : vector<1x8x16xf32> to vector<8x16xf32>
    %c1_271 = arith.constant 1 : index
    %c0_272 = arith.constant 0 : index
    %c29_273 = arith.constant 29 : index
    %528 = vector.load %arg5[%c1_271, %c0_272, %c29_273] : memref<2x16x32xf32, #tpu.memory_space<vmem>>, vector<1x8x1xf32>
    %529 = vector.shape_cast %528 : vector<1x8x1xf32> to vector<8x1xf32>
    %cst_274 = arith.constant dense<0.000000e+00> : vector<8x16xf32>
    %530 = tpu.matmul %527, %524, %cst_274 {dimension_numbers = #tpu.dot_dimension_numbers<[1], [0], [0], [1], [0, 0, 1, 1], [], []>} : vector<8x16xf32>, vector<16x16xf32>, vector<8x16xf32> -> vector<8x16xf32>
    %531 = vector.broadcast %529 : vector<8x1xf32> to vector<8x16xf32>
    %532 = arith.addf %530, %531 : vector<8x16xf32>
    %cst_275 = arith.constant dense<0.000000e+00> : vector<8x16xf32>
    %533 = tpu.matmul %527, %525, %cst_275 {dimension_numbers = #tpu.dot_dimension_numbers<[1], [0], [0], [1], [0, 0, 1, 1], [], []>} : vector<8x16xf32>, vector<16x16xf32>, vector<8x16xf32> -> vector<8x16xf32>
    %534 = vector.broadcast %529 : vector<8x1xf32> to vector<8x16xf32>
    %535 = arith.addf %533, %534 : vector<8x16xf32>
    %cst_276 = arith.constant 3.000000e+00 : f32
    %536 = vector.broadcast %cst_276 : f32 to vector<8x16xf32>
    %537 = arith.addf %532, %536 : vector<8x16xf32>
    %cst_277 = arith.constant 0.000000e+00 : f32
    %cst_278 = arith.constant 6.000000e+00 : f32
    %538 = vector.broadcast %cst_277 : f32 to vector<8x16xf32>
    %539 = arith.maximumf %538, %537 : vector<8x16xf32>
    %540 = vector.broadcast %cst_278 : f32 to vector<8x16xf32>
    %541 = arith.minimumf %540, %539 : vector<8x16xf32>
    %542 = arith.mulf %532, %541 : vector<8x16xf32>
    %cst_279 = arith.constant 0.166666672 : f32
    %543 = vector.broadcast %cst_279 : f32 to vector<8x16xf32>
    %544 = arith.mulf %542, %543 : vector<8x16xf32>
    %cst_280 = arith.constant 3.000000e+00 : f32
    %545 = vector.broadcast %cst_280 : f32 to vector<8x16xf32>
    %546 = arith.addf %535, %545 : vector<8x16xf32>
    %cst_281 = arith.constant 0.000000e+00 : f32
    %cst_282 = arith.constant 6.000000e+00 : f32
    %547 = vector.broadcast %cst_281 : f32 to vector<8x16xf32>
    %548 = arith.maximumf %547, %546 : vector<8x16xf32>
    %549 = vector.broadcast %cst_282 : f32 to vector<8x16xf32>
    %550 = arith.minimumf %549, %548 : vector<8x16xf32>
    %551 = arith.mulf %535, %550 : vector<8x16xf32>
    %cst_283 = arith.constant 0.166666672 : f32
    %552 = vector.broadcast %cst_283 : f32 to vector<8x16xf32>
    %553 = arith.mulf %551, %552 : vector<8x16xf32>
    %c1_284 = arith.constant 1 : index
    %c0_285 = arith.constant 0 : index
    %c0_286 = arith.constant 0 : index
    %554 = vector.load %arg3[%c1_284, %c0_285, %c0_286] : memref<2x32x8xf32, #tpu.memory_space<vmem>>, vector<1x32x8xf32>
    %555 = vector.shape_cast %554 : vector<1x32x8xf32> to vector<32x8xf32>
    %556 = vector.extract_strided_slice %555 {offsets = [0, 0], sizes = [16, 8], strides = [1, 1]} : vector<32x8xf32> to vector<16x8xf32>
    %cst_287 = arith.constant dense<0.000000e+00> : vector<16x16xf32>
    %557 = tpu.matmul %556, %544, %cst_287 {dimension_numbers = #tpu.dot_dimension_numbers<[1], [0], [0], [1], [0, 0, 1, 1], [], []>} : vector<16x8xf32>, vector<8x16xf32>, vector<16x16xf32> -> vector<16x16xf32>
    %c1_288 = arith.constant 1 : index
    %c0_289 = arith.constant 0 : index
    %c27_290 = arith.constant 27 : index
    %558 = vector.load %arg5[%c1_288, %c0_289, %c27_290] : memref<2x16x32xf32, #tpu.memory_space<vmem>>, vector<1x16x1xf32>
    %559 = vector.shape_cast %558 : vector<1x16x1xf32> to vector<16x1xf32>
    %560 = vector.broadcast %559 : vector<16x1xf32> to vector<16x16xf32>
    %561 = arith.addf %557, %560 : vector<16x16xf32>
    %562 = arith.negf %561 : vector<16x16xf32>
    %563 = math.exp %562 : vector<16x16xf32>
    %cst_291 = arith.constant 1.000000e+00 : f32
    %564 = vector.broadcast %cst_291 : f32 to vector<16x16xf32>
    %565 = arith.addf %564, %563 : vector<16x16xf32>
    %566 = arith.divf %564, %565 : vector<16x16xf32>
    %567 = vector.extract_strided_slice %555 {offsets = [16, 0], sizes = [16, 8], strides = [1, 1]} : vector<32x8xf32> to vector<16x8xf32>
    %cst_292 = arith.constant dense<0.000000e+00> : vector<16x16xf32>
    %568 = tpu.matmul %567, %553, %cst_292 {dimension_numbers = #tpu.dot_dimension_numbers<[1], [0], [0], [1], [0, 0, 1, 1], [], []>} : vector<16x8xf32>, vector<8x16xf32>, vector<16x16xf32> -> vector<16x16xf32>
    %c1_293 = arith.constant 1 : index
    %c0_294 = arith.constant 0 : index
    %c28_295 = arith.constant 28 : index
    %569 = vector.load %arg5[%c1_293, %c0_294, %c28_295] : memref<2x16x32xf32, #tpu.memory_space<vmem>>, vector<1x16x1xf32>
    %570 = vector.shape_cast %569 : vector<1x16x1xf32> to vector<16x1xf32>
    %571 = vector.broadcast %570 : vector<16x1xf32> to vector<16x16xf32>
    %572 = arith.addf %568, %571 : vector<16x16xf32>
    %573 = arith.negf %572 : vector<16x16xf32>
    %574 = math.exp %573 : vector<16x16xf32>
    %cst_296 = arith.constant 1.000000e+00 : f32
    %575 = vector.broadcast %cst_296 : f32 to vector<16x16xf32>
    %576 = arith.addf %575, %574 : vector<16x16xf32>
    %577 = arith.divf %575, %576 : vector<16x16xf32>
    %cst_297 = arith.constant dense<0.000000e+00> : vector<16x128xf32>
    %578 = tpu.matmul %566, %2, %cst_297 {dimension_numbers = #tpu.dot_dimension_numbers<[1], [0], [0], [1], [0, 0, 1, 1], [], []>} : vector<16x16xf32>, vector<16x128xf32>, vector<16x128xf32> -> vector<16x128xf32>
    %579 = arith.mulf %523, %578 : vector<16x128xf32>
    %cst_298 = arith.constant dense<0.000000e+00> : vector<16x128xf32>
    %580 = tpu.matmul %577, %3, %cst_298 {dimension_numbers = #tpu.dot_dimension_numbers<[1], [0], [0], [1], [0, 0, 1, 1], [], []>} : vector<16x16xf32>, vector<16x128xf32>, vector<16x128xf32> -> vector<16x128xf32>
    %581 = arith.mulf %579, %580 : vector<16x128xf32>
    %c1_299 = arith.constant 1 : index
    %c0_300 = arith.constant 0 : index
    %c0_301 = arith.constant 0 : index
    %582 = vector.load %arg4[%c1_299, %c0_300, %c0_301] : memref<2x8x16xf32, #tpu.memory_space<vmem>>, vector<1x8x16xf32>
    %583 = vector.shape_cast %582 : vector<1x8x16xf32> to vector<8x16xf32>
    %cst_302 = arith.constant dense<0.000000e+00> : vector<8x128xf32>
    %584 = tpu.matmul %583, %581, %cst_302 {dimension_numbers = #tpu.dot_dimension_numbers<[1], [0], [0], [1], [0, 0, 1, 1], [], []>} : vector<8x16xf32>, vector<16x128xf32>, vector<8x128xf32> -> vector<8x128xf32>
    %585 = arith.addf %309, %584 : vector<8x128xf32>
    %c1_303 = arith.constant 1 : index
    %c0_304 = arith.constant 0 : index
    %c30_305 = arith.constant 30 : index
    %586 = vector.load %arg5[%c1_303, %c0_304, %c30_305] : memref<2x16x32xf32, #tpu.memory_space<vmem>>, vector<1x8x1xf32>
    %587 = vector.shape_cast %586 : vector<1x8x1xf32> to vector<8x1xf32>
    %588 = vector.broadcast %587 : vector<8x1xf32> to vector<8x128xf32>
    %589 = arith.addf %585, %588 : vector<8x128xf32>
    %c0_306 = arith.constant 0 : index
    %c0_307 = arith.constant 0 : index
    %590 = vector.load %arg11[%c0_306, %c0_307] : memref<8x128xf32, #tpu.memory_space<vmem>>, vector<8x128xf32>
    tpu.vector_store %arg11[%c0_306, %c0_307], %589 {strides = array<i32>} : memref<8x128xf32, #tpu.memory_space<vmem>>, vector<8x128xf32>,
    return
  }
}

</mosaic_0001>

<bundles_post_ra>
// kernel: mix_residual_pallas.1
= control target key start
LH: loop header
LB: loop body
LE: loop exit
PB: predicated region body
PF: predicated region fallthrough
CT: control target
= control target key end

     0   :  { %vm114_vm0 = vcmask 64512   ;;  %v5188_v0 = vmov 26   ;;  %v5193_v6 = vmov 25   ;;  %v5189_v7 = vmov 1   ;;  %s5138_s27 = smov 16   ;;  %s5161_s28 = smov 18   ;;  %s5122_s5 = inlined_call_operand.vmem [shape: f32[2,16,32], index: 5, kind: input, shape index: {}]   ;;  %s5123_s0 = inlined_call_operand.vmem [shape: f32[8,128], index: 0, kind: input, shape index: {}]   ;;  %s5124_s1 = inlined_call_operand.vmem [shape: f32[2,16,8], index: 1, kind: input, shape index: {}]   ;;  %s5125_s6 = inlined_call_operand.vmem [shape: f32[128,16], index: 6, kind: input, shape index: {}]   ;;  %s5126_s7 = inlined_call_operand.vmem [shape: f32[128,16], index: 7, kind: input, shape index: {}]   ;;  %s5127_s10 = inlined_call_operand.vmem [shape: f32[25,128], index: 10, kind: input, shape index: {}]   ;;  %s5128_s2 = inlined_call_operand.vmem [shape: f32[2,8,16], index: 2, kind: input, shape index: {}]   ;;  %s5129_s3 = inlined_call_operand.vmem [shape: f32[2,32,8], index: 3, kind: input, shape index: {}]   ;;  %s5130_s8 = inlined_call_operand.vmem [shape: f32[16,128], index: 8, kind: input, shape index: {}]   ;;  %s5131_s9 = inlined_call_operand.vmem [shape: f32[16,128], index: 9, kind: input, shape index: {}]   ;;  %s5132_s4 = inlined_call_operand.vmem [shape: f32[2,8,16], index: 4, kind: input, shape index: {}]   ;;  %s5133_s11 = inlined_call_operand.vmem [shape: f32[8,128], index: 11, kind: output, shape index: {}]  }
   0x1   :  { %3501 = vset.pattern.permute.xlu1 %v5188_v0  ;;  %v3764_v1 = vld [vmem:[%s5122_s5] sm:$0xff]  ;;  %v101_v4 = vld [vmem:[%s5124_s1 + $0x8] sm:$0xff]  ;;  %3500 = vset.pattern.permute.xlu0 %v5193_v6  ;;  %v5191_v8 = vmov 0   ;;  %v5181_v9 = vmov 2   ;;  %v5186_v10 = vmov 3   ;;  %v5184_v11 = vmov 4  }
   0x2   :  { %v99_v2 = vld [vmem:[%s5123_s0] sm:$0xff]  ;;  %199 = vperm.xlu1 %3501, %v3764_v1   ;;  %v3780_v5 = vld [vmem:[%s5122_s5 + $0x8] sm:$0xff]  ;;  %106 = vperm.xlu0 %3500, %v3764_v1   ;;  %v5182_v12 = vmov 5   ;;  %v5179_v13 = vmov 15   ;;  %v5177_v14 = vmov 16   ;;  %v5176_v15 = vmov 6  }
   0x3   :  { %v100_v3 = vld [vmem:[%s5124_s1] sm:$0xff]  ;;  %3040 = vmatprep.subr.mxu0 %v99_v2  ;;  %v5175_v16 = vmov 7   ;;  %v5174_v17 = vmov 8   ;;  %v5173_v18 = vmov 9   ;;  %v5172_v19 = vmov 10   ;;  %s5159_s29 = smov 15  }
   0x4   :  { %3041 = vmatpush3.msra.mxu0 %v99_v2  ;;  %3042 = vmatprep.mubr.msk.f32.mxu0 %vm114_vm0, %v100_v3  ;;  %v5171_v20 = vmov 11   ;;  %v5170_v21 = vmov 12   ;;  %v5169_v22 = vmov 13   ;;  %v5168_v23 = vmov 14   ;;  %s5136_s30 = smov 17   ;;  %s5154_s12 = smov 14  }
   0x5   :  { %3043 = vmatmul.mubr.msk.f32.vlgmr.msra.gmra.mrb[0].mxu0 %vm114_vm0, %v101_v4  ;;  %v5167_v24 = vmov 17   ;;  %v5166_v25 = vmov 18   ;;  %v5165_v26 = vmov 19   ;;  %v5164_v27 = vmov 20   ;;  %s5134_s13 = smov 127   ;;  %s5152_s14 = smov 10  }
   0x6   :  { %203 = vperm.xlu1 %3501, %v3780_v5   ;;  %111 = vperm.xlu0 %3500, %v3780_v5   ;;  %v5163_v29 = vmov 21   ;;  %s5148_s15 = smov 9   ;;  %s5146_s16 = smov 8   ;;  %v5158_v53 = vmov 22   ;;  %v5157_v55 = vmov 23   ;;  %v5156_v58 = vmov 24  }
   0x7   :  { %s5140_s17 = smov 7   ;;  %s5142_s18 = smov 6   ;;  %vm3694_vm3 = vmmov 0   ;;  %vm913_vm4 = vcmask 130048  }
   0x8   :  { %s5144_s19 = smov 2   ;;  %s5150_s20 = smov 1  }
   0x9   :  { %s3681_s21 = smov 126   ;;  %s3682_s22 = smov 122  }
   0xa   :  { %3503 = vset.pattern.permute.xlu1 %v5189_v7  ;;  %3502 = vset.pattern.permute.xlu0 %v5191_v8  ;;  %s3684_s23 = smov 121   ;;  %s3685_s24 = smov 120  }
   0xb   :  { %237 = vperm.xlu1 %3503, %v3764_v1   ;;  %215 = vperm.xlu0 %3502, %v3764_v1   ;;  %s3686_s25 = smov 112   ;;  %s3687_s26 = smov 111  }
   0xf   :  { %3504 = vset.pattern.permute.xlu1 %v5191_v8  ;;  %3505 = vset.pattern.permute.xlu0 %v5189_v7  ;;  %v67_v8 = vld [vmem:[%s5126_s7 + $0x68] sm:$0xff] }
  0x10   :  { %219 = vperm.xlu1 %3504, %v3780_v5   ;;  %241 = vperm.xlu0 %3505, %v3780_v5  }
  0x14   :  { %3506 = vset.pattern.permute.xlu1 %v5181_v9  ;;  %3507 = vset.pattern.permute.xlu0 %v5186_v10 }
  0x15   :  { %259 = vperm.xlu1 %3506, %v3764_v1   ;;  %281 = vperm.xlu0 %3507, %v3764_v1  }
  0x19   :  { %263 = vperm.xlu1 %3506, %v3780_v5   ;;  %3510 = vset.pattern.permute.xlu0 %v5184_v11 }
  0x1a   :  { %307 = vperm.xlu0 %3510, %v3780_v5  }
  0x1d   :  { %3508 = vset.pattern.permute.xlu1 %v5186_v10 }
  0x1e   :  { %285 = vperm.xlu1 %3508, %v3780_v5   ;;  %3511 = vset.pattern.permute.xlu0 %v5182_v12 }
  0x1f   :  { %325 = vperm.xlu0 %3511, %v3764_v1  }
  0x22   :  { %3509 = vset.pattern.permute.xlu1 %v5184_v11  ;;  %v65_v11 = vld [vmem:[%s5126_s7 + $0x58] sm:$0xff] }
  0x23   :  { %303 = vperm.xlu1 %3509, %v3764_v1   ;;  %3523 = vset.pattern.permute.xlu0 %v5179_v13 }
  0x24   :  { %545 = vperm.xlu0 %3523, %v3780_v5  }
  0x27   :  { %3512 = vset.pattern.permute.xlu1 %v5182_v12 }
  0x28   :  { %329 = vperm.xlu1 %3512, %v3780_v5   ;;  %3525 = vset.pattern.permute.xlu0 %v5177_v14 }
  0x29   :  { %567 = vperm.xlu0 %3525, %v3780_v5  }
  0x2c   :  { %3513 = vset.pattern.permute.xlu1 %v5176_v15 }
  0x2d   :  { %347 = vperm.xlu1 %3513, %v3764_v1  }
  0x31   :  { %351 = vperm.xlu1 %3513, %v3780_v5  }
  0x35   :  { %3514 = vset.pattern.permute.xlu1 %v5175_v16 }
  0x36   :  { %369 = vperm.xlu1 %3514, %v3764_v1  }
  0x3a   :  { %373 = vperm.xlu1 %3514, %v3780_v5  }
  0x3e   :  { %3515 = vset.pattern.permute.xlu1 %v5174_v17  ;;  %v61_v17 = vld [vmem:[%s5126_s7 + $0x38] sm:$0xff] }
  0x3f   :  { %391 = vperm.xlu1 %3515, %v3764_v1  }
  0x43   :  { %395 = vperm.xlu1 %3515, %v3780_v5  }
  0x47   :  { %3516 = vset.pattern.permute.xlu1 %v5173_v18 }
  0x48   :  { %413 = vperm.xlu1 %3516, %v3764_v1  }
  0x4c   :  { %417 = vperm.xlu1 %3516, %v3780_v5  }
  0x50   :  { %3517 = vset.pattern.permute.xlu1 %v5172_v19 }
  0x51   :  { %435 = vperm.xlu1 %3517, %v3764_v1  }
  0x55   :  { %439 = vperm.xlu1 %3517, %v3780_v5  }
  0x59   :  { %3518 = vset.pattern.permute.xlu1 %v5171_v20 }
  0x5a   :  { %457 = vperm.xlu1 %3518, %v3764_v1  }
  0x5e   :  { %461 = vperm.xlu1 %3518, %v3780_v5  }
  0x62   :  { %3519 = vset.pattern.permute.xlu1 %v5170_v21  ;;  %v59_v21 = vld [vmem:[%s5126_s7 + $0x28] sm:$0xff] }
  0x63   :  { %475 = vperm.xlu1 %3519, %v3764_v1  }
  0x67   :  { %479 = vperm.xlu1 %3519, %v3780_v5  }
  0x6b   :  { %3520 = vset.pattern.permute.xlu1 %v5169_v22 }
  0x6c   :  { %497 = vperm.xlu1 %3520, %v3764_v1  }
  0x70   :  { %501 = vperm.xlu1 %3520, %v3780_v5  }
  0x74   :  { %3521 = vset.pattern.permute.xlu1 %v5168_v23 }
  0x75   :  { %519 = vperm.xlu1 %3521, %v3764_v1  }
  0x79   :  { %523 = vperm.xlu1 %3521, %v3780_v5  }
  0x7d   :  { %3522 = vset.pattern.permute.xlu1 %v5179_v13 }
  0x7e   :  { %541 = vperm.xlu1 %3522, %v3764_v1  }
  0x81   :  { %v200_v28 = vpop.permute.xlu1 %199  ;;  %v107_v37 = vpop.permute.xlu0 %106 }
  0x82   :  { %3524 = vset.pattern.permute.xlu1 %v5177_v14  ;;  %v63_v14 = vld [vmem:[%s5126_s7 + $0x48] sm:$0xff] }
  0x83   :  { %563 = vperm.xlu1 %3524, %v3764_v1  }
  0x85   :  { %v204_v30 = vpop.permute.xlu1 %203  ;;  %v112_v39 = vpop.permute.xlu0 %111 }
  0x87   :  { %3526 = vset.pattern.permute.xlu1 %v5167_v24 }
  0x88   :  { %585 = vperm.xlu1 %3526, %v3764_v1  }
  0x8a   :  { %v3859_v31 = vpop.permute.xlu1 %237 }
  0x8c   :  { %589 = vperm.xlu1 %3526, %v3780_v5  }
  0x8f   :  { %v3861_v32 = vpop.permute.xlu1 %219 }
  0x90   :  { %3527 = vset.pattern.permute.xlu1 %v5166_v25  ;;  %v57_v25 = vld [vmem:[%s5126_s7 + $0x18] sm:$0xff] }
  0x91   :  { %607 = vperm.xlu1 %3527, %v3764_v1  }
  0x94   :  { %v3863_v33 = vpop.permute.xlu1 %259 }
  0x95   :  { %611 = vperm.xlu1 %3527, %v3780_v5  }
  0x98   :  { %v3865_v34 = vpop.permute.xlu1 %263 }
  0x99   :  { %3528 = vset.pattern.permute.xlu1 %v5165_v26 }
  0x9a   :  { %629 = vperm.xlu1 %3528, %v3764_v1  }
  0x9d   :  { %v3867_v35 = vpop.permute.xlu1 %285 }
  0x9e   :  { %633 = vperm.xlu1 %3528, %v3780_v5  }
  0xa2   :  { %3529 = vset.pattern.permute.xlu1 %v5164_v27  ;;  %v3869_v36 = vpop.permute.xlu1 %303 }
  0xa3   :  { %651 = vperm.xlu1 %3529, %v3764_v1  }
  0xa7   :  { %655 = vperm.xlu1 %3529, %v3780_v5   ;;  %v3871_v38 = vpop.permute.xlu1 %329 }
  0xab   :  { %3530 = vset.pattern.permute.xlu1 %v5163_v29  ;;  %v55_v29 = vld [vmem:[%s5126_s7 + $0x8] sm:$0xff] }
  0xac   :  { %673 = vperm.xlu1 %3530, %v3764_v1   ;;  %v3873_v44 = vpop.permute.xlu1 %347 }
  0xb0   :  { %v3885_v47 = vpop.permute.xlu1 %351 }
  0xb5   :  { %v3891_v49 = vpop.permute.xlu1 %369 }
  0xb9   :  { %v3903_v51 = vpop.permute.xlu1 %373 }
  0xbe   :  { %v3908_v52 = vpop.permute.xlu1 %391 }
  0xc2   :  { %v3916_v54 = vpop.permute.xlu1 %395 }
  0xc7   :  { %v3923_v56 = vpop.permute.xlu1 %413 }
  0xcb   :  { %v3931_v57 = vpop.permute.xlu1 %417 }
  0xd0   :  { %v3937_v59 = vpop.permute.xlu1 %435 }
  0xd4   :  { %v3945_v60 = vpop.permute.xlu1 %439 }
  0xd8   :  { %v3044_v40 = vpop.f32.mrb[0].mxu0 }
  0xd9   :  { %v193_v41 = vadd.f32 %v3044_v40, %v112_v39  ;;  %v187_v42 = vpop.f32.mrb[1].mxu0  ;;  %v3951_v61 = vpop.permute.xlu1 %457 }
  0xda   :  { %v188_v46 = vadd.f32 %v187_v42, %v107_v37 }
  0xdb   :  { %vm197_vm1 = vcmp.gt.f32.partialorder %v193_v41, 0.0  ;;  %v207_v43 = vmul.f32 %v204_v30, %v193_v41 }
  0xdc   :  { %v206_v48 = vmul.f32 %v200_v28, %v188_v46  ;;  %vm196_vm2 = vcmp.gt.f32.partialorder %v188_v46, 0.0 }
  0xdd   :  { %v3875_v45 = vsel %vm197_vm1, %v193_v41, %v207_v43  ;;  %v3961_v62 = vpop.permute.xlu1 %461 }
  0xde   :  { %256 = vrot.lane.b32.xlu0 %v3875_v45, %s5138_s27  ;;  %212 = vrot.lane.b32.xlu1 %v3875_v45, %s5161_s28  ;;  %v3893_v50 = vsel %vm196_vm2, %v188_v46, %v206_v48  ;;  %v38_v46 = vld [vmem:[%s5125_s6] sm:$0xff]  ;;  %v39_v48 = vld [vmem:[%s5125_s6 + $0x8] sm:$0xff] }
  0xe2   :  { %278 = vrot.lane.b32.xlu0 %v3875_v45, %s5159_s29  ;;  %234 = vrot.lane.b32.xlu1 %v3875_v45, %s5136_s30  ;;  %v3965_v63 = vpop.permute.xlu1 %475 }
  0xe6   :  { %300 = vrot.lane.b32.xlu0 %v3875_v45, %s5154_s12  ;;  %494 = vrot.lane.b32.xlu1 %v3875_v45, %s5134_s13  ;;  %v3973_v2 = vpop.permute.xlu1 %479 }
  0xea   :  { %322 = vrot.lane.b32.xlu0 %v3875_v45, %s5152_s14  ;;  %232 = vrot.lane.b32.xlu1 %v3893_v50, %s5136_s30  ;;  %s3689_s30 = smov 110  }
  0xeb   :  { %v3979_v4 = vpop.permute.xlu1 %497 }
  0xee   :  { %344 = vrot.lane.b32.xlu0 %v3875_v45, %s5148_s15  ;;  %254 = vrot.lane.b32.xlu1 %v3893_v50, %s5138_s27  ;;  %s3690_s27 = smov 118  }
  0xef   :  { %v3985_v28 = vpop.permute.xlu1 %501 }
  0xf2   :  { %366 = vrot.lane.b32.xlu0 %v3875_v45, %s5146_s16  ;;  %677 = vperm.xlu1 %3530, %v3780_v5  }
  0xf4   :  { %v3993_v37 = vpop.permute.xlu1 %519 }
  0xf5   :  { %5236 = vst [vmem:[#allocation2_spill] sm:$0xff] %v3993_v37 }
  0xf6   :  { %388 = vrot.lane.b32.xlu0 %v3875_v45, %s5140_s17  ;;  %3531 = vset.pattern.permute.xlu1 %v5158_v53  ;;  %v4024_v53 = vpack.c.bf16 %v39_v48, %v38_v46  ;;  %v40_v46 = vld [vmem:[%s5125_s6 + $0x10] sm:$0xff]  ;;  %v41_v48 = vld [vmem:[%s5125_s6 + $0x18] sm:$0xff] }
  0xf7   :  { %695 = vperm.xlu1 %3531, %v3764_v1  }
  0xf8   :  { %v3999_v40 = vpop.permute.xlu1 %523  ;;  %5242 = vst [vmem:[#allocation8_spill] sm:$0xff] %v4024_v53  ;;  %3281 = vmatprep.subr.bf16.mxu1 %v4024_v53 }
  0xf9   :  { %5237 = vst [vmem:[#allocation3_spill] sm:$0xff] %v3999_v40  ;;  %3283 = vmatpush3.bf16.msra.mxu1 %v4024_v53 }
  0xfa   :  { %410 = vrot.lane.b32.xlu0 %v3875_v45, %s5142_s18 }
  0xfb   :  { %699 = vperm.xlu1 %3531, %v3780_v5  }
  0xfd   :  { %v4007_v42 = vpop.permute.xlu1 %541 }
  0xfe   :  { %432 = vrot.lane.b32.xlu0 %v3875_v45, %s5144_s19  ;;  %5239 = vst [vmem:[#allocation5_spill] sm:$0xff] %v4007_v42 }
  0xff   :  { %3532 = vset.pattern.permute.xlu1 %v5157_v55 }
 0x100   :  { %717 = vperm.xlu1 %3532, %v3764_v1  }
 0x102   :  { %454 = vrot.lane.b32.xlu0 %v3875_v45, %s5150_s20  ;;  %v4022_v55 = vpop.permute.xlu1 %563 }
 0x103   :  { %5241 = vst [vmem:[#allocation7_spill] sm:$0xff] %v4022_v55 }
 0x104   :  { %492 = vrot.lane.b32.xlu1 %v3893_v50, %s5134_s13  ;;  %s3688_s13 = smov 119  }
 0x106   :  { %516 = vrot.lane.b32.xlu0 %v3875_v45, %s3681_s21 }
 0x107   :  { %v4057_v23 = vpop.permute.xlu1 %585 }
 0x108   :  { %721 = vperm.xlu1 %3532, %v3780_v5   ;;  %5246 = vst [vmem:[#allocation12_spill] sm:$0xff] %v4057_v23 }
 0x10a   :  { %538 = vrot.lane.b32.xlu0 %v3875_v45, %s3682_s22 }
 0x10c   :  { %3533 = vset.pattern.permute.xlu1 %v5156_v58  ;;  %v54_v58 = vld [vmem:[%s5126_s7] sm:$0xff] }
 0x10d   :  { %739 = vperm.xlu1 %3533, %v3764_v1   ;;  %v3969_v1 = vpop.permute.xlu0 %215  ;;  %v4031_v27 = vpack.c.bf16 %v55_v29, %v54_v58  ;;  %v56_v29 = vld [vmem:[%s5126_s7 + $0x10] sm:$0xff]  ;;  %v4048_v58 = vpack.c.bf16 %v41_v48, %v40_v46  ;;  %v42_v46 = vld [vmem:[%s5125_s6 + $0x20] sm:$0xff]  ;;  %v43_v48 = vld [vmem:[%s5125_s6 + $0x28] sm:$0xff] }
 0x10e   :  { %560 = vrot.lane.b32.xlu0 %v3875_v45, %s3684_s23  ;;  %v4055_v24 = vpack.c.bf16 %v57_v25, %v56_v29  ;;  %v58_v25 = vld [vmem:[%s5126_s7 + $0x20] sm:$0xff]  ;;  %v4074_v29 = vpack.c.bf16 %v43_v48, %v42_v46  ;;  %v44_v46 = vld [vmem:[%s5125_s6 + $0x30] sm:$0xff]  ;;  %v45_v48 = vld [vmem:[%s5125_s6 + $0x38] sm:$0xff] }
 0x10f   :  { %5243 = vst [vmem:[#allocation9_spill] sm:$0xff] %v4031_v27  ;;  %3313 = vmatprep.subr.bf16.mxu0 %v4031_v27  ;;  %5244 = vst [vmem:[#allocation10_spill] sm:$0xff] %v4048_v58  ;;  %3285 = vmatprep.subr.bf16.mxu1 %v4048_v58  ;;  %v4081_v20 = vpack.c.bf16 %v59_v21, %v58_v25  ;;  %v60_v21 = vld [vmem:[%s5126_s7 + $0x30] sm:$0xff]  ;;  %v4097_v25 = vpop.permute.xlu1 %589  ;;  %v4100_v18 = vpack.c.bf16 %v45_v48, %v44_v46  ;;  %v46_v46 = vld [vmem:[%s5125_s6 + $0x40] sm:$0xff] }
 0x110   :  { %3315 = vmatpush3.bf16.msra.mxu0 %v4031_v27  ;;  %5245 = vst [vmem:[#allocation11_spill] sm:$0xff] %v4055_v24  ;;  %3287 = vmatpush3.bf16.msra.mxu1 %v4048_v58  ;;  %5247 = vst [vmem:[#allocation13_spill] sm:$0xff] %v4074_v29  ;;  %v4107_v16 = vpack.c.bf16 %v61_v17, %v60_v21  ;;  %v47_v48 = vld [vmem:[%s5125_s6 + $0x48] sm:$0xff]  ;;  %v62_v17 = vld [vmem:[%s5126_s7 + $0x40] sm:$0xff] }
 0x111   :  { %743 = vperm.xlu1 %3533, %v3780_v5   ;;  %v3975_v3 = vpop.permute.xlu0 %241  ;;  %3317 = vmatprep.subr.bf16.mxu0 %v4055_v24  ;;  %5248 = vst [vmem:[#allocation14_spill] sm:$0xff] %v4081_v20  ;;  %5249 = vst [vmem:[#allocation15_spill] sm:$0xff] %v4097_v25  ;;  %v4124_v21 = vpack.c.bf16 %v47_v48, %v46_v46  ;;  %v4131_v13 = vpack.c.bf16 %v63_v14, %v62_v17  ;;  %v48_v46 = vld [vmem:[%s5125_s6 + $0x50] sm:$0xff]  ;;  %v49_v48 = vld [vmem:[%s5125_s6 + $0x58] sm:$0xff] }
 0x112   :  { %582 = vrot.lane.b32.xlu0 %v3875_v45, %s3685_s24  ;;  %3289 = vmatprep.subr.bf16.mxu1 %v4074_v29  ;;  %5250 = vst [vmem:[#allocation16_spill] sm:$0xff] %v4100_v18  ;;  %5251 = vst [vmem:[#allocation17_spill] sm:$0xff] %v4107_v16  ;;  %v64_v14 = vld [vmem:[%s5126_s7 + $0x50] sm:$0xff]  ;;  %v4150_v17 = vpack.c.bf16 %v49_v48, %v48_v46  ;;  %v50_v46 = vld [vmem:[%s5125_s6 + $0x60] sm:$0xff] }
 0x113   :  { %5252 = vst [vmem:[#allocation18_spill] sm:$0xff] %v4124_v21  ;;  %5253 = vst [vmem:[#allocation19_spill] sm:$0xff] %v4131_v13  ;;  %v4133_v9 = vpop.permute.xlu1 %607  ;;  %v4157_v10 = vpack.c.bf16 %v65_v11, %v64_v14  ;;  %v51_v48 = vld [vmem:[%s5125_s6 + $0x68] sm:$0xff]  ;;  %v66_v11 = vld [vmem:[%s5126_s7 + $0x60] sm:$0xff] }
 0x114   :  { %3319 = vmatpush3.bf16.msra.mxu0 %v4055_v24  ;;  %3291 = vmatpush3.bf16.msra.mxu1 %v4074_v29  ;;  %5254 = vst [vmem:[#allocation20_spill] sm:$0xff] %v4133_v9  ;;  %5255 = vst [vmem:[#allocation21_spill] sm:$0xff] %v4150_v17  ;;  %v4176_v7 = vpack.c.bf16 %v51_v48, %v50_v46  ;;  %v4183_v6 = vpack.c.bf16 %v67_v8, %v66_v11  ;;  %v52_v46 = vld [vmem:[%s5125_s6 + $0x70] sm:$0xff]  ;;  %v53_v48 = vld [vmem:[%s5125_s6 + $0x78] sm:$0xff]  ;;  %s5355_s6 = smov 1  }
 0x115   :  { %690 = vrot.lane.b32.xlu1 %v3893_v50, %s3686_s25  ;;  %v3983_v5 = vpop.permute.xlu0 %281  ;;  %3321 = vmatprep.subr.bf16.mxu0 %v4081_v20  ;;  %5256 = vst [vmem:[#allocation22_spill] sm:$0xff] %v4157_v10  ;;  %v68_v8 = vld [vmem:[%s5126_s7 + $0x70] sm:$0xff]  ;;  %v4200_v11 = vpack.c.bf16 %v53_v48, %v52_v46 }
 0x116   :  { %210 = vrot.lane.b32.xlu0 %v3893_v50, %s5161_s28  ;;  %3293 = vmatprep.subr.bf16.mxu1 %v4100_v18  ;;  %5258 = vst [vmem:[#allocation24_spill] sm:$0xff] %v4176_v7  ;;  %5259 = vst [vmem:[#allocation25_spill] sm:$0xff] %v4183_v6  ;;  %s5347_s28 = smov 10  }
 0x117   :  { %v4173_v14 = vpop.permute.xlu1 %611  ;;  %5260 = vst [vmem:[#allocation26_spill] sm:$0xff] %v4200_v11 }
 0x118   :  { %3323 = vmatpush3.bf16.msra.mxu0 %v4081_v20  ;;  %3295 = vmatpush3.bf16.msra.mxu1 %v4100_v18  ;;  %5257 = vst [vmem:[#allocation23_spill] sm:$0xff] %v4173_v14 }
 0x119   :  { %712 = vrot.lane.b32.xlu1 %v3893_v50, %s3687_s26  ;;  %v3989_v30 = vpop.permute.xlu0 %307  ;;  %3325 = vmatprep.subr.bf16.mxu0 %v4107_v16 }
 0x11a   :  { %604 = vrot.lane.b32.xlu0 %v3875_v45, %s3688_s13  ;;  %3297 = vmatprep.subr.bf16.mxu1 %v4124_v21 }
 0x11b   :  { %v4209_v20 = vpop.permute.xlu1 %629 }
 0x11c   :  { %3327 = vmatpush3.bf16.msra.mxu0 %v4107_v16  ;;  %3299 = vmatpush3.bf16.msra.mxu1 %v4124_v21  ;;  %5262 = vst [vmem:[#allocation28_spill] sm:$0xff] %v4209_v20 }
 0x11d   :  { %734 = vrot.lane.b32.xlu1 %v3893_v50, %s3689_s30  ;;  %v3997_v39 = vpop.permute.xlu0 %325  ;;  %3329 = vmatprep.subr.bf16.mxu0 %v4131_v13 }
 0x11e   :  { %626 = vrot.lane.b32.xlu0 %v3875_v45, %s3690_s27  ;;  %3301 = vmatprep.subr.bf16.mxu1 %v4150_v17 }
 0x11f   :  { %v4221_v48 = vpop.permute.xlu1 %633 }
 0x120   :  { %3331 = vmatpush3.bf16.msra.mxu0 %v4131_v13  ;;  %3303 = vmatpush3.bf16.msra.mxu1 %v4150_v17  ;;  %5263 = vst [vmem:[#allocation29_spill] sm:$0xff] %v4221_v48 }
 0x121   :  { %v4003_v41 = vpop.permute.xlu0 %545  ;;  %3333 = vmatprep.subr.bf16.mxu0 %v4157_v10  ;;  %3305 = vmatprep.subr.bf16.mxu1 %v4176_v7 }
 0x122   :  { %276 = vrot.lane.b32.xlu0 %v3893_v50, %s5159_s29  ;;  %5238 = vst [vmem:[#allocation4_spill] sm:$0xff] %v4003_v41  ;;  %s5349_s29 = smov 8  }
 0x124   :  { %3335 = vmatpush3.bf16.msra.mxu0 %v4157_v10  ;;  %3307 = vmatpush3.bf16.msra.mxu1 %v4176_v7  ;;  %v69_v10 = vld [vmem:[%s5126_s7 + $0x78] sm:$0xff] }
 0x125   :  { %v4011_v43 = vpop.permute.xlu0 %567  ;;  %3337 = vmatprep.subr.bf16.mxu0 %v4183_v6  ;;  %v4207_v16 = vpack.c.bf16 %v69_v10, %v68_v8  ;;  %3309 = vmatprep.subr.bf16.mxu1 %v4200_v11  ;;  %v4229_v8 = vpop.permute.xlu1 %651 }
 0x126   :  { %298 = vrot.lane.b32.xlu0 %v3893_v50, %s5154_s12  ;;  %5240 = vst [vmem:[#allocation6_spill] sm:$0xff] %v4011_v43  ;;  %5264 = vst [vmem:[#allocation30_spill] sm:$0xff] %v4229_v8 }
 0x127   :  { %5261 = vst [vmem:[#allocation27_spill] sm:$0xff] %v4207_v16 }
 0x128   :  { %3339 = vmatpush3.bf16.msra.mxu0 %v4183_v6  ;;  %3311 = vmatpush3.bf16.msra.mxu1 %v4200_v11 }
 0x129   :  { %3341 = vmatprep.subr.bf16.mxu0 %v4207_v16  ;;  %v4235_v27 = vpop.permute.xlu1 %655 }
 0x12a   :  { %320 = vrot.lane.b32.xlu0 %v3893_v50, %s5152_s14  ;;  %5267 = vst [vmem:[#allocation33_spill] sm:$0xff] %v4235_v27  ;;  %s5343_s14 = smov 15  }
 0x12c   :  { %3343 = vmatpush3.bf16.msra.mxu0 %v4207_v16 }
 0x12d   :  { %v4239_v7 = vpop.permute.xlu1 %673 }
 0x12e   :  { %342 = vrot.lane.b32.xlu0 %v3893_v50, %s5148_s15  ;;  %5269 = vst [vmem:[#allocation35_spill] sm:$0xff] %v4239_v7  ;;  %s5346_s15 = smov 127  }
 0x132   :  { %364 = vrot.lane.b32.xlu0 %v3893_v50, %s5146_s16  ;;  %s5350_s16 = smov 7  }
 0x136   :  { %386 = vrot.lane.b32.xlu0 %v3893_v50, %s5140_s17  ;;  %s3691_s17 = smov 114  }
 0x13a   :  { %408 = vrot.lane.b32.xlu0 %v3893_v50, %s5142_s18  ;;  %s3692_s18 = smov 113  }
 0x13e   :  { %430 = vrot.lane.b32.xlu0 %v3893_v50, %s5144_s19  ;;  %s5352_s19 = smov 6  }
 0x142   :  { %452 = vrot.lane.b32.xlu0 %v3893_v50, %s5150_s20  ;;  %s5353_s20 = smov 2  }
 0x146   :  { %648 = vrot.lane.b32.xlu0 %v3875_v45, %s3691_s17 }
 0x14a   :  { %670 = vrot.lane.b32.xlu0 %v3875_v45, %s3692_s18 }
 0x14e   :  { %692 = vrot.lane.b32.xlu0 %v3875_v45, %s3686_s25 }
 0x150   :  { %v4034_v26 = vpop.permute.xlu0 %256  ;;  %v213_v18 = vpop.permute.xlu1 %212 }
 0x152   :  { %514 = vrot.lane.b32.xlu0 %v3893_v50, %s3681_s21 }
 0x154   :  { %v4060_v22 = vpop.permute.xlu0 %278  ;;  %v235_v58 = vpop.permute.xlu1 %234 }
 0x155   :  { %v245_v7 = vmul.f32 %v3975_v3, %v235_v58  ;;  %v2850_v3 = vld [vmem:[%s5127_s10 + $0x2] ss:$0 sm:$0xff]  ;;  %v289_v40 = vmul.f32 %v3867_v35, %v4060_v22  ;;  %v2852_v22 = vld [vmem:[%s5127_s10 + $0x4] ss:$0 sm:$0xff] }
 0x156   :  { %536 = vrot.lane.b32.xlu0 %v3893_v50, %s3682_s22 }
 0x158   :  { %v4084_v19 = vpop.permute.xlu0 %300  ;;  %v4247_v48 = vpop.permute.xlu1 %494 }
 0x15a   :  { %558 = vrot.lane.b32.xlu0 %v3893_v50, %s3684_s23 }
 0x15c   :  { %v4110_v15 = vpop.permute.xlu0 %322  ;;  %v233_v14 = vpop.permute.xlu1 %232 }
 0x15e   :  { %580 = vrot.lane.b32.xlu0 %v3893_v50, %s3685_s24 }
 0x160   :  { %v4136_v12 = vpop.permute.xlu0 %344  ;;  %v255_v25 = vpop.permute.xlu1 %254 }
 0x162   :  { %602 = vrot.lane.b32.xlu0 %v3893_v50, %s3688_s13 }
 0x164   :  { %v4160_v0 = vpop.permute.xlu0 %366 }
 0x166   :  { %624 = vrot.lane.b32.xlu0 %v3893_v50, %s3690_s27 }
 0x168   :  { %v4186_v13 = vpop.permute.xlu0 %388 }
 0x16a   :  { %646 = vrot.lane.b32.xlu0 %v3893_v50, %s3691_s17 }
 0x16c   :  { %v4212_v24 = vpop.permute.xlu0 %410 }
 0x16e   :  { %668 = vrot.lane.b32.xlu0 %v3893_v50, %s3692_s18 }
 0x170   :  { %v4219_v46 = vpop.permute.xlu0 %432 }
 0x171   :  { %v4249_v43 = vpop.permute.xlu1 %677 }
 0x172   :  { %714 = vrot.lane.b32.xlu0 %v3875_v45, %s3687_s26  ;;  %5273 = vst [vmem:[#allocation39_spill] sm:$0xff] %v4249_v43 }
 0x174   :  { %v4225_v10 = vpop.permute.xlu0 %454 }
 0x176   :  { %736 = vrot.lane.b32.xlu0 %v3875_v45, %s3689_s30  ;;  %v4259_v41 = vpop.permute.xlu1 %695 }
 0x177   :  { %5274 = vst [vmem:[#allocation40_spill] sm:$0xff] %v4259_v41 }
 0x178   :  { %v4231_v6 = vpop.permute.xlu0 %516 }
 0x179   :  { %5265 = vst [vmem:[#allocation31_spill] sm:$0xff] %v4231_v6 }
 0x17c   :  { %v4233_v16 = vpop.permute.xlu0 %538 }
 0x17d   :  { %5266 = vst [vmem:[#allocation32_spill] sm:$0xff] %v4233_v16  ;;  %v267_v16 = vmul.f32 %v3865_v34, %v4034_v26  ;;  %v244_v26 = vmul.f32 %v3859_v31, %v233_v14  ;;  %v4275_v34 = vpop.permute.xlu1 %699  ;;  %v333_v31 = vmul.f32 %v3871_v38, %v4110_v15 }
 0x180   :  { %v4237_v11 = vpop.permute.xlu0 %560 }
 0x181   :  { %5268 = vst [vmem:[#allocation34_spill] sm:$0xff] %v4237_v11  ;;  %v2848_v11 = vld [vmem:[%s5127_s10] ss:$0 sm:$0xff]  ;;  %v4289_v14 = vpop.permute.xlu1 %717 }
 0x184   :  { %v4241_v17 = vpop.permute.xlu0 %582 }
 0x185   :  { %5270 = vst [vmem:[#allocation36_spill] sm:$0xff] %v4241_v17  ;;  %v223_v17 = vmul.f32 %v3861_v32, %v213_v18  ;;  %v273_v32 = vmul.f32 %v2850_v3, %v267_v16 }
 0x187   :  { %v229_v43 = vmul.f32 %v2848_v11, %v223_v17 }
 0x188   :  { %v211_v21 = vpop.permute.xlu0 %210 }
 0x189   :  { %v222_v18 = vmul.f32 %v3969_v1, %v211_v21  ;;  %v266_v1 = vmul.f32 %v3863_v33, %v255_v25 }
 0x18b   :  { %v228_v41 = vmul.f32 %v2848_v11, %v222_v18  ;;  %v272_v15 = vmul.f32 %v2850_v3, %v266_v1  ;;  %v399_v3 = vmul.f32 %v3916_v54, %v4186_v13  ;;  %v2857_v13 = vld [vmem:[%s5127_s10 + $0x9] ss:$0 sm:$0xff] }
 0x18c   :  { %v4243_v29 = vpop.permute.xlu0 %604 }
 0x18d   :  { %5271 = vst [vmem:[#allocation37_spill] sm:$0xff] %v4243_v29  ;;  %v2849_v29 = vld [vmem:[%s5127_s10 + $0x1] ss:$0 sm:$0xff] }
 0x18e   :  { %v251_v55 = vmul.f32 %v2849_v29, %v245_v7  ;;  %v2851_v7 = vld [vmem:[%s5127_s10 + $0x3] ss:$0 sm:$0xff]  ;;  %v250_v35 = vmul.f32 %v2849_v29, %v244_v26  ;;  %v355_v29 = vmul.f32 %v3885_v47, %v4136_v12 }
 0x18f   :  { %v295_v37 = vmul.f32 %v2851_v7, %v289_v40  ;;  %v2853_v40 = vld [vmem:[%s5127_s10 + $0x5] ss:$0 sm:$0xff] }
 0x190   :  { %v4245_v53 = vpop.permute.xlu0 %626  ;;  %v253_v58 = vadd.f32 %v251_v55, %v229_v43  ;;  %v311_v55 = vmul.f32 %v3989_v30, %v4084_v19  ;;  %v252_v19 = vadd.f32 %v250_v35, %v228_v41  ;;  %v377_v41 = vmul.f32 %v3903_v51, %v4160_v0 }
 0x191   :  { %5272 = vst [vmem:[#allocation38_spill] sm:$0xff] %v4245_v53  ;;  %v443_v35 = vmul.f32 %v3945_v60, %v4219_v46 }
 0x192   :  { %v275_v17 = vadd.f32 %v273_v32, %v253_v58  ;;  %v317_v11 = vmul.f32 %v2852_v22, %v311_v55  ;;  %v274_v12 = vadd.f32 %v272_v15, %v252_v19 }
 0x194   :  { %v277_v8 = vpop.permute.xlu0 %276  ;;  %v297_v21 = vadd.f32 %v295_v37, %v275_v17 }
 0x195   :  { %v288_v43 = vmul.f32 %v3983_v5, %v277_v8  ;;  %v2854_v5 = vld [vmem:[%s5127_s10 + $0x6] ss:$0 sm:$0xff]  ;;  %v339_v8 = vmul.f32 %v2853_v40, %v333_v31 }
 0x196   :  { %v319_v25 = vadd.f32 %v317_v11, %v297_v21  ;;  %v361_v58 = vmul.f32 %v2854_v5, %v355_v29 }
 0x197   :  { %v294_v38 = vmul.f32 %v2851_v7, %v288_v43 }
 0x198   :  { %v299_v20 = vpop.permute.xlu0 %298  ;;  %v341_v7 = vadd.f32 %v339_v8, %v319_v25 }
 0x199   :  { %v310_v30 = vmul.f32 %v3869_v36, %v299_v20  ;;  %v2855_v20 = vld [vmem:[%s5127_s10 + $0x7] ss:$0 sm:$0xff]  ;;  %v296_v0 = vadd.f32 %v294_v38, %v274_v12  ;;  %v483_v38 = vmul.f32 %v3973_v2, %v3875_v45  ;;  %v2861_v2 = vld [vmem:[%s5127_s10 + $0xd] ss:$0 sm:$0xff] }
 0x19a   :  { %v383_v26 = vmul.f32 %v2855_v20, %v377_v41  ;;  %v363_v55 = vadd.f32 %v361_v58, %v341_v7  ;;  %v5277_v7 = vld [vmem:[#allocation3_spill] sm:$0xff] }
 0x19b   :  { %v316_v36 = vmul.f32 %v2852_v22, %v310_v30 }
 0x19c   :  { %v321_v9 = vpop.permute.xlu0 %320  ;;  %v385_v43 = vadd.f32 %v383_v26, %v363_v55  ;;  %v5280_v55 = vld [vmem:[#allocation4_spill] sm:$0xff] }
 0x19d   :  { %v332_v37 = vmul.f32 %v3997_v39, %v321_v9  ;;  %v2856_v9 = vld [vmem:[%s5127_s10 + $0x8] ss:$0 sm:$0xff]  ;;  %v493_v39 = vpop.permute.xlu1 %492 }
 0x19e   :  { %v405_v22 = vmul.f32 %v2856_v9, %v399_v3 }
 0x19f   :  { %v338_v51 = vmul.f32 %v2853_v40, %v332_v37 }
 0x1a0   :  { %v343_v27 = vpop.permute.xlu0 %342  ;;  %v407_v19 = vadd.f32 %v405_v22, %v385_v43  ;;  %v5283_v43 = vld [vmem:[#allocation6_spill] sm:$0xff] }
 0x1a1   :  { %v354_v47 = vmul.f32 %v3873_v44, %v343_v27  ;;  %v421_v27 = vmul.f32 %v3931_v57, %v4212_v24  ;;  %v318_v44 = vadd.f32 %v316_v36, %v296_v0  ;;  %v4333_v60 = vpop.permute.xlu1 %721  ;;  %v505_v36 = vmul.f32 %v3985_v28, %v4247_v48  ;;  %v2862_v28 = vld [vmem:[%s5127_s10 + $0xe] ss:$0 sm:$0xff] }
 0x1a3   :  { %v360_v54 = vmul.f32 %v2854_v5, %v354_v47  ;;  %v340_v24 = vadd.f32 %v338_v51, %v318_v44  ;;  %v427_v21 = vmul.f32 %v2857_v13, %v421_v27  ;;  %v5275_v51 = vld [vmem:[#allocation2_spill] sm:$0xff] }
 0x1a4   :  { %v365_v23 = vpop.permute.xlu0 %364 }
 0x1a5   :  { %v376_v32 = vmul.f32 %v3891_v49, %v365_v23  ;;  %v2858_v23 = vld [vmem:[%s5127_s10 + $0xa] ss:$0 sm:$0xff]  ;;  %v362_v46 = vadd.f32 %v360_v54, %v340_v24  ;;  %v429_v5 = vadd.f32 %v427_v21, %v407_v19  ;;  %v4340_v8 = vpop.permute.xlu1 %739  ;;  %v5284_v19 = vld [vmem:[#allocation12_spill] sm:$0xff] }
 0x1a6   :  { %v449_v30 = vmul.f32 %v2858_v23, %v443_v35 }
 0x1a7   :  { %v382_v49 = vmul.f32 %v2855_v20, %v376_v32  ;;  %v2860_v20 = vld [vmem:[%s5127_s10 + $0xc] ss:$0 sm:$0xff] }
 0x1a8   :  { %v387_v53 = vpop.permute.xlu0 %386  ;;  %v451_v37 = vadd.f32 %v449_v30, %v429_v5  ;;  %v489_v12 = vmul.f32 %v2860_v20, %v483_v38  ;;  %v5287_v38 = vld [vmem:[#allocation20_spill] sm:$0xff] }
 0x1a9   :  { %v398_v17 = vmul.f32 %v3908_v52, %v387_v53  ;;  %v465_v52 = vmul.f32 %v3961_v62, %v4225_v10  ;;  %v2859_v53 = vld [vmem:[%s5127_s10 + $0xb] ss:$0 sm:$0xff]  ;;  %v4353_v0 = vpop.permute.xlu1 %743 }
 0x1ab   :  { %v404_v31 = vmul.f32 %v2856_v9, %v398_v17  ;;  %v471_v62 = vmul.f32 %v2859_v53, %v465_v52  ;;  %v504_v9 = vmul.f32 %v3979_v4, %v493_v39  ;;  %v5279_v17 = vld [vmem:[#allocation32_spill] sm:$0xff]  ;;  %v2863_v39 = vld [vmem:[%s5127_s10 + $0xf] ss:$0 sm:$0xff] }
 0x1ac   :  { %v409_v42 = vpop.permute.xlu0 %408  ;;  %v549_v4 = vmul.f32 %v5280_v55, %v5279_v17 }
 0x1ad   :  { %v420_v57 = vmul.f32 %v3923_v56, %v409_v42  ;;  %v384_v56 = vadd.f32 %v382_v49, %v362_v46  ;;  %v510_v22 = vmul.f32 %v2861_v2, %v504_v9  ;;  %v691_v46 = vpop.permute.xlu1 %690 }
 0x1af   :  { %v426_v42 = vmul.f32 %v2857_v13, %v420_v57  ;;  %v406_v10 = vadd.f32 %v404_v31, %v384_v56  ;;  %v5278_v13 = vld [vmem:[#allocation5_spill] sm:$0xff]  ;;  %v5282_v57 = vld [vmem:[#allocation34_spill] sm:$0xff]  ;;  %v555_v56 = vmul.f32 %v2863_v39, %v549_v4 }
 0x1b0   :  { %v4269_v6 = vpop.permute.xlu0 %430  ;;  %v571_v21 = vmul.f32 %v5283_v43, %v5282_v57  ;;  %v5296_v57 = vld [vmem:[#allocation40_spill] sm:$0xff] }
 0x1b1   :  { %v442_v40 = vmul.f32 %v3937_v59, %v4269_v6  ;;  %v428_v41 = vadd.f32 %v426_v42, %v406_v10  ;;  %v473_v59 = vadd.f32 %v471_v62, %v451_v37  ;;  %v5285_v42 = vld [vmem:[#allocation36_spill] sm:$0xff]  ;;  %v702_v43 = vmul.f32 %v5296_v57, %v691_v46 }
 0x1b2   :  { %v2865_v62 = vld [vmem:[%s5127_s10 + $0x11] ss:$0 sm:$0xff] }
 0x1b3   :  { %v448_v15 = vmul.f32 %v2858_v23, %v442_v40  ;;  %v491_v58 = vadd.f32 %v489_v12, %v473_v59  ;;  %v5281_v23 = vld [vmem:[#allocation7_spill] sm:$0xff] }
 0x1b4   :  { %v453_v16 = vpop.permute.xlu0 %452 }
 0x1b5   :  { %v464_v29 = vmul.f32 %v3951_v61, %v453_v16  ;;  %v482_v61 = vmul.f32 %v3965_v63, %v3893_v50  ;;  %v450_v16 = vadd.f32 %v448_v15, %v428_v41  ;;  %v511_v50 = vmul.f32 %v2861_v2, %v505_v36  ;;  %v5276_v63 = vld [vmem:[#allocation31_spill] sm:$0xff]  ;;  %v5288_v41 = vld [vmem:[#allocation37_spill] sm:$0xff]  ;;  %v5290_v36 = vld [vmem:[#allocation28_spill] sm:$0xff] }
 0x1b6   :  { %v527_v26 = vmul.f32 %v5277_v7, %v5276_v63 }
 0x1b7   :  { %v470_v6 = vmul.f32 %v2859_v53, %v464_v29  ;;  %v488_v3 = vmul.f32 %v2860_v20, %v482_v61  ;;  %v513_v54 = vadd.f32 %v511_v50, %v491_v58  ;;  %v2864_v53 = vld [vmem:[%s5127_s10 + $0x10] ss:$0 sm:$0xff]  ;;  %v5286_v29 = vld [vmem:[#allocation15_spill] sm:$0xff]  ;;  %v2866_v61 = vld [vmem:[%s5127_s10 + $0x12] ss:$0 sm:$0xff] }
 0x1b8   :  { %v4294_v33 = vpop.permute.xlu0 %648  ;;  %v533_v49 = vmul.f32 %v2862_v28, %v527_v26  ;;  %v593_v5 = vmul.f32 %v5286_v29, %v5285_v42  ;;  %v5291_v58 = vld [vmem:[#allocation38_spill] sm:$0xff] }
 0x1b9   :  { %v472_v47 = vadd.f32 %v470_v6, %v450_v16  ;;  %v5289_v6 = vld [vmem:[#allocation23_spill] sm:$0xff] }
 0x1ba   :  { %v615_v59 = vmul.f32 %v5289_v6, %v5288_v41 }
 0x1bb   :  { %v490_v48 = vadd.f32 %v488_v3, %v472_v47  ;;  %v599_v47 = vmul.f32 %v2865_v62, %v593_v5  ;;  %v5292_v3 = vld [vmem:[#allocation29_spill] sm:$0xff] }
 0x1bc   :  { %v4308_v18 = vpop.permute.xlu0 %670  ;;  %v637_v9 = vmul.f32 %v5292_v3, %v5291_v58  ;;  %v621_v26 = vmul.f32 %v2866_v61, %v615_v59  ;;  %v4436_v58 = vld [vmem:[%s5122_s5] sm:$0xff]  ;;  %v3696_v3 = vmov 29  }
 0x1bd   :  { %v512_v31 = vadd.f32 %v510_v22, %v490_v48  ;;  %v5295_v22 = vld [vmem:[#allocation39_spill] sm:$0xff]  ;;  %3534 = vset.pattern.permute.xlu1 %v3696_v3 }
 0x1be   :  { %910 = vperm.xlu1 %3534, %v4436_v58  }
 0x1c0   :  { %v4322_v1 = vpop.permute.xlu0 %692 }
 0x1c4   :  { %v515_v11 = vpop.permute.xlu0 %514 }
 0x1c5   :  { %v526_v32 = vmul.f32 %v5275_v51, %v515_v11  ;;  %v535_v11 = vadd.f32 %v533_v49, %v513_v54  ;;  %v2867_v51 = vld [vmem:[%s5127_s10 + $0x13] ss:$0 sm:$0xff]  ;;  %v5294_v54 = vld [vmem:[#allocation30_spill] sm:$0xff] }
 0x1c6   :  { %v643_v4 = vmul.f32 %v2867_v51, %v637_v9 }
 0x1c7   :  { %v532_v35 = vmul.f32 %v2862_v28, %v526_v32  ;;  %v557_v2 = vadd.f32 %v555_v56, %v535_v11  ;;  %v713_v32 = vpop.permute.xlu1 %712  ;;  %v5293_v28 = vld [vmem:[#allocation33_spill] sm:$0xff] }
 0x1c8   :  { %v537_v25 = vpop.permute.xlu0 %536  ;;  %v659_v48 = vmul.f32 %v5293_v28, %v4294_v33  ;;  %v2869_v33 = vld [vmem:[%s5127_s10 + $0x15] ss:$0 sm:$0xff]  ;;  %v724_v46 = vmul.f32 %v4289_v14, %v713_v32  ;;  %v2872_v14 = vld [vmem:[%s5127_s10 + $0x18] ss:$0 sm:$0xff] }
 0x1c9   :  { %v548_v44 = vmul.f32 %v5278_v13, %v537_v25  ;;  %v534_v10 = vadd.f32 %v532_v35, %v512_v31  ;;  %v577_v25 = vmul.f32 %v2864_v53, %v571_v21  ;;  %v681_v35 = vmul.f32 %v5295_v22, %v4308_v18  ;;  %v1069_v28 = vld [vmem:[%s5129_s3 + $0x10] sm:$0xff] }
 0x1cb   :  { %v554_v40 = vmul.f32 %v2863_v39, %v548_v44  ;;  %v579_v7 = vadd.f32 %v577_v25, %v557_v2  ;;  %v2868_v39 = vld [vmem:[%s5127_s10 + $0x14] ss:$0 sm:$0xff]  ;;  %v687_v56 = vmul.f32 %v2869_v33, %v681_v35 }
 0x1cc   :  { %v559_v45 = vpop.permute.xlu0 %558  ;;  %v665_v31 = vmul.f32 %v2868_v39, %v659_v48  ;;  %v3697_v48 = vmov 27  }
 0x1cd   :  { %v570_v24 = vmul.f32 %v5281_v23, %v559_v45  ;;  %v556_v16 = vadd.f32 %v554_v40, %v534_v10  ;;  %v601_v55 = vadd.f32 %v599_v47, %v579_v7  ;;  %v703_v40 = vmul.f32 %v4275_v34, %v4322_v1  ;;  %3536 = vset.pattern.permute.xlu1 %v3697_v48 }
 0x1ce   :  { %v5227_v47 = vmov 0.0|0.0   ;;  %3535 = vset.pattern.permute.xlu0 %v3697_v48 }
 0x1cf   :  { %v576_v15 = vmul.f32 %v2864_v53, %v570_v24  ;;  %v623_v49 = vadd.f32 %v621_v26, %v601_v55  ;;  %v735_v53 = vpop.permute.xlu1 %734  ;;  %3344 = vmatprep.subr.bf16.mxu1 %v5227_v47  ;;  %3347 = vmatprep.subr.bf16.mxu0 %v5227_v47  ;;  %v906_v26 = vld [vmem:[%s5128_s2] sm:$0xff] }
 0x1d0   :  { %v581_v27 = vpop.permute.xlu0 %580  ;;  %v746_v10 = vmul.f32 %v4340_v8, %v735_v53 }
 0x1d1   :  { %v592_v30 = vmul.f32 %v5284_v19, %v581_v27  ;;  %v578_v50 = vadd.f32 %v576_v15, %v556_v16  ;;  %v5297_v19 = vld [vmem:[#allocation35_spill] sm:$0xff]  ;;  %v645_v11 = vadd.f32 %v643_v4, %v623_v49 }
 0x1d3   :  { %v598_v12 = vmul.f32 %v2865_v62, %v592_v30  ;;  %v2871_v62 = vld [vmem:[%s5127_s10 + $0x17] ss:$0 sm:$0xff] }
 0x1d4   :  { %v603_v52 = vpop.permute.xlu0 %602  ;;  %v730_v25 = vmul.f32 %v2871_v62, %v724_v46  ;;  %v71_v46 = vld [vmem:[%s5130_s8 + $0x8] sm:$0xff] }
 0x1d5   :  { %v614_v37 = vmul.f32 %v5287_v38, %v603_v52  ;;  %v600_v13 = vadd.f32 %v598_v12, %v578_v50  ;;  %v2870_v52 = vld [vmem:[%s5127_s10 + $0x16] ss:$0 sm:$0xff]  ;;  %v667_v38 = vadd.f32 %v665_v31, %v645_v11  ;;  %v70_v11 = vld [vmem:[%s5130_s8] sm:$0xff]  ;;  %s5344_s8 = smov 17  }
 0x1d6   :  { %v708_v5 = vmul.f32 %v2870_v52, %v702_v43 }
 0x1d7   :  { %v620_v63 = vmul.f32 %v2866_v61, %v614_v37  ;;  %v709_v37 = vmul.f32 %v2870_v52, %v703_v40  ;;  %v689_v41 = vadd.f32 %v687_v56, %v667_v38  ;;  %v752_v61 = vmul.f32 %v2872_v14, %v746_v10  ;;  %v72_v56 = vld [vmem:[%s5131_s9] sm:$0xff] }
 0x1d8   :  { %v625_v20 = vpop.permute.xlu0 %624 }
 0x1d9   :  { %v636_v45 = vmul.f32 %v5290_v36, %v625_v20  ;;  %v622_v23 = vadd.f32 %v620_v63, %v600_v13  ;;  %v711_v16 = vadd.f32 %v709_v37, %v689_v41  ;;  %v3614_v13 = vld [vmem:[%s5122_s5 + $0x8] sm:$0xff] }
 0x1da   :  { %1076 = vperm.xlu1 %3536, %v3614_v13  }
 0x1db   :  { %v642_v44 = vmul.f32 %v2867_v51, %v636_v45 }
 0x1dc   :  { %v647_v27 = vpop.permute.xlu0 %646 }
 0x1dd   :  { %v658_v17 = vmul.f32 %v5294_v54, %v647_v27  ;;  %v644_v18 = vadd.f32 %v642_v44, %v622_v23  ;;  %v1067_v27 = vld [vmem:[%s5129_s3] sm:$0xff]  ;;  %v3698_v54 = vmov 28  }
 0x1de   :  { %v3615_v44 = vld [vmem:[%s5122_s5] sm:$0xff]  ;;  %3537 = vset.pattern.permute.xlu1 %v3698_v54 }
 0x1df   :  { %v664_v24 = vmul.f32 %v2868_v39, %v658_v17  ;;  %1072 = vperm.xlu0 %3535, %v3615_v44   ;;  %1173 = vperm.xlu1 %3537, %v3615_v44   ;;  %v5298_v17 = vmov 25   ;;  %v5230_v44 = vmov 30  }
 0x1e0   :  { %v669_v21 = vpop.permute.xlu0 %668 }
 0x1e1   :  { %v680_v30 = vmul.f32 %v5297_v19, %v669_v21  ;;  %v666_v42 = vadd.f32 %v664_v24, %v644_v18  ;;  %v1068_v19 = vld [vmem:[%s5129_s3 + $0x8] sm:$0xff] }
 0x1e3   :  { %v686_v29 = vmul.f32 %v2869_v33, %v680_v30  ;;  %3538 = vset.pattern.permute.xlu0 %v3698_v54  ;;  %v1070_v30 = vld [vmem:[%s5129_s3 + $0x18] sm:$0xff]  ;;  %3539 = vset.pattern.permute.xlu1 %v5230_v44 }
 0x1e4   :  { %v715_v15 = vpop.permute.xlu0 %714  ;;  %1177 = vperm.xlu0 %3538, %v3614_v13   ;;  %v4502_v13 = vld [vmem:[%s5122_s5 + $0x18] sm:$0xff]  ;;  %1515 = vperm.xlu1 %3539, %v4436_v58   ;;  %v5304_v58 = vmov 3  }
 0x1e5   :  { %v688_v34 = vadd.f32 %v686_v29, %v666_v42  ;;  %v725_v1 = vmul.f32 %v4333_v60, %v715_v15  ;;  %v4481_v42 = vpack.c.bf16 %v71_v46, %v70_v11  ;;  %v73_v29 = vld [vmem:[%s5131_s9 + $0x8] sm:$0xff]  ;;  %s5345_s9 = smov 14  }
 0x1e7   :  { %v710_v6 = vadd.f32 %v708_v5, %v688_v34  ;;  %v731_v59 = vmul.f32 %v2871_v62, %v725_v1  ;;  %5299 = vst [vmem:[#allocation2_spill] sm:$0xff] %v4481_v42  ;;  %v4486_v5 = vpack.c.bf16 %v73_v29, %v72_v56 }
 0x1e8   :  { %v737_v20 = vpop.permute.xlu0 %736  ;;  %3541 = vset.pattern.permute.xlu0 %v5298_v17  ;;  %3540 = vset.pattern.permute.xlu1 %v5298_v17  ;;  %v5305_v17 = vmov 4  }
 0x1e9   :  { %v747_v12 = vmul.f32 %v4353_v0, %v737_v20  ;;  %v732_v8 = vadd.f32 %v730_v25, %v710_v6  ;;  %v733_v36 = vadd.f32 %v731_v59, %v711_v16  ;;  %v5228_v0 = vmov 0.0   ;;  %5300 = vst [vmem:[#allocation31_spill] sm:$0xff] %v4486_v5  ;;  %1532 = vperm.xlu0 %3541, %v4502_v13  }
 0x1eb   :  { %v753_v45 = vmul.f32 %v2872_v14, %v747_v12  ;;  %v4419_v2 = vadd.f32 %v752_v61, %v732_v8 }
 0x1ed   :  { %3077 = vmatprep.mubr.f32.mxu1 %v4419_v2  ;;  %3112 = vmatprep.mubr.f32.mxu0 %v4419_v2  ;;  %v4423_v60 = vadd.f32 %v753_v45, %v733_v36 }
 0x1ef   :  { %3078 = vmatmul.mubr.f32.vlgmr.msra.gmra.mrb[0].mxu1 %v4423_v60  ;;  %3113 = vmatmul.mubr.f32.vlgmr.msra.gmra.mrb[2].mxu0 %v4423_v60 }
 0x1f0   :  { %3119 = vmatprep.mubr.msk.f32.mxu1 %vm3694_vm3, %v5228_v0  ;;  %3126 = vmatprep.mubr.msk.f32.mxu0 %vm3694_vm3, %v5228_v0 }
 0x23d   :  { %v911_v55 = vpop.permute.xlu1 %910 }
 0x259   :  { %v1077_v10 = vpop.permute.xlu1 %1076 }
 0x25e   :  { %v1073_v62 = vpop.permute.xlu0 %1072  ;;  %v1174_v38 = vpop.permute.xlu1 %1173 }
 0x263   :  { %v1178_v15 = vpop.permute.xlu0 %1177 }
 0x2c2   :  { %v3079_v9 = vpop.f32.mrb[0].mxu1  ;;  %v3114_v51 = vpop.f32.mrb[2].mxu0 }
 0x2c3   :  { %v822_v32 = vpop.f32.mrb[1].mxu1  ;;  %v897_v50 = vpop.f32.mrb[3].mxu0 }
 0x2c4   :  { %v3345_v63 = vpack.c.bf16 %v3079_v9, %v822_v32  ;;  %v3348_v7 = vpack.c.bf16 %v3114_v51, %v897_v50 }
 0x2c6   :  { %3346 = vmatpush3.bf16.msra.mxu1 %v3345_v63  ;;  %3349 = vmatpush3.bf16.msra.mxu0 %v3348_v7 }
 0x2c9   :  { %3120 = vmatmul.mubr.msk.f32.vlgmr.msra.gmra.mrb[2].mxu1 %vm913_vm4, %v906_v26  ;;  %3127 = vmatmul.mubr.msk.f32.vlgmr.msra.gmra.mrb[4].mxu0 %vm913_vm4, %v906_v26 }
 0x2ca   :  { %3131 = vmatprep.mubr.msk.f32.mxu1 %vm114_vm0, %v1067_v27  ;;  %3136 = vmatprep.mubr.msk.f32.mxu0 %vm114_vm0, %v1069_v28 }
 0x39c   :  { %v983_v4 = vpop.f32.mrb[2].mxu1  ;;  %v1053_v39 = vpop.f32.mrb[4].mxu0 }
 0x39d   :  { %v984_v22 = vadd.f32 %v983_v4, %v911_v55  ;;  %v1054_v35 = vadd.f32 %v1053_v39, %v911_v55  ;;  %v3121_v23 = vpop.f32.mrb[3].mxu1  ;;  %v3128_v24 = vpop.f32.mrb[5].mxu0  ;;  %v4510_v55 = vld [vmem:[%s5122_s5 + $0x10] sm:$0xff]  ;;  %v5301_v4 = vmov 0   ;;  %v5302_v39 = vmov 1   ;;  %s5348_s5 = smov 9  }
 0x39e   :  { %3543 = vset.pattern.permute.xlu0 %v5301_v4  ;;  %1527 = vperm.xlu1 %3540, %v4510_v55   ;;  %v5307_v23 = vmov 2   ;;  %v5308_v24 = vmov 15  }
 0x39f   :  { %v1057_v49 = vadd.f32 3.0, %v984_v22  ;;  %v1062_v57 = vadd.f32 3.0, %v1054_v35  ;;  %1635 = vperm.xlu0 %3543, %v4510_v55  }
 0x3a1   :  { %v1058_v43 = vmax.f32 %v1057_v49, 0.0  ;;  %v1063_v33 = vmax.f32 %v1062_v57, 0.0  ;;  %v5309_v49 = vmov 16   ;;  %v5310_v57 = vmov 6  }
 0x3a3   :  { %v1059_v21 = vmin.f32 %v1058_v43, 6.0  ;;  %v1064_v52 = vmin.f32 %v1063_v33, 6.0  ;;  %3546 = vset.pattern.permute.xlu0 %v5302_v39  ;;  %v5311_v43 = vmov 7   ;;  %v5312_v33 = vmov 8  }
 0x3a4   :  { %1657 = vperm.xlu0 %3546, %v4502_v13  }
 0x3a5   :  { %v1060_v53 = vmul.f32 %v1059_v21, %v984_v22  ;;  %v1065_v31 = vmul.f32 %v1064_v52, %v1054_v35  ;;  %v5303_v22 = vmov 26   ;;  %v5306_v35 = vmov 5  }
 0x3a6   :  { %3542 = vset.pattern.permute.xlu1 %v5303_v22  ;;  %v5313_v21 = vmov 9   ;;  %v5314_v52 = vmov 10   ;;  %v5340_v22 = vld [vmem:[#allocation27_spill] sm:$0xff] }
 0x3a7   :  { %v1061_v40 = vmul.f32 0.16666667, %v1060_v53  ;;  %v1066_v18 = vmul.f32 0.16666667, %v1065_v31  ;;  %1619 = vperm.xlu1 %3542, %v4510_v55   ;;  %v5315_v53 = vmov 11   ;;  %v5316_v31 = vmov 12  }
 0x3a8   :  { %3548 = vset.pattern.permute.xlu0 %v5304_v58 }
 0x3a9   :  { %3129 = vmatprep.subr.mxu1 %v1061_v40  ;;  %3134 = vmatprep.subr.mxu0 %v1066_v18 }
 0x3aa   :  { %3130 = vmatpush3.msra.mxu1 %v1061_v40  ;;  %3135 = vmatpush3.msra.mxu0 %v1066_v18  ;;  %v5317_v18 = vmov 13  }
 0x3ab   :  { %3132 = vmatmul.mubr.msk.f32.vlgmr.msra.gmra.mrb[4].mxu1 %vm114_vm0, %v1068_v19  ;;  %3137 = vmatmul.mubr.msk.f32.vlgmr.msra.gmra.mrb[6].mxu0 %vm114_vm0, %v1070_v30 }
 0x3ac   :  { %3351 = vmatprep.subr.bf16.mxu1 %v4481_v42  ;;  %3355 = vmatprep.subr.bf16.mxu0 %v4486_v5 }
 0x3ad   :  { %3353 = vmatpush3.bf16.msra.mxu1 %v4481_v42  ;;  %3357 = vmatpush3.bf16.msra.mxu0 %v4486_v5 }
 0x3ae   :  { %3358 = vmatprep.subr.bf16.mxu1 %v5227_v47  ;;  %1623 = vperm.xlu1 %3542, %v4502_v13  }
 0x3af   :  { %1689 = vperm.xlu0 %3548, %v4510_v55  }
 0x3b2   :  { %3544 = vset.pattern.permute.xlu1 %v5302_v39  ;;  %v5339_v39 = vld [vmem:[#allocation25_spill] sm:$0xff] }
 0x3b3   :  { %3551 = vset.pattern.permute.xlu0 %v5305_v17  ;;  %1653 = vperm.xlu1 %3544, %v4510_v55  }
 0x3b4   :  { %1711 = vperm.xlu0 %3551, %v4502_v13  }
 0x3b7   :  { %3545 = vset.pattern.permute.xlu1 %v5301_v4  ;;  %v5338_v4 = vld [vmem:[#allocation22_spill] sm:$0xff] }
 0x3b8   :  { %3552 = vset.pattern.permute.xlu0 %v5306_v35  ;;  %1639 = vperm.xlu1 %3545, %v4502_v13  }
 0x3b9   :  { %1725 = vperm.xlu0 %3552, %v4510_v55  }
 0x3bc   :  { %3547 = vset.pattern.permute.xlu1 %v5307_v23 }
 0x3bd   :  { %3564 = vset.pattern.permute.xlu0 %v5308_v24  ;;  %1671 = vperm.xlu1 %3547, %v4510_v55  }
 0x3be   :  { %1905 = vperm.xlu0 %3564, %v4502_v13  }
 0x3c1   :  { %1675 = vperm.xlu1 %3547, %v4502_v13  }
 0x3c2   :  { %3566 = vset.pattern.permute.xlu0 %v5309_v49 }
 0x3c3   :  { %1923 = vperm.xlu0 %3566, %v4502_v13  }
 0x3c5   :  { %3549 = vset.pattern.permute.xlu1 %v5304_v58 }
 0x3c6   :  { %1693 = vperm.xlu1 %3549, %v4502_v13  }
 0x3c7   :  { %3576 = vset.pattern.permute.xlu0 %v3697_v48 }
 0x3ca   :  { %3550 = vset.pattern.permute.xlu1 %v5305_v17 }
 0x3cb   :  { %1707 = vperm.xlu1 %3550, %v4510_v55  }
 0x3cf   :  { %3553 = vset.pattern.permute.xlu1 %v5306_v35 }
 0x3d0   :  { %1729 = vperm.xlu1 %3553, %v4502_v13  }
 0x3d4   :  { %3554 = vset.pattern.permute.xlu1 %v5310_v57 }
 0x3d5   :  { %1743 = vperm.xlu1 %3554, %v4510_v55  }
 0x3d9   :  { %1747 = vperm.xlu1 %3554, %v4502_v13  }
 0x3dd   :  { %3555 = vset.pattern.permute.xlu1 %v5311_v43 }
 0x3de   :  { %1761 = vperm.xlu1 %3555, %v4510_v55  }
 0x3e2   :  { %1765 = vperm.xlu1 %3555, %v4502_v13  }
 0x3e6   :  { %3556 = vset.pattern.permute.xlu1 %v5312_v33 }
 0x3e7   :  { %1779 = vperm.xlu1 %3556, %v4510_v55  }
 0x3eb   :  { %1783 = vperm.xlu1 %3556, %v4502_v13  }
 0x3ef   :  { %3557 = vset.pattern.permute.xlu1 %v5313_v21 }
 0x3f0   :  { %1797 = vperm.xlu1 %3557, %v4510_v55  }
 0x3f4   :  { %1801 = vperm.xlu1 %3557, %v4502_v13  }
 0x3f8   :  { %3558 = vset.pattern.permute.xlu1 %v5314_v52 }
 0x3f9   :  { %1815 = vperm.xlu1 %3558, %v4510_v55  }
 0x3fd   :  { %1819 = vperm.xlu1 %3558, %v4502_v13  }
 0x401   :  { %3559 = vset.pattern.permute.xlu1 %v5315_v53 }
 0x402   :  { %1833 = vperm.xlu1 %3559, %v4510_v55  }
 0x406   :  { %1837 = vperm.xlu1 %3559, %v4502_v13  }
 0x40a   :  { %3560 = vset.pattern.permute.xlu1 %v5316_v31 }
 0x40b   :  { %1847 = vperm.xlu1 %3560, %v4510_v55  }
 0x40f   :  { %1851 = vperm.xlu1 %3560, %v4502_v13  }
 0x413   :  { %3561 = vset.pattern.permute.xlu1 %v5317_v18 }
 0x414   :  { %1865 = vperm.xlu1 %3561, %v4510_v55  }
 0x418   :  { %1869 = vperm.xlu1 %3561, %v4502_v13  }
 0x47e   :  { %v3133_v37 = vpop.f32.mrb[4].mxu1  ;;  %v3138_v34 = vpop.f32.mrb[6].mxu0 }
 0x47f   :  { %v1157_v1 = vadd.f32 %v3133_v37, %v1077_v10  ;;  %v1151_v14 = vpop.f32.mrb[5].mxu1  ;;  %v1252_v25 = vpop.f32.mrb[7].mxu0  ;;  %v1258_v41 = vadd.f32 %v3138_v34, %v1178_v15  ;;  %v1439_v15 = vld [vmem:[%s5132_s4] sm:$0xff]  ;;  %v5321_v37 = vld [vmem:[#allocation13_spill] sm:$0xff]  ;;  %v5322_v34 = vld [vmem:[#allocation16_spill] sm:$0xff] }
 0x480   :  { %v1152_v6 = vadd.f32 %v1151_v14, %v1073_v62  ;;  %v1253_v59 = vadd.f32 %v1252_v25, %v1174_v38  ;;  %v5318_v38 = vmov 14   ;;  %v5324_v14 = vmov 17   ;;  %v5325_v25 = vld [vmem:[#allocation21_spill] sm:$0xff] }
 0x481   :  { %v2878_v20 = vmul.f32 -1.442695, %v1157_v1  ;;  %v2882_v12 = vmul.f32 -1.442695, %v1258_v41  ;;  %3562 = vset.pattern.permute.xlu1 %v5318_v38  ;;  %v5323_v1 = vld [vmem:[#allocation18_spill] sm:$0xff]  ;;  %v5326_v41 = vld [vmem:[#allocation24_spill] sm:$0xff] }
 0x482   :  { %v2877_v61 = vmul.f32 -1.442695, %v1152_v6  ;;  %v2881_v16 = vmul.f32 -1.442695, %v1253_v59  ;;  %1883 = vperm.xlu1 %3562, %v4510_v55   ;;  %v5327_v6 = vmov 18   ;;  %v5328_v59 = vld [vmem:[#allocation26_spill] sm:$0xff] }
 0x483   :  { %3582 = vpow2.f32 %v2878_v20  ;;  %v5329_v20 = vmov 19  }
 0x484   :  { %3584 = vpow2.f32 %v2877_v61  ;;  %v5330_v61 = vmov 20  }
 0x485   :  { %3586 = vpow2.f32 %v2881_v16  ;;  %v5331_v16 = vmov 21  }
 0x486   :  { %3588 = vpow2.f32 %v2882_v12  ;;  %1887 = vperm.xlu1 %3562, %v4502_v13   ;;  %v2888_v12 = vld [vmem:[%s5124_s1 + $0x10] sm:$0xff] }
 0x48a   :  { %3563 = vset.pattern.permute.xlu1 %v5308_v24 }
 0x48b   :  { %1901 = vperm.xlu1 %3563, %v4510_v55  }
 0x48d   :  { %v3583_v8 = vpop.eup %3582 }
 0x48e   :  { %v3585_v36 = vpop.eup %3584  ;;  %v1167_v45 = vadd.f32 1.0, %v3583_v8 }
 0x48f   :  { %v3587_v9 = vpop.eup %3586  ;;  %v1166_v51 = vadd.f32 1.0, %v3585_v36  ;;  %3565 = vset.pattern.permute.xlu1 %v5309_v49  ;;  %v1516_v36 = vpop.permute.xlu1 %1515 }
 0x490   :  { %v3589_v32 = vpop.eup %3588  ;;  %3590 = vrcp.f32 %v1167_v45  ;;  %v1267_v50 = vadd.f32 1.0, %v3587_v9  ;;  %1919 = vperm.xlu1 %3565, %v4510_v55   ;;  %v3616_v45 = vld [vmem:[%s5123_s0] sm:$0xff]  ;;  %s5341_s0 = smov 16  }
 0x491   :  { %3592 = vrcp.f32 %v1166_v51  ;;  %v1268_v63 = vadd.f32 1.0, %v3589_v32 }
 0x492   :  { %3594 = vrcp.f32 %v1267_v50  ;;  %v2889_v50 = vld [vmem:[%s5124_s1 + $0x18] sm:$0xff]  ;;  %s5342_s1 = smov 18  }
 0x493   :  { %3596 = vrcp.f32 %v1268_v63  ;;  %v5333_v63 = vld [vmem:[#allocation9_spill] sm:$0xff]  ;;  %v1528_v58 = vpop.permute.xlu1 %1527 }
 0x494   :  { %3567 = vset.pattern.permute.xlu1 %v5324_v14 }
 0x495   :  { %1937 = vperm.xlu1 %3567, %v4510_v55  }
 0x497   :  { %v1620_v17 = vpop.permute.xlu1 %1619 }
 0x499   :  { %1941 = vperm.xlu1 %3567, %v4502_v13  }
 0x49a   :  { %v3591_v7 = vpop.eup %3590 }
 0x49b   :  { %v3593_v26 = vpop.eup %3592  ;;  %v1624_v35 = vpop.permute.xlu1 %1623 }
 0x49c   :  { %v3595_v27 = vpop.eup %3594  ;;  %3143 = vmatprep.mubr.msk.f32.mxu1 %vm913_vm4, %v3593_v26  ;;  %v5335_v26 = vld [vmem:[#allocation14_spill] sm:$0xff] }
 0x49d   :  { %v3597_v28 = vpop.eup %3596  ;;  %3150 = vmatprep.mubr.msk.f32.mxu0 %vm913_vm4, %v3595_v27  ;;  %3144 = vmatmul.mubr.msk.f32.vlgmr.msra.gmra.mrb[6].mxu1 %vm913_vm4, %v3591_v7  ;;  %v5334_v7 = vld [vmem:[#allocation11_spill] sm:$0xff]  ;;  %v5336_v27 = vld [vmem:[#allocation17_spill] sm:$0xff] }
 0x49e   :  { %3151 = vmatmul.mubr.msk.f32.vlgmr.msra.gmra.mrb[8].mxu0 %vm913_vm4, %v3597_v28  ;;  %3157 = vmatprep.mubr.msk.f32.mxu1 %vm3694_vm3, %v5228_v0  ;;  %v5337_v28 = vld [vmem:[#allocation19_spill] sm:$0xff] }
 0x49f   :  { %3568 = vset.pattern.permute.xlu1 %v5327_v6  ;;  %3162 = vmatprep.mubr.msk.f32.mxu0 %vm114_vm0, %v2888_v12  ;;  %v4645_v23 = vpop.permute.xlu1 %1653  ;;  %v5351_v6 = vmov 22  }
 0x4a0   :  { %1955 = vperm.xlu1 %3568, %v4510_v55  }
 0x4a3   :  { %v4647_v24 = vpop.permute.xlu1 %1639 }
 0x4a4   :  { %1959 = vperm.xlu1 %3568, %v4502_v13  }
 0x4a7   :  { %v4649_v49 = vpop.permute.xlu1 %1671 }
 0x4a8   :  { %3569 = vset.pattern.permute.xlu1 %v5329_v20 }
 0x4a9   :  { %1973 = vperm.xlu1 %3569, %v4510_v55  }
 0x4ab   :  { %v4651_v57 = vpop.permute.xlu1 %1675 }
 0x4ad   :  { %1977 = vperm.xlu1 %3569, %v4502_v13  }
 0x4af   :  { %v4653_v43 = vpop.permute.xlu1 %1693 }
 0x4b1   :  { %3570 = vset.pattern.permute.xlu1 %v5330_v61  ;;  %v5354_v61 = vmov 23  }
 0x4b2   :  { %1991 = vperm.xlu1 %3570, %v4510_v55  }
 0x4b3   :  { %v4655_v33 = vpop.permute.xlu1 %1707 }
 0x4b6   :  { %1995 = vperm.xlu1 %3570, %v4502_v13  }
 0x4b7   :  { %v4657_v21 = vpop.permute.xlu1 %1729 }
 0x4ba   :  { %3571 = vset.pattern.permute.xlu1 %v5331_v16 }
 0x4bb   :  { %2009 = vperm.xlu1 %3571, %v4510_v55   ;;  %v4659_v52 = vpop.permute.xlu1 %1743 }
 0x4bf   :  { %v4661_v53 = vpop.permute.xlu1 %1747 }
 0x4c3   :  { %v4663_v31 = vpop.permute.xlu1 %1761 }
 0x570   :  { %v3145_v40 = vpop.f32.mrb[6].mxu1 }
 0x571   :  { %v1355_v19 = vmul.f32 %v3145_v40, %v4423_v60  ;;  %v3152_v30 = vpop.f32.mrb[8].mxu0  ;;  %v1345_v11 = vpop.f32.mrb[7].mxu1  ;;  %v5319_v60 = vld [vmem:[#allocation8_spill] sm:$0xff] }
 0x572   :  { %v1354_v46 = vmul.f32 %v1345_v11, %v4419_v2  ;;  %v1428_v56 = vpop.f32.mrb[9].mxu0  ;;  %v5320_v2 = vld [vmem:[#allocation10_spill] sm:$0xff]  ;;  %v4665_v40 = vpop.permute.xlu1 %1765 }
 0x573   :  { %v1438_v29 = vmul.f32 %v3152_v30, %v1355_v19 }
 0x574   :  { %v1437_v62 = vmul.f32 %v1428_v56, %v1354_v46  ;;  %v1533_v56 = vpop.permute.xlu0 %1532 }
 0x576   :  { %v3359_v10 = vpack.c.bf16 %v1438_v29, %v1437_v62  ;;  %v4667_v18 = vpop.permute.xlu1 %1779 }
 0x578   :  { %3360 = vmatpush3.bf16.msra.mxu1 %v3359_v10 }
 0x579   :  { %3362 = vmatprep.subr.bf16.mxu1 %v5319_v60 }
 0x57a   :  { %v4669_v19 = vpop.permute.xlu1 %1783 }
 0x57b   :  { %3158 = vmatmul.mubr.msk.f32.vlgmr.msra.gmra.mrb[8].mxu1 %vm913_vm4, %v1439_v15 }
 0x57c   :  { %3364 = vmatpush3.bf16.msra.mxu1 %v5319_v60 }
 0x57d   :  { %3366 = vmatprep.subr.bf16.mxu1 %v5320_v2 }
 0x57e   :  { %v4671_v30 = vpop.permute.xlu1 %1797 }
 0x580   :  { %3368 = vmatpush3.bf16.msra.mxu1 %v5320_v2 }
 0x581   :  { %3370 = vmatprep.subr.bf16.mxu1 %v5321_v37 }
 0x582   :  { %v4673_v11 = vpop.permute.xlu1 %1801 }
 0x584   :  { %3372 = vmatpush3.bf16.msra.mxu1 %v5321_v37 }
 0x585   :  { %3374 = vmatprep.subr.bf16.mxu1 %v5322_v34 }
 0x586   :  { %v4675_v46 = vpop.permute.xlu1 %1815 }
 0x588   :  { %3376 = vmatpush3.bf16.msra.mxu1 %v5322_v34 }
 0x589   :  { %3378 = vmatprep.subr.bf16.mxu1 %v5323_v1 }
 0x58a   :  { %v4677_v15 = vpop.permute.xlu1 %1819 }
 0x58c   :  { %3380 = vmatpush3.bf16.msra.mxu1 %v5323_v1 }
 0x58d   :  { %3382 = vmatprep.subr.bf16.mxu1 %v5325_v25 }
 0x58e   :  { %v4685_v2 = vpop.permute.xlu1 %1833 }
 0x590   :  { %3384 = vmatpush3.bf16.msra.mxu1 %v5325_v25 }
 0x591   :  { %3386 = vmatprep.subr.bf16.mxu1 %v5326_v41 }
 0x592   :  { %v4691_v1 = vpop.permute.xlu1 %1837 }
 0x594   :  { %3388 = vmatpush3.bf16.msra.mxu1 %v5326_v41 }
 0x595   :  { %3390 = vmatprep.subr.bf16.mxu1 %v5328_v59 }
 0x596   :  { %v4703_v25 = vpop.permute.xlu1 %1847 }
 0x598   :  { %3392 = vmatpush3.bf16.msra.mxu1 %v5328_v59 }
 0x599   :  { %3425 = vmatprep.subr.bf16.mxu1 %v5227_v47 }
 0x59a   :  { %v4709_v41 = vpop.permute.xlu1 %1851 }
 0x59e   :  { %v4717_v59 = vpop.permute.xlu1 %1865 }
 0x5a2   :  { %v4723_v20 = vpop.permute.xlu1 %1869 }
 0x5a6   :  { %v4731_v16 = vpop.permute.xlu1 %1883 }
 0x5aa   :  { %v4738_v12 = vpop.permute.xlu1 %1887 }
 0x64e   :  { %v1509_v8 = vpop.f32.mrb[8].mxu1 }
 0x64f   :  { %v1513_v9 = vadd.f32 %v3616_v45, %v1509_v8  ;;  %v3159_v51 = vpop.f32.mrb[9].mxu1  ;;  %v5356_v8 = vmov 24  }
 0x651   :  { %v4620_v32 = vadd.f32 %v1516_v36, %v1513_v9  ;;  %v4746_v36 = vpop.permute.xlu1 %1901 }
 0x653   :  { %5332 = vst [vmem:[#allocation3_spill] sm:$0xff] %v4620_v32  ;;  %3160 = vmatprep.subr.mxu0 %v4620_v32 }
 0x654   :  { %3161 = vmatpush3.msra.mxu0 %v4620_v32 }
 0x655   :  { %3163 = vmatmul.mubr.msk.f32.vlgmr.msra.gmra.mrb[10].mxu0 %vm114_vm0, %v2889_v50  ;;  %3394 = vmatprep.subr.bf16.mxu0 %v5333_v63  ;;  %v4751_v45 = vpop.permute.xlu1 %1919 }
 0x656   :  { %3396 = vmatpush3.bf16.msra.mxu0 %v5333_v63 }
 0x657   :  { %3398 = vmatprep.subr.bf16.mxu0 %v5334_v7 }
 0x659   :  { %v4762_v9 = vpop.permute.xlu1 %1937 }
 0x65a   :  { %3400 = vmatpush3.bf16.msra.mxu0 %v5334_v7 }
 0x65b   :  { %3402 = vmatprep.subr.bf16.mxu0 %v5335_v26 }
 0x65d   :  { %v4768_v51 = vpop.permute.xlu1 %1941 }
 0x65e   :  { %3404 = vmatpush3.bf16.msra.mxu0 %v5335_v26 }
 0x65f   :  { %3406 = vmatprep.subr.bf16.mxu0 %v5336_v27 }
 0x661   :  { %v4778_v50 = vpop.permute.xlu1 %1955 }
 0x662   :  { %3408 = vmatpush3.bf16.msra.mxu0 %v5336_v27 }
 0x663   :  { %3410 = vmatprep.subr.bf16.mxu0 %v5337_v28 }
 0x665   :  { %v4785_v7 = vpop.permute.xlu1 %1959 }
 0x666   :  { %3412 = vmatpush3.bf16.msra.mxu0 %v5337_v28 }
 0x667   :  { %3414 = vmatprep.subr.bf16.mxu0 %v5338_v4 }
 0x669   :  { %v4795_v26 = vpop.permute.xlu1 %1973 }
 0x66a   :  { %3416 = vmatpush3.bf16.msra.mxu0 %v5338_v4 }
 0x66b   :  { %3418 = vmatprep.subr.bf16.mxu0 %v5339_v39 }
 0x66d   :  { %v4799_v28 = vpop.permute.xlu1 %1977 }
 0x66e   :  { %3420 = vmatpush3.bf16.msra.mxu0 %v5339_v39 }
 0x66f   :  { %3422 = vmatprep.subr.bf16.mxu0 %v5340_v22 }
 0x671   :  { %v4807_v39 = vpop.permute.xlu1 %1991 }
 0x672   :  { %3424 = vmatpush3.bf16.msra.mxu0 %v5340_v22  ;;  %5357 = vst [vmem:[#allocation5_spill] sm:$0xff] %v4807_v39 }
 0x673   :  { %3428 = vmatprep.subr.bf16.mxu0 %v5227_v47 }
 0x728   :  { %v3164_v29 = vpop.f32.mrb[10].mxu0 }
 0x729   :  { %v1613_v62 = vadd.f32 %v3164_v29, %v1533_v56  ;;  %v1607_v10 = vpop.f32.mrb[11].mxu0 }
 0x72a   :  { %v1608_v37 = vadd.f32 %v1607_v10, %v1528_v58  ;;  %v4813_v58 = vpop.permute.xlu1 %1995 }
 0x72b   :  { %vm1617_vm5 = vcmp.gt.f32.partialorder %v1613_v62, 0.0  ;;  %v1627_v38 = vmul.f32 %v1624_v35, %v1613_v62 }
 0x72c   :  { %v1626_v34 = vmul.f32 %v1620_v17, %v1608_v37  ;;  %vm1616_vm6 = vcmp.gt.f32.partialorder %v1608_v37, 0.0 }
 0x72d   :  { %v4679_v60 = vsel %vm1617_vm5, %v1613_v62, %v1627_v38 }
 0x72e   :  { %1668 = vrot.lane.b32.xlu0 %v4679_v60, %s5341_s0  ;;  %1632 = vrot.lane.b32.xlu1 %v4679_v60, %s5342_s1  ;;  %v4697_v14 = vsel %vm1616_vm6, %v1608_v37, %v1626_v34  ;;  %v4819_v17 = vpop.permute.xlu1 %2009 }
 0x72f   :  { %5358 = vst [vmem:[#allocation32_spill] sm:$0xff] %v4819_v17 }
 0x732   :  { %1686 = vrot.lane.b32.xlu0 %v4679_v60, %s5343_s14  ;;  %1650 = vrot.lane.b32.xlu1 %v4679_v60, %s5344_s8 }
 0x736   :  { %1704 = vrot.lane.b32.xlu0 %v4679_v60, %s5345_s9  ;;  %1862 = vrot.lane.b32.xlu1 %v4679_v60, %s5346_s15 }
 0x73a   :  { %1722 = vrot.lane.b32.xlu0 %v4679_v60, %s5347_s28  ;;  %1648 = vrot.lane.b32.xlu1 %v4697_v14, %s5344_s8 }
 0x73e   :  { %1740 = vrot.lane.b32.xlu0 %v4679_v60, %s5348_s5  ;;  %1666 = vrot.lane.b32.xlu1 %v4697_v14, %s5341_s0 }
 0x742   :  { %1758 = vrot.lane.b32.xlu0 %v4679_v60, %s5349_s29  ;;  %2013 = vperm.xlu1 %3571, %v4502_v13  }
 0x746   :  { %1776 = vrot.lane.b32.xlu0 %v4679_v60, %s5350_s16  ;;  %3572 = vset.pattern.permute.xlu1 %v5351_v6  ;;  %v4834_v6 = vld [vmem:[%s5127_s10] ss:$0 sm:$0xff] }
 0x747   :  { %2027 = vperm.xlu1 %3572, %v4510_v55  }
 0x74a   :  { %1794 = vrot.lane.b32.xlu0 %v4679_v60, %s5352_s19 }
 0x74b   :  { %2031 = vperm.xlu1 %3572, %v4502_v13  }
 0x74e   :  { %1812 = vrot.lane.b32.xlu0 %v4679_v60, %s5353_s20 }
 0x74f   :  { %3573 = vset.pattern.permute.xlu1 %v5354_v61 }
 0x750   :  { %2045 = vperm.xlu1 %3573, %v4510_v55  }
 0x752   :  { %1830 = vrot.lane.b32.xlu0 %v4679_v60, %s5355_s6 }
 0x754   :  { %1860 = vrot.lane.b32.xlu1 %v4697_v14, %s5346_s15 }
 0x756   :  { %1880 = vrot.lane.b32.xlu0 %v4679_v60, %s3681_s21 }
 0x758   :  { %2049 = vperm.xlu1 %3573, %v4502_v13  }
 0x75a   :  { %1898 = vrot.lane.b32.xlu0 %v4679_v60, %s3682_s22 }
 0x75c   :  { %3574 = vset.pattern.permute.xlu1 %v5356_v8 }
 0x75d   :  { %2063 = vperm.xlu1 %3574, %v4510_v55  }
 0x75e   :  { %1916 = vrot.lane.b32.xlu0 %v4679_v60, %s3684_s23 }
 0x761   :  { %2067 = vperm.xlu1 %3574, %v4502_v13  }
 0x762   :  { %1934 = vrot.lane.b32.xlu0 %v4679_v60, %s3685_s24 }
 0x765   :  { %2022 = vrot.lane.b32.xlu1 %v4697_v14, %s3686_s25 }
 0x766   :  { %1630 = vrot.lane.b32.xlu0 %v4697_v14, %s5342_s1  ;;  %3575 = vset.pattern.permute.xlu1 %v3696_v3  ;;  %v4776_v3 = vpop.permute.xlu0 %1635 }
 0x769   :  { %2040 = vrot.lane.b32.xlu1 %v4697_v14, %s3687_s26 }
 0x76a   :  { %1952 = vrot.lane.b32.xlu0 %v4679_v60, %s3688_s13  ;;  %v1658_v63 = vpop.permute.xlu0 %1657 }
 0x76d   :  { %2058 = vrot.lane.b32.xlu1 %v4697_v14, %s3689_s30 }
 0x76e   :  { %1970 = vrot.lane.b32.xlu0 %v4679_v60, %s3690_s27 }
 0x771   :  { %2231 = vperm.xlu1 %3575, %v4510_v55  }
 0x772   :  { %1684 = vrot.lane.b32.xlu0 %v4697_v14, %s5343_s14 }
 0x775   :  { %3577 = vset.pattern.permute.xlu1 %v3697_v48  ;;  %v4793_v48 = vpop.permute.xlu0 %1689 }
 0x776   :  { %1702 = vrot.lane.b32.xlu0 %v4697_v14, %s5345_s9  ;;  %2397 = vperm.xlu1 %3577, %v4502_v13  }
 0x779   :  { %v1712_v27 = vpop.permute.xlu0 %1711 }
 0x77a   :  { %1720 = vrot.lane.b32.xlu0 %v4697_v14, %s5347_s28  ;;  %3578 = vset.pattern.permute.xlu1 %v3698_v54 }
 0x77b   :  { %2494 = vperm.xlu1 %3578, %v4510_v55  }
 0x77d   :  { %v4805_v4 = vpop.permute.xlu0 %1725 }
 0x77e   :  { %1738 = vrot.lane.b32.xlu0 %v4697_v14, %s5348_s5 }
 0x77f   :  { %3580 = vset.pattern.permute.xlu1 %v5230_v44  ;;  %v4861_v44 = vld [vmem:[%s5127_s10 + $0x4] ss:$0 sm:$0xff] }
 0x780   :  { %2837 = vperm.xlu1 %3580, %v4510_v55  }
 0x781   :  { %v4811_v22 = vpop.permute.xlu0 %1905 }
 0x782   :  { %1756 = vrot.lane.b32.xlu0 %v4697_v14, %s5349_s29 }
 0x785   :  { %v4821_v35 = vpop.permute.xlu0 %1923 }
 0x786   :  { %1774 = vrot.lane.b32.xlu0 %v4697_v14, %s5350_s16 }
 0x78a   :  { %1792 = vrot.lane.b32.xlu0 %v4697_v14, %s5352_s19 }
 0x78e   :  { %1810 = vrot.lane.b32.xlu0 %v4697_v14, %s5353_s20 }
 0x792   :  { %1828 = vrot.lane.b32.xlu0 %v4697_v14, %s5355_s6 }
 0x796   :  { %1988 = vrot.lane.b32.xlu0 %v4679_v60, %s3691_s17 }
 0x79a   :  { %2006 = vrot.lane.b32.xlu0 %v4679_v60, %s3692_s18 }
 0x79e   :  { %2024 = vrot.lane.b32.xlu0 %v4679_v60, %s3686_s25 }
 0x7a0   :  { %v1669_v56 = vpop.permute.xlu0 %1668  ;;  %v1633_v29 = vpop.permute.xlu1 %1632 }
 0x7a1   :  { %v1643_v62 = vmul.f32 %v4647_v24, %v1633_v29  ;;  %v1679_v37 = vmul.f32 %v4651_v57, %v1669_v56  ;;  %v4841_v24 = vld [vmem:[%s5127_s10 + $0x1] ss:$0 sm:$0xff]  ;;  %v4847_v56 = vld [vmem:[%s5127_s10 + $0x2] ss:$0 sm:$0xff] }
 0x7a2   :  { %1878 = vrot.lane.b32.xlu0 %v4697_v14, %s3681_s21 }
 0x7a3   :  { %v1645_v61 = vmul.f32 %v4834_v6, %v1643_v62  ;;  %v1681_v29 = vmul.f32 %v4847_v56, %v1679_v37 }
 0x7a4   :  { %v1687_v10 = vpop.permute.xlu0 %1686  ;;  %v1651_v38 = vpop.permute.xlu1 %1650 }
 0x7a5   :  { %v1661_v34 = vmul.f32 %v1658_v63, %v1651_v38  ;;  %v1697_v8 = vmul.f32 %v4653_v43, %v1687_v10  ;;  %v4855_v43 = vld [vmem:[%s5127_s10 + $0x3] ss:$0 sm:$0xff] }
 0x7a6   :  { %1896 = vrot.lane.b32.xlu0 %v4697_v14, %s3682_s22 }
 0x7a7   :  { %v1663_v57 = vmul.f32 %v4841_v24, %v1661_v34  ;;  %v1699_v62 = vmul.f32 %v4855_v43, %v1697_v8  ;;  %v4870_v8 = vld [vmem:[%s5127_s10 + $0x5] ss:$0 sm:$0xff] }
 0x7a8   :  { %v1705_v63 = vpop.permute.xlu0 %1704 }
 0x7a9   :  { %v1665_v38 = vadd.f32 %v1663_v57, %v1645_v61  ;;  %v1715_v47 = vmul.f32 %v1712_v27, %v1705_v63 }
 0x7aa   :  { %1914 = vrot.lane.b32.xlu0 %v4697_v14, %s3684_s23 }
 0x7ab   :  { %v1683_v10 = vadd.f32 %v1681_v29, %v1665_v38  ;;  %v1717_v27 = vmul.f32 %v4861_v44, %v1715_v47  ;;  %v4879_v47 = vld [vmem:[%s5127_s10 + $0x6] ss:$0 sm:$0xff] }
 0x7ac   :  { %v1723_v34 = vpop.permute.xlu0 %1722 }
 0x7ad   :  { %v1701_v0 = vadd.f32 %v1699_v62, %v1683_v10  ;;  %v1733_v37 = vmul.f32 %v4657_v21, %v1723_v34 }
 0x7ae   :  { %1932 = vrot.lane.b32.xlu0 %v4697_v14, %s3685_s24 }
 0x7af   :  { %v1719_v61 = vadd.f32 %v1717_v27, %v1701_v0  ;;  %v1735_v57 = vmul.f32 %v4870_v8, %v1733_v37 }
 0x7b0   :  { %v1741_v63 = vpop.permute.xlu0 %1740 }
 0x7b1   :  { %v1737_v29 = vadd.f32 %v1735_v57, %v1719_v61  ;;  %v1751_v38 = vmul.f32 %v4661_v53, %v1741_v63  ;;  %v4888_v53 = vld [vmem:[%s5127_s10 + $0x7] ss:$0 sm:$0xff] }
 0x7b2   :  { %1950 = vrot.lane.b32.xlu0 %v4697_v14, %s3688_s13 }
 0x7b3   :  { %v1753_v0 = vmul.f32 %v4879_v47, %v1751_v38 }
 0x7b4   :  { %v1759_v21 = vpop.permute.xlu0 %1758 }
 0x7b5   :  { %v1755_v62 = vadd.f32 %v1753_v0, %v1737_v29  ;;  %v1769_v10 = vmul.f32 %v4665_v40, %v1759_v21  ;;  %v4897_v40 = vld [vmem:[%s5127_s10 + $0x8] ss:$0 sm:$0xff] }
 0x7b6   :  { %1968 = vrot.lane.b32.xlu0 %v4697_v14, %s3690_s27 }
 0x7b7   :  { %v1771_v34 = vmul.f32 %v4888_v53, %v1769_v10 }
 0x7b8   :  { %v1777_v27 = vpop.permute.xlu0 %1776 }
 0x7b9   :  { %v1773_v37 = vadd.f32 %v1771_v34, %v1755_v62  ;;  %v1787_v61 = vmul.f32 %v4669_v19, %v1777_v27  ;;  %v4906_v19 = vld [vmem:[%s5127_s10 + $0x9] ss:$0 sm:$0xff]  ;;  %v1863_v27 = vpop.permute.xlu1 %1862 }
 0x7ba   :  { %1986 = vrot.lane.b32.xlu0 %v4697_v14, %s3691_s17 }
 0x7bb   :  { %v1789_v57 = vmul.f32 %v4897_v40, %v1787_v61  ;;  %v1855_v61 = vmul.f32 %v4709_v41, %v4679_v60  ;;  %v4933_v41 = vld [vmem:[%s5127_s10 + $0xc] ss:$0 sm:$0xff] }
 0x7bc   :  { %v1795_v63 = vpop.permute.xlu0 %1794 }
 0x7bd   :  { %v1791_v29 = vadd.f32 %v1789_v57, %v1773_v37  ;;  %v1805_v38 = vmul.f32 %v4673_v11, %v1795_v63  ;;  %v4915_v11 = vld [vmem:[%s5127_s10 + $0xa] ss:$0 sm:$0xff] }
 0x7be   :  { %2004 = vrot.lane.b32.xlu0 %v4697_v14, %s3692_s18 }
 0x7bf   :  { %v1807_v0 = vmul.f32 %v4906_v19, %v1805_v38 }
 0x7c0   :  { %v1813_v21 = vpop.permute.xlu0 %1812 }
 0x7c1   :  { %v1809_v62 = vadd.f32 %v1807_v0, %v1791_v29  ;;  %v1823_v10 = vmul.f32 %v4677_v15, %v1813_v21  ;;  %v1873_v15 = vmul.f32 %v4723_v20, %v1863_v27  ;;  %v4927_v29 = vld [vmem:[%s5127_s10 + $0xb] ss:$0 sm:$0xff]  ;;  %v4941_v20 = vld [vmem:[%s5127_s10 + $0xd] ss:$0 sm:$0xff] }
 0x7c2   :  { %2042 = vrot.lane.b32.xlu0 %v4679_v60, %s3687_s26 }
 0x7c3   :  { %v1825_v34 = vmul.f32 %v4915_v11, %v1823_v10 }
 0x7c4   :  { %v1831_v37 = vpop.permute.xlu0 %1830 }
 0x7c5   :  { %v1827_v57 = vadd.f32 %v1825_v34, %v1809_v62  ;;  %v1841_v63 = vmul.f32 %v4691_v1, %v1831_v37  ;;  %v1857_v1 = vmul.f32 %v4933_v41, %v1855_v61  ;;  %v1875_v62 = vmul.f32 %v4941_v20, %v1873_v15  ;;  %v4947_v37 = vld [vmem:[%s5127_s10 + $0xe] ss:$0 sm:$0xff] }
 0x7c6   :  { %2060 = vrot.lane.b32.xlu0 %v4679_v60, %s3689_s30 }
 0x7c7   :  { %v1843_v38 = vmul.f32 %v4927_v29, %v1841_v63 }
 0x7c8   :  { %v1881_v0 = vpop.permute.xlu0 %1880 }
 0x7c9   :  { %v1845_v21 = vadd.f32 %v1843_v38, %v1827_v57  ;;  %v1891_v60 = vmul.f32 %v4738_v12, %v1881_v0  ;;  %v4955_v57 = vld [vmem:[%s5127_s10 + $0xf] ss:$0 sm:$0xff] }
 0x7ca   :  { %2393 = vperm.xlu0 %3576, %v4510_v55  }
 0x7cb   :  { %v1859_v10 = vadd.f32 %v1857_v1, %v1845_v21  ;;  %v1893_v61 = vmul.f32 %v4947_v37, %v1891_v60  ;;  %v5359_v1 = vmov 30  }
 0x7cc   :  { %v1899_v34 = vpop.permute.xlu0 %1898 }
 0x7cd   :  { %v1877_v27 = vadd.f32 %v1875_v62, %v1859_v10  ;;  %v1909_v12 = vmul.f32 %v4811_v22, %v1899_v34  ;;  %v4963_v22 = vld [vmem:[%s5127_s10 + $0x10] ss:$0 sm:$0xff] }
 0x7ce   :  { %3579 = vset.pattern.permute.xlu0 %v3698_v54 }
 0x7cf   :  { %v1895_v55 = vadd.f32 %v1893_v61, %v1877_v27  ;;  %v1911_v63 = vmul.f32 %v4955_v57, %v1909_v12  ;;  %2498 = vperm.xlu0 %3579, %v4502_v13   ;;  %v4971_v13 = vld [vmem:[%s5127_s10 + $0x11] ss:$0 sm:$0xff]  ;;  %v4978_v12 = vld [vmem:[%s5127_s10 + $0x12] ss:$0 sm:$0xff] }
 0x7d0   :  { %v1917_v15 = vpop.permute.xlu0 %1916 }
 0x7d1   :  { %v1913_v38 = vadd.f32 %v1911_v63, %v1895_v55  ;;  %v1927_v0 = vmul.f32 %v4821_v35, %v1917_v15 }
 0x7d3   :  { %v1929_v54 = vmul.f32 %v4963_v22, %v1927_v0  ;;  %3581 = vset.pattern.permute.xlu0 %v5359_v1 }
 0x7d4   :  { %v1935_v21 = vpop.permute.xlu0 %1934 }
 0x7d5   :  { %v1931_v60 = vadd.f32 %v1929_v54, %v1913_v38  ;;  %v1945_v62 = vmul.f32 %v4768_v51, %v1935_v21  ;;  %v4985_v38 = vld [vmem:[%s5127_s10 + $0x13] ss:$0 sm:$0xff]  ;;  %v1649_v21 = vpop.permute.xlu1 %1648 }
 0x7d7   :  { %v1947_v35 = vmul.f32 %v4971_v13, %v1945_v62 }
 0x7d8   :  { %v1631_v10 = vpop.permute.xlu0 %1630 }
 0x7d9   :  { %v1949_v34 = vadd.f32 %v1947_v35, %v1931_v60  ;;  %v1667_v35 = vpop.permute.xlu1 %1666 }
 0x7dc   :  { %v1953_v27 = vpop.permute.xlu0 %1952 }
 0x7dd   :  { %v1963_v61 = vmul.f32 %v4785_v7, %v1953_v27 }
 0x7df   :  { %v1965_v55 = vmul.f32 %v4978_v12, %v1963_v61  ;;  %v4990_v61 = vpop.permute.xlu1 %2013 }
 0x7e0   :  { %v1971_v51 = vpop.permute.xlu0 %1970  ;;  %5361 = vst [vmem:[#allocation7_spill] sm:$0xff] %v4990_v61 }
 0x7e1   :  { %v1967_v63 = vadd.f32 %v1965_v55, %v1949_v34  ;;  %v1981_v15 = vmul.f32 %v4799_v28, %v1971_v51  ;;  %v1642_v51 = vmul.f32 %v4776_v3, %v1631_v10 }
 0x7e3   :  { %v1983_v0 = vmul.f32 %v4985_v38, %v1981_v15  ;;  %v4992_v28 = vpop.permute.xlu1 %2027  ;;  %v1660_v15 = vmul.f32 %v4645_v23, %v1649_v21 }
 0x7e4   :  { %v1685_v54 = vpop.permute.xlu0 %1684  ;;  %5362 = vst [vmem:[#allocation34_spill] sm:$0xff] %v4992_v28 }
 0x7e5   :  { %v4988_v7 = vadd.f32 %v1983_v0, %v1967_v63  ;;  %v1644_v63 = vmul.f32 %v4834_v6, %v1642_v51  ;;  %v1662_v42 = vmul.f32 %v4841_v24, %v1660_v15  ;;  %v1696_v17 = vmul.f32 %v4793_v48, %v1685_v54 }
 0x7e7   :  { %5360 = vst [vmem:[#allocation4_spill] sm:$0xff] %v4988_v7  ;;  %v4996_v5 = vpop.permute.xlu1 %2031  ;;  %v1678_v7 = vmul.f32 %v4649_v49, %v1667_v35  ;;  %v1664_v28 = vadd.f32 %v1662_v42, %v1644_v63  ;;  %v1698_v10 = vmul.f32 %v4855_v43, %v1696_v17 }
 0x7e8   :  { %v1703_v1 = vpop.permute.xlu0 %1702 }
 0x7e9   :  { %v1714_v39 = vmul.f32 %v4655_v33, %v1703_v1  ;;  %v1680_v23 = vmul.f32 %v4847_v56, %v1678_v7 }
 0x7eb   :  { %v5002_v61 = vpop.permute.xlu1 %2045  ;;  %v1682_v21 = vadd.f32 %v1680_v23, %v1664_v28  ;;  %v1716_v24 = vmul.f32 %v4861_v44, %v1714_v39 }
 0x7ec   :  { %v1721_v60 = vpop.permute.xlu0 %1720 }
 0x7ed   :  { %v1732_v6 = vmul.f32 %v4805_v4, %v1721_v60  ;;  %v1700_v54 = vadd.f32 %v1698_v10, %v1682_v21 }
 0x7ef   :  { %v1861_v48 = vpop.permute.xlu1 %1860  ;;  %v1734_v42 = vmul.f32 %v4870_v8, %v1732_v6  ;;  %v1718_v1 = vadd.f32 %v1716_v24, %v1700_v54 }
 0x7f0   :  { %v1739_v62 = vpop.permute.xlu0 %1738 }
 0x7f1   :  { %v1750_v49 = vmul.f32 %v4659_v52, %v1739_v62  ;;  %v1736_v43 = vadd.f32 %v1734_v42, %v1718_v1 }
 0x7f3   :  { %v1752_v51 = vmul.f32 %v4879_v47, %v1750_v49  ;;  %v5018_v39 = vpop.permute.xlu1 %2049 }
 0x7f4   :  { %v1757_v27 = vpop.permute.xlu0 %1756 }
 0x7f5   :  { %v1768_v33 = vmul.f32 %v4663_v31, %v1757_v27  ;;  %v1754_v52 = vadd.f32 %v1752_v51, %v1736_v43 }
 0x7f7   :  { %v1770_v4 = vmul.f32 %v4888_v53, %v1768_v33  ;;  %v2064_v53 = vpop.permute.xlu1 %2063 }
 0x7f8   :  { %v1775_v34 = vpop.permute.xlu0 %1774 }
 0x7f9   :  { %v1786_v56 = vmul.f32 %v4667_v18, %v1775_v34  ;;  %v1772_v31 = vadd.f32 %v1770_v4, %v1754_v52  ;;  %v5365_v4 = vld [vmem:[#allocation34_spill] sm:$0xff] }
 0x7fb   :  { %v1788_v7 = vmul.f32 %v4897_v40, %v1786_v56  ;;  %v1854_v40 = vmul.f32 %v4703_v25, %v4697_v14  ;;  %v2068_v63 = vpop.permute.xlu1 %2067 }
 0x7fc   :  { %v1793_v55 = vpop.permute.xlu0 %1792 }
 0x7fd   :  { %v1804_v44 = vmul.f32 %v4671_v30, %v1793_v55  ;;  %v1790_v18 = vadd.f32 %v1788_v7, %v1772_v31 }
 0x7ff   :  { %v1806_v62 = vmul.f32 %v4906_v19, %v1804_v44  ;;  %v1856_v19 = vmul.f32 %v4933_v41, %v1854_v40  ;;  %v2023_v25 = vpop.permute.xlu1 %2022  ;;  %v3640_v40 = vld [vmem:[%s5127_s10 + $0x17] ss:$0 sm:$0xff] }
 0x800   :  { %v1811_v32 = vpop.permute.xlu0 %1810  ;;  %v2034_v44 = vmul.f32 %v5365_v4, %v2023_v25  ;;  %v5368_v25 = vmov 0.0  }
 0x801   :  { %v1822_v8 = vmul.f32 %v4675_v46, %v1811_v32  ;;  %v1808_v28 = vadd.f32 %v1806_v62, %v1790_v18  ;;  %v1872_v46 = vmul.f32 %v4717_v59, %v1861_v48  ;;  %v3639_v18 = vld [vmem:[%s5127_s10 + $0x16] ss:$0 sm:$0xff] }
 0x803   :  { %v1824_v27 = vmul.f32 %v4915_v11, %v1822_v8  ;;  %v1874_v10 = vmul.f32 %v4941_v20, %v1872_v46  ;;  %v2041_v54 = vpop.permute.xlu1 %2040  ;;  %v5366_v8 = vld [vmem:[#allocation32_spill] sm:$0xff] }
 0x804   :  { %v1829_v0 = vpop.permute.xlu0 %1828 }
 0x805   :  { %v1840_v47 = vmul.f32 %v4685_v2, %v1829_v0  ;;  %v1826_v55 = vadd.f32 %v1824_v27, %v1808_v28  ;;  %v2036_v27 = vmul.f32 %v3639_v18, %v2034_v44  ;;  %v2899_v44 = vld [vmem:[%s5129_s3 + $0x28] sm:$0xff] }
 0x807   :  { %v1842_v30 = vmul.f32 %v4927_v29, %v1840_v47  ;;  %v2059_v52 = vpop.permute.xlu1 %2058 }
 0x808   :  { %v5005_v3 = vpop.permute.xlu0 %1988 }
 0x809   :  { %v1844_v32 = vadd.f32 %v1842_v30, %v1826_v55 }
 0x80b   :  { %v1858_v11 = vadd.f32 %v1856_v19, %v1844_v32 }
 0x80c   :  { %v2007_v35 = vpop.permute.xlu0 %2006 }
 0x80d   :  { %v1876_v21 = vadd.f32 %v1874_v10, %v1858_v11 }
 0x810   :  { %v2025_v17 = vpop.permute.xlu0 %2024 }
 0x814   :  { %v1879_v60 = vpop.permute.xlu0 %1878 }
 0x815   :  { %v1890_v2 = vmul.f32 %v4731_v16, %v1879_v60  ;;  %v2052_v60 = vmul.f32 %v5002_v61, %v2041_v54 }
 0x817   :  { %v1892_v29 = vmul.f32 %v4947_v37, %v1890_v2 }
 0x818   :  { %v1897_v34 = vpop.permute.xlu0 %1896 }
 0x819   :  { %v1908_v23 = vmul.f32 %v4746_v36, %v1897_v34  ;;  %v1894_v41 = vadd.f32 %v1892_v29, %v1876_v21  ;;  %v2070_v34 = vmul.f32 %v2064_v53, %v2059_v52  ;;  %v3641_v53 = vld [vmem:[%s5127_s10 + $0x18] ss:$0 sm:$0xff]  ;;  %v5369_v52 = vld [vmem:[#allocation2_spill] sm:$0xff] }
 0x81b   :  { %v1910_v59 = vmul.f32 %v4955_v57, %v1908_v23  ;;  %v1999_v57 = vmul.f32 %v4813_v58, %v5005_v3  ;;  %v2035_v58 = vmul.f32 %v4996_v5, %v2025_v17  ;;  %v5367_v5 = vld [vmem:[#allocation4_spill] sm:$0xff] }
 0x81c   :  { %v1915_v15 = vpop.permute.xlu0 %1914 }
 0x81d   :  { %v1926_v6 = vmul.f32 %v4751_v45, %v1915_v15  ;;  %v1912_v36 = vadd.f32 %v1910_v59, %v1894_v41  ;;  %v2037_v30 = vmul.f32 %v3639_v18, %v2035_v58  ;;  %v2054_v15 = vmul.f32 %v3640_v40, %v2052_v60 }
 0x81e   :  { %v5371_v58 = vmov 0.0|0.0  }
 0x81f   :  { %v1928_v16 = vmul.f32 %v4963_v22, %v1926_v6  ;;  %v5363_v22 = vld [vmem:[#allocation5_spill] sm:$0xff] }
 0x820   :  { %v1933_v0 = vpop.permute.xlu0 %1932 }
 0x821   :  { %v1944_v24 = vmul.f32 %v4762_v9, %v1933_v0  ;;  %v1930_v45 = vadd.f32 %v1928_v16, %v1912_v36  ;;  %v2072_v0 = vmul.f32 %v3641_v53, %v2070_v34  ;;  %v2900_v36 = vld [vmem:[%s5129_s3 + $0x30] sm:$0xff] }
 0x823   :  { %v1946_v20 = vmul.f32 %v4971_v13, %v1944_v24 }
 0x824   :  { %v1951_v14 = vpop.permute.xlu0 %1950 }
 0x825   :  { %v1962_v49 = vmul.f32 %v4778_v50, %v1951_v14  ;;  %v1948_v9 = vadd.f32 %v1946_v20, %v1930_v45  ;;  %v5364_v50 = vld [vmem:[#allocation7_spill] sm:$0xff]  ;;  %v2232_v20 = vpop.permute.xlu1 %2231 }
 0x826   :  { %v2017_v56 = vmul.f32 %v5364_v50, %v2007_v35  ;;  %v3638_v35 = vld [vmem:[%s5127_s10 + $0x15] ss:$0 sm:$0xff] }
 0x827   :  { %v1964_v42 = vmul.f32 %v4978_v12, %v1962_v49  ;;  %v2894_v49 = vld [vmem:[%s5128_s2 + $0x8] sm:$0xff] }
 0x828   :  { %v1969_v48 = vpop.permute.xlu0 %1968  ;;  %v2019_v31 = vmul.f32 %v3638_v35, %v2017_v56 }
 0x829   :  { %v1980_v37 = vmul.f32 %v4795_v26, %v1969_v48  ;;  %v1966_v43 = vadd.f32 %v1964_v42, %v1948_v9  ;;  %v3637_v26 = vld [vmem:[%s5127_s10 + $0x14] ss:$0 sm:$0xff]  ;;  %v2898_v48 = vld [vmem:[%s5129_s3 + $0x20] sm:$0xff] }
 0x82a   :  { %v2001_v7 = vmul.f32 %v3637_v26, %v1999_v57 }
 0x82b   :  { %v1982_v1 = vmul.f32 %v4985_v38, %v1980_v37 }
 0x82c   :  { %v1987_v33 = vpop.permute.xlu0 %1986  ;;  %v2003_v17 = vadd.f32 %v2001_v7, %v5367_v5  ;;  %v5370_v7 = vld [vmem:[#allocation31_spill] sm:$0xff] }
 0x82d   :  { %v1998_v51 = vmul.f32 %v5363_v22, %v1987_v33  ;;  %v1984_v3 = vadd.f32 %v1982_v1, %v1966_v43 }
 0x82e   :  { %v2021_v32 = vadd.f32 %v2019_v31, %v2003_v17 }
 0x82f   :  { %v2000_v13 = vmul.f32 %v3637_v26, %v1998_v51 }
 0x830   :  { %v2005_v12 = vpop.permute.xlu0 %2004  ;;  %v2039_v11 = vadd.f32 %v2037_v30, %v2021_v32 }
 0x831   :  { %v2016_v38 = vmul.f32 %v5366_v8, %v2005_v12  ;;  %v2002_v62 = vadd.f32 %v2000_v13, %v1984_v3  ;;  %v2901_v12 = vld [vmem:[%s5129_s3 + $0x38] sm:$0xff]  ;;  %v2398_v8 = vpop.permute.xlu1 %2397 }
 0x833   :  { %v2018_v47 = vmul.f32 %v3638_v35, %v2016_v38 }
 0x834   :  { %v2043_v28 = vpop.permute.xlu0 %2042 }
 0x835   :  { %v2020_v55 = vadd.f32 %v2018_v47, %v2002_v62  ;;  %v2053_v61 = vmul.f32 %v5018_v39, %v2043_v28  ;;  %v2495_v60 = vpop.permute.xlu1 %2494 }
 0x837   :  { %v2038_v46 = vadd.f32 %v2036_v27, %v2020_v55  ;;  %v2055_v19 = vmul.f32 %v3640_v40, %v2053_v61 }
 0x838   :  { %v2061_v2 = vpop.permute.xlu0 %2060 }
 0x839   :  { %v2071_v23 = vmul.f32 %v2068_v63, %v2061_v2  ;;  %v2056_v10 = vadd.f32 %v2054_v15, %v2038_v46  ;;  %v2057_v29 = vadd.f32 %v2055_v19, %v2039_v11 }
 0x83b   :  { %v2073_v6 = vmul.f32 %v3641_v53, %v2071_v23  ;;  %v5068_v39 = vadd.f32 %v2072_v0, %v2056_v10 }
 0x83d   :  { %v5070_v14 = vadd.f32 %v2073_v6, %v2057_v29  ;;  %3197 = vmatprep.mubr.f32.mxu1 %v5068_v39  ;;  %3232 = vmatprep.mubr.f32.mxu0 %v5068_v39 }
 0x83f   :  { %3198 = vmatmul.mubr.f32.vlgmr.msra.gmra.mrb[10].mxu1 %v5070_v14  ;;  %3233 = vmatmul.mubr.f32.vlgmr.msra.gmra.mrb[12].mxu0 %v5070_v14 }
 0x840   :  { %3239 = vmatprep.mubr.msk.f32.mxu1 %vm3694_vm3, %v5368_v25  ;;  %3246 = vmatprep.mubr.msk.f32.mxu0 %vm3694_vm3, %v5368_v25 }
 0x849   :  { %v2394_v3 = vpop.permute.xlu0 %2393 }
 0x84e   :  { %v2499_v38 = vpop.permute.xlu0 %2498 }
 0x912   :  { %v3199_v63 = vpop.f32.mrb[10].mxu1  ;;  %v3234_v21 = vpop.f32.mrb[12].mxu0 }
 0x913   :  { %v2142_v59 = vpop.f32.mrb[11].mxu1  ;;  %v2217_v24 = vpop.f32.mrb[13].mxu0 }
 0x914   :  { %v3426_v41 = vpack.c.bf16 %v3199_v63, %v2142_v59  ;;  %v3429_v16 = vpack.c.bf16 %v3234_v21, %v2217_v24 }
 0x916   :  { %3427 = vmatpush3.bf16.msra.mxu1 %v3426_v41  ;;  %3430 = vmatpush3.bf16.msra.mxu0 %v3429_v16 }
 0x919   :  { %3240 = vmatmul.mubr.msk.f32.vlgmr.msra.gmra.mrb[12].mxu1 %vm913_vm4, %v2894_v49  ;;  %3247 = vmatmul.mubr.msk.f32.vlgmr.msra.gmra.mrb[14].mxu0 %vm913_vm4, %v2894_v49 }
 0x91a   :  { %3251 = vmatprep.mubr.msk.f32.mxu1 %vm114_vm0, %v2898_v48  ;;  %3256 = vmatprep.mubr.msk.f32.mxu0 %vm114_vm0, %v2900_v36  ;;  %v2914_v48 = vld [vmem:[%s5132_s4 + $0x8] sm:$0xff] }
 0x9ec   :  { %v2303_v37 = vpop.f32.mrb[12].mxu1  ;;  %v2373_v54 = vpop.f32.mrb[14].mxu0 }
 0x9ed   :  { %v2304_v45 = vadd.f32 %v2303_v37, %v2232_v20  ;;  %v2374_v42 = vadd.f32 %v2373_v54, %v2232_v20  ;;  %v3241_v33 = vpop.f32.mrb[13].mxu1  ;;  %v3248_v57 = vpop.f32.mrb[15].mxu0  ;;  %v5372_v20 = vld [vmem:[#allocation3_spill] sm:$0xff] }
 0x9ef   :  { %v2377_v9 = vadd.f32 3.0, %v2304_v45  ;;  %v2382_v1 = vadd.f32 3.0, %v2374_v42 }
 0x9f1   :  { %v2378_v22 = vmax.f32 %v2377_v9, 0.0  ;;  %v2383_v51 = vmax.f32 %v2382_v1, 0.0 }
 0x9f3   :  { %v2379_v50 = vmin.f32 %v2378_v22, 6.0  ;;  %v2384_v56 = vmin.f32 %v2383_v51, 6.0 }
 0x9f5   :  { %v2380_v43 = vmul.f32 %v2379_v50, %v2304_v45  ;;  %v2385_v26 = vmul.f32 %v2384_v56, %v2374_v42 }
 0x9f7   :  { %v2381_v13 = vmul.f32 0.16666667, %v2380_v43  ;;  %v2386_v4 = vmul.f32 0.16666667, %v2385_v26 }
 0x9f9   :  { %3249 = vmatprep.subr.mxu1 %v2381_v13  ;;  %3254 = vmatprep.subr.mxu0 %v2386_v4 }
 0x9fa   :  { %3250 = vmatpush3.msra.mxu1 %v2381_v13  ;;  %3255 = vmatpush3.msra.mxu0 %v2386_v4 }
 0x9fb   :  { %3252 = vmatmul.mubr.msk.f32.vlgmr.msra.gmra.mrb[14].mxu1 %vm114_vm0, %v2899_v44  ;;  %3257 = vmatmul.mubr.msk.f32.vlgmr.msra.gmra.mrb[16].mxu0 %vm114_vm0, %v2901_v12 }
 0x9fc   :  { %3432 = vmatprep.subr.bf16.mxu1 %v5369_v52  ;;  %3436 = vmatprep.subr.bf16.mxu0 %v5370_v7 }
 0x9fd   :  { %3434 = vmatpush3.bf16.msra.mxu1 %v5369_v52  ;;  %3438 = vmatpush3.bf16.msra.mxu0 %v5370_v7 }
 0x9fe   :  { %3439 = vmatprep.subr.bf16.mxu1 %v5371_v58 }
 0xace   :  { %v3253_v35 = vpop.f32.mrb[14].mxu1  ;;  %v3258_v31 = vpop.f32.mrb[16].mxu0 }
 0xacf   :  { %v2478_v62 = vadd.f32 %v3253_v35, %v2398_v8  ;;  %v2472_v47 = vpop.f32.mrb[15].mxu1  ;;  %v2573_v18 = vpop.f32.mrb[17].mxu0  ;;  %v2579_v27 = vadd.f32 %v3258_v31, %v2499_v38 }
 0xad0   :  { %v2473_v34 = vadd.f32 %v2472_v47, %v2394_v3  ;;  %v2574_v28 = vadd.f32 %v2573_v18, %v2495_v60 }
 0xad1   :  { %v2905_v5 = vmul.f32 -1.442695, %v2478_v62  ;;  %v2909_v55 = vmul.f32 -1.442695, %v2579_v27 }
 0xad2   :  { %v2904_v17 = vmul.f32 -1.442695, %v2473_v34  ;;  %v2908_v30 = vmul.f32 -1.442695, %v2574_v28 }
 0xad3   :  { %3598 = vpow2.f32 %v2905_v5 }
 0xad4   :  { %3600 = vpow2.f32 %v2904_v17 }
 0xad5   :  { %3602 = vpow2.f32 %v2908_v30 }
 0xad6   :  { %3604 = vpow2.f32 %v2909_v55 }
 0xadd   :  { %v3599_v61 = vpop.eup %3598 }
 0xade   :  { %v3601_v40 = vpop.eup %3600  ;;  %v2488_v15 = vadd.f32 1.0, %v3599_v61 }
 0xadf   :  { %v3603_v32 = vpop.eup %3602  ;;  %v2487_v46 = vadd.f32 1.0, %v3601_v40 }
 0xae0   :  { %v3605_v19 = vpop.eup %3604  ;;  %3606 = vrcp.f32 %v2488_v15  ;;  %v2588_v2 = vadd.f32 1.0, %v3603_v32 }
 0xae1   :  { %3608 = vrcp.f32 %v2487_v46  ;;  %v2589_v53 = vadd.f32 1.0, %v3605_v19 }
 0xae2   :  { %3610 = vrcp.f32 %v2588_v2 }
 0xae3   :  { %3612 = vrcp.f32 %v2589_v53 }
 0xaea   :  { %v3607_v0 = vpop.eup %3606 }
 0xaeb   :  { %v3609_v11 = vpop.eup %3608 }
 0xaec   :  { %v3611_v23 = vpop.eup %3610  ;;  %3263 = vmatprep.mubr.msk.f32.mxu1 %vm913_vm4, %v3609_v11 }
 0xaed   :  { %v3613_v10 = vpop.eup %3612  ;;  %3264 = vmatmul.mubr.msk.f32.vlgmr.msra.gmra.mrb[16].mxu1 %vm913_vm4, %v3607_v0  ;;  %3270 = vmatprep.mubr.msk.f32.mxu0 %vm913_vm4, %v3611_v23 }
 0xaee   :  { %3271 = vmatmul.mubr.msk.f32.vlgmr.msra.gmra.mrb[18].mxu0 %vm913_vm4, %v3613_v10  ;;  %3277 = vmatprep.mubr.msk.f32.mxu1 %vm3694_vm3, %v5368_v25  ;;  %v2838_v25 = vpop.permute.xlu1 %2837 }
 0xbc0   :  { %v3265_v29 = vpop.f32.mrb[16].mxu1 }
 0xbc1   :  { %v2676_v6 = vmul.f32 %v3265_v29, %v5070_v14  ;;  %v2666_v63 = vpop.f32.mrb[17].mxu1  ;;  %v3272_v21 = vpop.f32.mrb[18].mxu0 }
 0xbc2   :  { %v2675_v59 = vmul.f32 %v2666_v63, %v5068_v39  ;;  %v2749_v24 = vpop.f32.mrb[19].mxu0 }
 0xbc3   :  { %v2759_v41 = vmul.f32 %v3272_v21, %v2676_v6 }
 0xbc4   :  { %v2758_v16 = vmul.f32 %v2749_v24, %v2675_v59 }
 0xbc6   :  { %v3440_v49 = vpack.c.bf16 %v2759_v41, %v2758_v16 }
 0xbc8   :  { %3441 = vmatpush3.bf16.msra.mxu1 %v3440_v49 }
 0xbcb   :  { %3278 = vmatmul.mubr.msk.f32.vlgmr.msra.gmra.mrb[18].mxu1 %vm913_vm4, %v2914_v48 }
 0xc9e   :  { %v2831_v36 = vpop.f32.mrb[18].mxu1 }
 0xc9f   :  { %v2835_v37 = vadd.f32 %v2831_v36, %v5372_v20  ;;  %v3279_v14 = vpop.f32.mrb[19].mxu1 }
 0xca1   :  { %v2840_v54 = vadd.f32 %v2838_v25, %v2835_v37 }
 0xca3   :  { %2841 = vst [vmem:[%s5133_s11] sm:$0xff] %v2840_v54 }

</bundles_post_ra>
